<compile_context>
chip_gen: v7x
topology: tpu7x:2x2x1
jax: 0.10.0
libtpu: 0.0.40
codegen_flags: <defaults>
</compile_context>

<pallas_src>
import numpy as np
import jax
import jax.numpy as jnp
from jax import lax
from jax.experimental import pallas as pl
from jax.experimental.pallas import tpu as pltpu


# ----------------------------- host-side static precompute -----------------------------
def _gather_stack_np(h_in, w_in, h_out, w_out, k, stride, pad, transposed):
    """(k*k, M_in, M_out) one-hot spatial gather/scatter matrices (zero padding implicit)."""
    m_in, m_out = h_in * w_in, h_out * w_out
    hi = (np.arange(m_in) // w_in)[:, None]
    wi = (np.arange(m_in) % w_in)[:, None]
    ho = (np.arange(m_out) // w_out)[None, :]
    wo = (np.arange(m_out) % w_out)[None, :]
    g = np.zeros((k * k, m_in, m_out), np.float32)
    for kh in range(k):
        for kw in range(k):
            if transposed:   # ConvTranspose2d scatter:  ho = stride*hi + kh - pad
                m = (ho == stride * hi + kh - pad) & (wo == stride * wi + kw - pad)
            else:            # Conv2d gather:            hi = stride*ho + kh - pad
                m = (hi == stride * ho + kh - pad) & (wi == stride * wo + kw - pad)
            g[kh * k + kw] = m
    return g


def _bn_fold(gamma, beta, mean, var, eps=1e-5):
    scale = gamma / jnp.sqrt(var + eps)
    return scale, beta - mean * scale


def _conv_wbig(w_oihw, scale, cin_eff):
    """Conv2d OIHW -> (C_out, k*k*C_in_eff) bf16, BN scale folded; column = t*C_in_eff + c_in."""
    c_out, c_in, k, _ = w_oihw.shape
    w = jnp.transpose(w_oihw, (0, 2, 3, 1)) * scale[:, None, None, None]   # (Cout,k,k,Cin)
    if cin_eff > c_in:
        w = jnp.pad(w, ((0, 0), (0, 0), (0, 0), (0, cin_eff - c_in)))
    return w.reshape(c_out, k * k * cin_eff).astype(jnp.bfloat16)


def _deconv_wbig(w_iohw, scale, cin_eff):
    """ConvTranspose2d IOHW -> (C_out, k*k*C_in_eff) bf16, BN scale folded (no flip needed)."""
    c_in, c_out, k, _ = w_iohw.shape
    w = jnp.transpose(w_iohw, (1, 2, 3, 0)) * scale[:, None, None, None]   # (Cout,k,k,Cin)
    if cin_eff > c_in:
        w = jnp.pad(w, ((0, 0), (0, 0), (0, 0), (0, cin_eff - c_in)))
    return w.reshape(c_out, k * k * cin_eff).astype(jnp.bfloat16)


def _shift_block(b, scale, shift, co_eff, n_img):
    """Fused bias*scale + BN shift, zero-padded to co_eff channels and tiled per image."""
    v = (b * scale + shift).astype(jnp.float32)
    v = jnp.zeros((co_eff,), jnp.float32).at[: v.shape[0]].set(v)
    return jnp.tile(v, n_img).reshape(n_img * co_eff, 1)


def _pack_rows(blocks, n_cols, dtype, row_align):
    """Stack 2-D blocks vertically; zero-pad each to row_align rows / n_cols cols so every
    in-kernel slice offset is sublane-tile aligned. Returns (blob, row offsets)."""
    padded, offsets, row = [], [], 0
    for blk in blocks:
        r, c = blk.shape
        rp = -(-r // row_align) * row_align
        padded.append(jnp.zeros((rp, n_cols), dtype).at[:r, :c].set(blk.astype(dtype)))
        offsets.append(row)
        row += rp
    return jnp.concatenate(padded, axis=0), offsets


def _default_images_per_step(n):
    """v7x has 2 TensorCores/chip -> keep a parallel batch grid; v5e/v6e -> fold the batch."""
    kind = ""
    try:
        kind = jax.devices()[0].device_kind.lower()
    except Exception:
        pass
    if n % 2 == 0 and ("v7" in kind or "7x" in kind):
        return n // 2
    return n


# ----------------------------- fused kernel -----------------------------
def _make_kernel(meta, cls_meta, n_img, kk):
    n_layers = len(meta)

    def kernel(*refs):
        x_ref = refs[0]
        g_refs = refs[1:1 + n_layers]
        w_ref = refs[1 + n_layers]
        s_ref = refs[2 + n_layers]
        o_ref = refs[3 + n_layers]

        h = x_ref[0]                                            # (n_img*C_pad, H*W) bf16
        acts = []
        for li, lm in enumerate(meta):
            ci, co = lm["ci"], lm["co"]
            gr = g_refs[li]                                     # (k*k, M_in, M_out) bf16
            w_slab = w_ref[lm["w0"]:lm["w0"] + co, :kk * ci]    # (co, k*k*ci) bf16
            shift = s_ref[lm["s0"]:lm["s0"] + n_img * co, :]    # (n_img*co, 1) f32
            xb = h.astype(jnp.bfloat16)
            # k*k exact one-hot spatial gathers, shared by all images in the group.
            taps = [jnp.dot(xb, gr[t], preferred_element_type=jnp.float32)
                    for t in range(kk)]                         # each (n_img*ci, M_out) f32
            outs = []
            for i in range(n_img):                              # one deep matmul per image
                xcat = jnp.concatenate([tp[i * ci:(i + 1) * ci] for tp in taps],
                                       axis=0).astype(jnp.bfloat16)       # (k*k*ci, M_out)
                outs.append(jnp.dot(w_slab, xcat,
                                    preferred_element_type=jnp.float32))  # (co, M_out) f32
            y = outs[0] if n_img == 1 else jnp.concatenate(outs, axis=0)
            y = jnp.maximum(y + shift, 0.0)                     # fused bias*scale+shift, ReLU
            if lm["skip"] is not None:                          # concat_mode='add'
                y = y + acts[lm["skip"]]
            acts.append(y)
            h = y

        # 1x1 classifier on the VPU (nb_classes x c_last is far too small for the MXU).
        ci, nc = cls_meta["ci"], cls_meta["nc"]
        rs, cp = cls_meta["row_stride"], cls_meta["pad"]
        wc = w_ref[cls_meta["w0"]:cls_meta["w0"] + nc, :ci].astype(jnp.float32)  # (nc, ci)
        bias = s_ref[cls_meta["s0"]:cls_meta["s0"] + nc, :]                      # (nc, 1)
        for i in range(n_img):
            sc = h[i * rs:i * rs + ci, :]                       # (c_last, H*W) f32
            logit = wc[:, 0:1] * sc[0:1, :]
            for c in range(1, ci):
                logit = logit + wc[:, c:c + 1] * sc[c:c + 1, :]
            o_ref[0, i * cp:i * cp + nc, :] = logit + bias

    return kernel


# ----------------------------- forward (single fused pallas_call) -----------------------------
def fcnn_forward(x_nchw, params, images_per_step=None):
    n, c_in, hgt, wdt = x_nchw.shape
    k = int(params["encoder"][0]["w"].shape[-1])
    kk = k * k
    stride, pad = 2, k // 2                  # module: stride=2, padding=k//2, out_pad=stride-1
    n_enc, n_dec = len(params["encoder"]), len(params["decoder"])
    assert n_enc == n_dec
    nb_classes = int(params["classifier"]["w"].shape[0])

    n_img = int(images_per_step) if images_per_step else _default_images_per_step(n)
    assert n % n_img == 0
    n_groups = n // n_img

    ceil8 = lambda v: -(-v // 8) * 8
    c_pad = ceil8(c_in)
    m0 = hgt * wdt

    enc_hw = [(hgt, wdt)]
    for _ in range(n_enc):
        enc_hw.append((enc_hw[-1][0] // stride, enc_hw[-1][1] // stride))
    dec_hw = enc_hw[::-1]

    # -------- host-side precompute: gather stacks + packed weight / shift blobs --------
    gathers, w_blocks, s_blocks, meta = [], [], [], []
    cin_eff = c_pad
    for l, p in enumerate(params["encoder"]):
        c_out = int(p["w"].shape[0]); co_eff = ceil8(c_out)
        gathers.append(jnp.asarray(
            _gather_stack_np(*enc_hw[l], *enc_hw[l + 1], k, stride, pad, False),
            dtype=jnp.bfloat16))
        w_blocks.append(_conv_wbig(p["w"], p["scale"], cin_eff))
        s_blocks.append(_shift_block(p["b"], p["scale"], p["shift"], co_eff, n_img))
        meta.append(dict(ci=cin_eff, co=co_eff, skip=None))
        cin_eff = co_eff
    for d, p in enumerate(params["decoder"]):
        c_out = int(p["w"].shape[1]); co_eff = ceil8(c_out)
        gathers.append(jnp.asarray(
            _gather_stack_np(*dec_hw[d], *dec_hw[d + 1], k, stride, pad, True),
            dtype=jnp.bfloat16))
        w_blocks.append(_deconv_wbig(p["w"], p["scale"], cin_eff))
        s_blocks.append(_shift_block(p["b"], p["scale"], p["shift"], co_eff, n_img))
        skip = (n_enc - 2 - d) if (d + 1) != n_dec else None
        meta.append(dict(ci=cin_eff, co=co_eff, skip=skip))
        cin_eff = co_eff

    pc = params["classifier"]
    c_last = int(pc["w"].shape[1])
    w_blocks.append(pc["w"][:, :, 0, 0].astype(jnp.bfloat16))          # (nb_classes, c_last)
    s_blocks.append(pc["b"].reshape(-1, 1).astype(jnp.float32))        # (nb_classes, 1)

    w_cols = max(int(b.shape[1]) for b in w_blocks)
    w_blob, w_offs = _pack_rows(w_blocks, w_cols, jnp.bfloat16, 16)
    s_blob, s_offs = _pack_rows(s_blocks, 1, jnp.float32, 8)
    for li, lm in enumerate(meta):
        lm["w0"], lm["s0"] = w_offs[li], s_offs[li]
    cls_pad = ceil8(nb_classes)
    cls_meta = dict(ci=c_last, nc=nb_classes, pad=cls_pad,
                    w0=w_offs[-1], s0=s_offs[-1], row_stride=meta[-1]["co"])

    # -------- input layout: (groups, images_in_group * C_pad, H*W) bf16 --------
    x2d = x_nchw.reshape(n, c_in, m0)
    if c_pad > c_in:
        x2d = jnp.pad(x2d, ((0, 0), (0, c_pad - c_in), (0, 0)))
    x3d = x2d.reshape(n_groups, n_img * c_pad, m0).astype(jnp.bfloat16)

    args = [x3d] + gathers + [w_blob, s_blob]
    in_specs = [pl.BlockSpec((1, n_img * c_pad, m0), lambda g: (g, 0, 0))]
    for a in args[1:]:
        in_specs.append(pl.BlockSpec(a.shape, lambda g, _nd=a.ndim: (0,) * _nd))

    out = pl.pallas_call(
        _make_kernel(meta, cls_meta, n_img, kk),
        out_shape=jax.ShapeDtypeStruct((n_groups, n_img * cls_pad, m0), jnp.float32),
        grid=(n_groups,),
        in_specs=in_specs,
        out_specs=pl.BlockSpec((1, n_img * cls_pad, m0), lambda g: (g, 0, 0)),
        compiler_params=pltpu.CompilerParams(
            dimension_semantics=("parallel",),
            vmem_limit_bytes=32 * 1024 * 1024),
    )(*args)

    out = out.reshape(n_groups, n_img, cls_pad, m0)[:, :, :nb_classes, :]
    return out.reshape(n, nb_classes, hgt, wdt)                 # NCHW


# ----------------------------- reference (pure JAX/XLA, f32 HIGHEST) -----------------------------
def _ref_conv(x, w, b, stride, padding):
    y = lax.conv_general_dilated(x, w, (stride, stride), [(padding, padding)] * 2,
                                 dimension_numbers=("NCHW", "OIHW", "NCHW"),
                                 precision=jax.lax.Precision.HIGHEST)
    return y + b[None, :, None, None]


def _ref_deconv(x, wt, b, stride, padding, output_padding):
    k = wt.shape[2]
    w_eq = jnp.flip(wt, axis=(2, 3)).transpose(1, 0, 2, 3)
    pad_lo, pad_hi = k - 1 - padding, k - 1 - padding + output_padding
    y = lax.conv_general_dilated(x, w_eq, (1, 1), [(pad_lo, pad_hi)] * 2,
                                 lhs_dilation=(stride, stride),
                                 dimension_numbers=("NCHW", "OIHW", "NCHW"),
                                 precision=jax.lax.Precision.HIGHEST)
    return y + b[None, :, None, None]


def _ref_bn_act(y, scale, shift, relu=True):
    y = y * scale[None, :, None, None] + shift[None, :, None, None]
    return jnp.maximum(y, 0.0) if relu else y


def reference_forward(x, params):
    intermediates = []
    h = x
    for p in params["encoder"]:
        h = _ref_bn_act(_ref_conv(h, p["w"], p["b"], 2, 1), p["scale"], p["shift"])
        intermediates.append(h)
    rev = list(reversed(intermediates))
    n_dec = len(params["decoder"])
    score = None
    for d, p in enumerate(params["decoder"]):
        inp = rev[0] if d == 0 else score
        score = _ref_bn_act(_ref_deconv(inp, p["w"], p["b"], 2, 1, 1),
                            p["scale"], p["shift"])
        if (d + 1) != n_dec:
            score = score + rev[d + 1]
    pc = params["classifier"]
    return _ref_conv(score, pc["w"], pc["b"], 1, 0)


# ----------------------------- deterministic parameter init -----------------------------
def init_params(key, input_channels=1, enc_channels=(8, 16, 32),
                dec_channels=(16, 8, 4), nb_classes=2, k=3):
    params = {"encoder": [], "decoder": []}
    cin = input_channels
    for cout in enc_channels:
        key, k1, k2, k3, k4, k5, k6 = jax.random.split(key, 7)
        gamma = 1.0 + 0.1 * jax.random.normal(k3, (cout,), jnp.float32)
        beta = 0.05 * jax.random.normal(k4, (cout,), jnp.float32)
        mean = 0.05 * jax.random.normal(k5, (cout,), jnp.float32)
        var = 0.5 + jax.random.uniform(k6, (cout,), dtype=jnp.float32)
        scale, shift = _bn_fold(gamma, beta, mean, var)
        params["encoder"].append(dict(
            w=0.15 * jax.random.normal(k1, (cout, cin, k, k), jnp.float32),  # OIHW
            b=0.05 * jax.random.normal(k2, (cout,), jnp.float32),
            scale=scale, shift=shift))
        cin = cout
    for cout in dec_channels:
        key, k1, k2, k3, k4, k5, k6 = jax.random.split(key, 7)
        gamma = 1.0 + 0.1 * jax.random.normal(k3, (cout,), jnp.float32)
        beta = 0.05 * jax.random.normal(k4, (cout,), jnp.float32)
        mean = 0.05 * jax.random.normal(k5, (cout,), jnp.float32)
        var = 0.5 + jax.random.uniform(k6, (cout,), dtype=jnp.float32)
        scale, shift = _bn_fold(gamma, beta, mean, var)
        params["decoder"].append(dict(
            w=0.15 * jax.random.normal(k1, (cin, cout, k, k), jnp.float32),  # IOHW (ConvTranspose)
            b=0.05 * jax.random.normal(k2, (cout,), jnp.float32),
            scale=scale, shift=shift))
        cin = cout
    key, k1, k2 = jax.random.split(key, 3)
    params["classifier"] = dict(
        w=0.15 * jax.random.normal(k1, (nb_classes, dec_channels[-1], 1, 1), jnp.float32),
        b=0.05 * jax.random.normal(k2, (nb_classes,), jnp.float32))
    return params


# ----------------------------- main -----------------------------
if __name__ == "__main__":
    root = jax.random.PRNGKey(0)
    pkey, xkey = jax.random.split(root)
    params = init_params(pkey)

    # input matching the PyTorch module interface: NCHW
    x = jax.random.normal(xkey, (2, 1, 16, 16), jnp.float32)

    out = jax.jit(fcnn_forward)(x, params)
    out = jax.block_until_ready(out)
    assert out.shape == (2, 2, 16, 16), out.shape

    ref = reference_forward(x, params)
    max_err = float(jnp.max(jnp.abs(out - ref)))
    # bf16 MXU inputs + f32 accumulation/epilogue, checked against an f32 HIGHEST reference.
    assert jnp.allclose(out, ref, atol=2e-2, rtol=2e-2), max_err

    print("KERNEL_OK")
</pallas_src>

<mosaic_0001>
module attributes {stable_mosaic.version = 11 : i64} {
  func.func @kernel(%arg0: i32, %arg1: memref<1x16x256xbf16, #tpu.memory_space<vmem>>, %arg2: memref<9x256x64xbf16, #tpu.memory_space<vmem>>, %arg3: memref<9x64x16xbf16, #tpu.memory_space<vmem>>, %arg4: memref<9x16x4xbf16, #tpu.memory_space<vmem>>, %arg5: memref<9x4x16xbf16, #tpu.memory_space<vmem>>, %arg6: memref<9x16x64xbf16, #tpu.memory_space<vmem>>, %arg7: memref<9x64x256xbf16, #tpu.memory_space<vmem>>, %arg8: memref<128x288xbf16, #tpu.memory_space<vmem>>, %arg9: memref<184x1xf32, #tpu.memory_space<vmem>>, %arg10: memref<1x16x256xf32, #tpu.memory_space<vmem>>) attributes {dimension_semantics = [#tpu.dimension_semantics<parallel>], iteration_bounds = array<i64: 1>, scalar_prefetch = 0 : i64, scratch_operands = 0 : i64, tpu.core_type = #tpu.core_type<tc>, window_params = [{transform_indices = @transform_0, window_bounds = array<i64: 1, 16, 256>}, {pipeline_mode = #tpu.pipeline_mode<synchronous>, transform_indices = @transform_1, window_bounds = array<i64: 9, 256, 64>}, {pipeline_mode = #tpu.pipeline_mode<synchronous>, transform_indices = @transform_2, window_bounds = array<i64: 9, 64, 16>}, {pipeline_mode = #tpu.pipeline_mode<synchronous>, transform_indices = @transform_3, window_bounds = array<i64: 9, 16, 4>}, {pipeline_mode = #tpu.pipeline_mode<synchronous>, transform_indices = @transform_4, window_bounds = array<i64: 9, 4, 16>}, {pipeline_mode = #tpu.pipeline_mode<synchronous>, transform_indices = @transform_5, window_bounds = array<i64: 9, 16, 64>}, {pipeline_mode = #tpu.pipeline_mode<synchronous>, transform_indices = @transform_6, window_bounds = array<i64: 9, 64, 256>}, {pipeline_mode = #tpu.pipeline_mode<synchronous>, transform_indices = @transform_7, window_bounds = array<i64: 128, 288>}, {pipeline_mode = #tpu.pipeline_mode<synchronous>, transform_indices = @transform_8, window_bounds = array<i64: 184, 1>}, {transform_indices = @transform_9, window_bounds = array<i64: 1, 16, 256>}]} {
    %c0 = arith.constant 0 : index
    %c0_0 = arith.constant 0 : index
    %c0_1 = arith.constant 0 : index
    %0 = vector.load %arg1[%c0, %c0_0, %c0_1] : memref<1x16x256xbf16, #tpu.memory_space<vmem>>, vector<1x16x256xbf16>
    %1 = vector.shape_cast %0 : vector<1x16x256xbf16> to vector<16x256xbf16>
    %c0_2 = arith.constant 0 : index
    %c0_3 = arith.constant 0 : index
    %2 = vector.load %arg8[%c0_2, %c0_3] : memref<128x288xbf16, #tpu.memory_space<vmem>>, vector<8x72xbf16>
    %c0_4 = arith.constant 0 : index
    %c0_5 = arith.constant 0 : index
    %3 = vector.load %arg9[%c0_4, %c0_5] : memref<184x1xf32, #tpu.memory_space<vmem>>, vector<16x1xf32>
    %c0_6 = arith.constant 0 : index
    %c0_7 = arith.constant 0 : index
    %c0_8 = arith.constant 0 : index
    %4 = vector.load %arg2[%c0_6, %c0_7, %c0_8] : memref<9x256x64xbf16, #tpu.memory_space<vmem>>, vector<1x256x64xbf16>
    %5 = vector.shape_cast %4 : vector<1x256x64xbf16> to vector<256x64xbf16>
    %cst = arith.constant dense<0.000000e+00> : vector<16x64xf32>
    %6 = tpu.matmul %1, %5, %cst {dimension_numbers = #tpu.dot_dimension_numbers<[1], [0], [0], [1], [0, 0, 1, 1], [], []>} : vector<16x256xbf16>, vector<256x64xbf16>, vector<16x64xf32> -> vector<16x64xf32>
    %c1 = arith.constant 1 : index
    %c0_9 = arith.constant 0 : index
    %c0_10 = arith.constant 0 : index
    %7 = vector.load %arg2[%c1, %c0_9, %c0_10] : memref<9x256x64xbf16, #tpu.memory_space<vmem>>, vector<1x256x64xbf16>
    %8 = vector.shape_cast %7 : vector<1x256x64xbf16> to vector<256x64xbf16>
    %cst_11 = arith.constant dense<0.000000e+00> : vector<16x64xf32>
    %9 = tpu.matmul %1, %8, %cst_11 {dimension_numbers = #tpu.dot_dimension_numbers<[1], [0], [0], [1], [0, 0, 1, 1], [], []>} : vector<16x256xbf16>, vector<256x64xbf16>, vector<16x64xf32> -> vector<16x64xf32>
    %c2 = arith.constant 2 : index
    %c0_12 = arith.constant 0 : index
    %c0_13 = arith.constant 0 : index
    %10 = vector.load %arg2[%c2, %c0_12, %c0_13] : memref<9x256x64xbf16, #tpu.memory_space<vmem>>, vector<1x256x64xbf16>
    %11 = vector.shape_cast %10 : vector<1x256x64xbf16> to vector<256x64xbf16>
    %cst_14 = arith.constant dense<0.000000e+00> : vector<16x64xf32>
    %12 = tpu.matmul %1, %11, %cst_14 {dimension_numbers = #tpu.dot_dimension_numbers<[1], [0], [0], [1], [0, 0, 1, 1], [], []>} : vector<16x256xbf16>, vector<256x64xbf16>, vector<16x64xf32> -> vector<16x64xf32>
    %c3 = arith.constant 3 : index
    %c0_15 = arith.constant 0 : index
    %c0_16 = arith.constant 0 : index
    %13 = vector.load %arg2[%c3, %c0_15, %c0_16] : memref<9x256x64xbf16, #tpu.memory_space<vmem>>, vector<1x256x64xbf16>
    %14 = vector.shape_cast %13 : vector<1x256x64xbf16> to vector<256x64xbf16>
    %cst_17 = arith.constant dense<0.000000e+00> : vector<16x64xf32>
    %15 = tpu.matmul %1, %14, %cst_17 {dimension_numbers = #tpu.dot_dimension_numbers<[1], [0], [0], [1], [0, 0, 1, 1], [], []>} : vector<16x256xbf16>, vector<256x64xbf16>, vector<16x64xf32> -> vector<16x64xf32>
    %c4 = arith.constant 4 : index
    %c0_18 = arith.constant 0 : index
    %c0_19 = arith.constant 0 : index
    %16 = vector.load %arg2[%c4, %c0_18, %c0_19] : memref<9x256x64xbf16, #tpu.memory_space<vmem>>, vector<1x256x64xbf16>
    %17 = vector.shape_cast %16 : vector<1x256x64xbf16> to vector<256x64xbf16>
    %cst_20 = arith.constant dense<0.000000e+00> : vector<16x64xf32>
    %18 = tpu.matmul %1, %17, %cst_20 {dimension_numbers = #tpu.dot_dimension_numbers<[1], [0], [0], [1], [0, 0, 1, 1], [], []>} : vector<16x256xbf16>, vector<256x64xbf16>, vector<16x64xf32> -> vector<16x64xf32>
    %c5 = arith.constant 5 : index
    %c0_21 = arith.constant 0 : index
    %c0_22 = arith.constant 0 : index
    %19 = vector.load %arg2[%c5, %c0_21, %c0_22] : memref<9x256x64xbf16, #tpu.memory_space<vmem>>, vector<1x256x64xbf16>
    %20 = vector.shape_cast %19 : vector<1x256x64xbf16> to vector<256x64xbf16>
    %cst_23 = arith.constant dense<0.000000e+00> : vector<16x64xf32>
    %21 = tpu.matmul %1, %20, %cst_23 {dimension_numbers = #tpu.dot_dimension_numbers<[1], [0], [0], [1], [0, 0, 1, 1], [], []>} : vector<16x256xbf16>, vector<256x64xbf16>, vector<16x64xf32> -> vector<16x64xf32>
    %c6 = arith.constant 6 : index
    %c0_24 = arith.constant 0 : index
    %c0_25 = arith.constant 0 : index
    %22 = vector.load %arg2[%c6, %c0_24, %c0_25] : memref<9x256x64xbf16, #tpu.memory_space<vmem>>, vector<1x256x64xbf16>
    %23 = vector.shape_cast %22 : vector<1x256x64xbf16> to vector<256x64xbf16>
    %cst_26 = arith.constant dense<0.000000e+00> : vector<16x64xf32>
    %24 = tpu.matmul %1, %23, %cst_26 {dimension_numbers = #tpu.dot_dimension_numbers<[1], [0], [0], [1], [0, 0, 1, 1], [], []>} : vector<16x256xbf16>, vector<256x64xbf16>, vector<16x64xf32> -> vector<16x64xf32>
    %c7 = arith.constant 7 : index
    %c0_27 = arith.constant 0 : index
    %c0_28 = arith.constant 0 : index
    %25 = vector.load %arg2[%c7, %c0_27, %c0_28] : memref<9x256x64xbf16, #tpu.memory_space<vmem>>, vector<1x256x64xbf16>
    %26 = vector.shape_cast %25 : vector<1x256x64xbf16> to vector<256x64xbf16>
    %cst_29 = arith.constant dense<0.000000e+00> : vector<16x64xf32>
    %27 = tpu.matmul %1, %26, %cst_29 {dimension_numbers = #tpu.dot_dimension_numbers<[1], [0], [0], [1], [0, 0, 1, 1], [], []>} : vector<16x256xbf16>, vector<256x64xbf16>, vector<16x64xf32> -> vector<16x64xf32>
    %c8 = arith.constant 8 : index
    %c0_30 = arith.constant 0 : index
    %c0_31 = arith.constant 0 : index
    %28 = vector.load %arg2[%c8, %c0_30, %c0_31] : memref<9x256x64xbf16, #tpu.memory_space<vmem>>, vector<1x256x64xbf16>
    %29 = vector.shape_cast %28 : vector<1x256x64xbf16> to vector<256x64xbf16>
    %cst_32 = arith.constant dense<0.000000e+00> : vector<16x64xf32>
    %30 = tpu.matmul %1, %29, %cst_32 {dimension_numbers = #tpu.dot_dimension_numbers<[1], [0], [0], [1], [0, 0, 1, 1], [], []>} : vector<16x256xbf16>, vector<256x64xbf16>, vector<16x64xf32> -> vector<16x64xf32>
    %31 = vector.extract_strided_slice %6 {offsets = [0, 0], sizes = [8, 64], strides = [1, 1]} : vector<16x64xf32> to vector<8x64xf32>
    %32 = vector.extract_strided_slice %9 {offsets = [0, 0], sizes = [8, 64], strides = [1, 1]} : vector<16x64xf32> to vector<8x64xf32>
    %33 = vector.extract_strided_slice %12 {offsets = [0, 0], sizes = [8, 64], strides = [1, 1]} : vector<16x64xf32> to vector<8x64xf32>
    %34 = vector.extract_strided_slice %15 {offsets = [0, 0], sizes = [8, 64], strides = [1, 1]} : vector<16x64xf32> to vector<8x64xf32>
    %35 = vector.extract_strided_slice %18 {offsets = [0, 0], sizes = [8, 64], strides = [1, 1]} : vector<16x64xf32> to vector<8x64xf32>
    %36 = vector.extract_strided_slice %21 {offsets = [0, 0], sizes = [8, 64], strides = [1, 1]} : vector<16x64xf32> to vector<8x64xf32>
    %37 = vector.extract_strided_slice %24 {offsets = [0, 0], sizes = [8, 64], strides = [1, 1]} : vector<16x64xf32> to vector<8x64xf32>
    %38 = vector.extract_strided_slice %27 {offsets = [0, 0], sizes = [8, 64], strides = [1, 1]} : vector<16x64xf32> to vector<8x64xf32>
    %39 = vector.extract_strided_slice %30 {offsets = [0, 0], sizes = [8, 64], strides = [1, 1]} : vector<16x64xf32> to vector<8x64xf32>
    %40 = tpu.concatenate %31, %32, %33, %34, %35, %36, %37, %38, %39 in 0 : vector<8x64xf32>, vector<8x64xf32>, vector<8x64xf32>, vector<8x64xf32>, vector<8x64xf32>, vector<8x64xf32>, vector<8x64xf32>, vector<8x64xf32>, vector<8x64xf32> -> vector<72x64xf32>
    %41 = arith.truncf %40 : vector<72x64xf32> to vector<72x64xbf16>
    %cst_33 = arith.constant dense<0.000000e+00> : vector<8x64xf32>
    %42 = tpu.matmul %2, %41, %cst_33 {dimension_numbers = #tpu.dot_dimension_numbers<[1], [0], [0], [1], [0, 0, 1, 1], [], []>} : vector<8x72xbf16>, vector<72x64xbf16>, vector<8x64xf32> -> vector<8x64xf32>
    %43 = vector.extract_strided_slice %6 {offsets = [8, 0], sizes = [8, 64], strides = [1, 1]} : vector<16x64xf32> to vector<8x64xf32>
    %44 = vector.extract_strided_slice %9 {offsets = [8, 0], sizes = [8, 64], strides = [1, 1]} : vector<16x64xf32> to vector<8x64xf32>
    %45 = vector.extract_strided_slice %12 {offsets = [8, 0], sizes = [8, 64], strides = [1, 1]} : vector<16x64xf32> to vector<8x64xf32>
    %46 = vector.extract_strided_slice %15 {offsets = [8, 0], sizes = [8, 64], strides = [1, 1]} : vector<16x64xf32> to vector<8x64xf32>
    %47 = vector.extract_strided_slice %18 {offsets = [8, 0], sizes = [8, 64], strides = [1, 1]} : vector<16x64xf32> to vector<8x64xf32>
    %48 = vector.extract_strided_slice %21 {offsets = [8, 0], sizes = [8, 64], strides = [1, 1]} : vector<16x64xf32> to vector<8x64xf32>
    %49 = vector.extract_strided_slice %24 {offsets = [8, 0], sizes = [8, 64], strides = [1, 1]} : vector<16x64xf32> to vector<8x64xf32>
    %50 = vector.extract_strided_slice %27 {offsets = [8, 0], sizes = [8, 64], strides = [1, 1]} : vector<16x64xf32> to vector<8x64xf32>
    %51 = vector.extract_strided_slice %30 {offsets = [8, 0], sizes = [8, 64], strides = [1, 1]} : vector<16x64xf32> to vector<8x64xf32>
    %52 = tpu.concatenate %43, %44, %45, %46, %47, %48, %49, %50, %51 in 0 : vector<8x64xf32>, vector<8x64xf32>, vector<8x64xf32>, vector<8x64xf32>, vector<8x64xf32>, vector<8x64xf32>, vector<8x64xf32>, vector<8x64xf32>, vector<8x64xf32> -> vector<72x64xf32>
    %53 = arith.truncf %52 : vector<72x64xf32> to vector<72x64xbf16>
    %cst_34 = arith.constant dense<0.000000e+00> : vector<8x64xf32>
    %54 = tpu.matmul %2, %53, %cst_34 {dimension_numbers = #tpu.dot_dimension_numbers<[1], [0], [0], [1], [0, 0, 1, 1], [], []>} : vector<8x72xbf16>, vector<72x64xbf16>, vector<8x64xf32> -> vector<8x64xf32>
    %55 = tpu.concatenate %42, %54 in 0 : vector<8x64xf32>, vector<8x64xf32> -> vector<16x64xf32>
    %56 = vector.broadcast %3 : vector<16x1xf32> to vector<16x64xf32>
    %57 = arith.addf %55, %56 : vector<16x64xf32>
    %cst_35 = arith.constant 0.000000e+00 : f32
    %58 = vector.broadcast %cst_35 : f32 to vector<16x64xf32>
    %59 = arith.maximumf %57, %58 : vector<16x64xf32>
    %c16 = arith.constant 16 : index
    %c0_36 = arith.constant 0 : index
    %60 = vector.load %arg8[%c16, %c0_36] : memref<128x288xbf16, #tpu.memory_space<vmem>>, vector<16x72xbf16>
    %c16_37 = arith.constant 16 : index
    %c0_38 = arith.constant 0 : index
    %61 = vector.load %arg9[%c16_37, %c0_38] : memref<184x1xf32, #tpu.memory_space<vmem>>, vector<32x1xf32>
    %62 = arith.truncf %59 : vector<16x64xf32> to vector<16x64xbf16>
    %c0_39 = arith.constant 0 : index
    %c0_40 = arith.constant 0 : index
    %c0_41 = arith.constant 0 : index
    %63 = vector.load %arg3[%c0_39, %c0_40, %c0_41] : memref<9x64x16xbf16, #tpu.memory_space<vmem>>, vector<1x64x16xbf16>
    %64 = vector.shape_cast %63 : vector<1x64x16xbf16> to vector<64x16xbf16>
    %cst_42 = arith.constant dense<0.000000e+00> : vector<16x16xf32>
    %65 = tpu.matmul %62, %64, %cst_42 {dimension_numbers = #tpu.dot_dimension_numbers<[1], [0], [0], [1], [0, 0, 1, 1], [], []>} : vector<16x64xbf16>, vector<64x16xbf16>, vector<16x16xf32> -> vector<16x16xf32>
    %c1_43 = arith.constant 1 : index
    %c0_44 = arith.constant 0 : index
    %c0_45 = arith.constant 0 : index
    %66 = vector.load %arg3[%c1_43, %c0_44, %c0_45] : memref<9x64x16xbf16, #tpu.memory_space<vmem>>, vector<1x64x16xbf16>
    %67 = vector.shape_cast %66 : vector<1x64x16xbf16> to vector<64x16xbf16>
    %cst_46 = arith.constant dense<0.000000e+00> : vector<16x16xf32>
    %68 = tpu.matmul %62, %67, %cst_46 {dimension_numbers = #tpu.dot_dimension_numbers<[1], [0], [0], [1], [0, 0, 1, 1], [], []>} : vector<16x64xbf16>, vector<64x16xbf16>, vector<16x16xf32> -> vector<16x16xf32>
    %c2_47 = arith.constant 2 : index
    %c0_48 = arith.constant 0 : index
    %c0_49 = arith.constant 0 : index
    %69 = vector.load %arg3[%c2_47, %c0_48, %c0_49] : memref<9x64x16xbf16, #tpu.memory_space<vmem>>, vector<1x64x16xbf16>
    %70 = vector.shape_cast %69 : vector<1x64x16xbf16> to vector<64x16xbf16>
    %cst_50 = arith.constant dense<0.000000e+00> : vector<16x16xf32>
    %71 = tpu.matmul %62, %70, %cst_50 {dimension_numbers = #tpu.dot_dimension_numbers<[1], [0], [0], [1], [0, 0, 1, 1], [], []>} : vector<16x64xbf16>, vector<64x16xbf16>, vector<16x16xf32> -> vector<16x16xf32>
    %c3_51 = arith.constant 3 : index
    %c0_52 = arith.constant 0 : index
    %c0_53 = arith.constant 0 : index
    %72 = vector.load %arg3[%c3_51, %c0_52, %c0_53] : memref<9x64x16xbf16, #tpu.memory_space<vmem>>, vector<1x64x16xbf16>
    %73 = vector.shape_cast %72 : vector<1x64x16xbf16> to vector<64x16xbf16>
    %cst_54 = arith.constant dense<0.000000e+00> : vector<16x16xf32>
    %74 = tpu.matmul %62, %73, %cst_54 {dimension_numbers = #tpu.dot_dimension_numbers<[1], [0], [0], [1], [0, 0, 1, 1], [], []>} : vector<16x64xbf16>, vector<64x16xbf16>, vector<16x16xf32> -> vector<16x16xf32>
    %c4_55 = arith.constant 4 : index
    %c0_56 = arith.constant 0 : index
    %c0_57 = arith.constant 0 : index
    %75 = vector.load %arg3[%c4_55, %c0_56, %c0_57] : memref<9x64x16xbf16, #tpu.memory_space<vmem>>, vector<1x64x16xbf16>
    %76 = vector.shape_cast %75 : vector<1x64x16xbf16> to vector<64x16xbf16>
    %cst_58 = arith.constant dense<0.000000e+00> : vector<16x16xf32>
    %77 = tpu.matmul %62, %76, %cst_58 {dimension_numbers = #tpu.dot_dimension_numbers<[1], [0], [0], [1], [0, 0, 1, 1], [], []>} : vector<16x64xbf16>, vector<64x16xbf16>, vector<16x16xf32> -> vector<16x16xf32>
    %c5_59 = arith.constant 5 : index
    %c0_60 = arith.constant 0 : index
    %c0_61 = arith.constant 0 : index
    %78 = vector.load %arg3[%c5_59, %c0_60, %c0_61] : memref<9x64x16xbf16, #tpu.memory_space<vmem>>, vector<1x64x16xbf16>
    %79 = vector.shape_cast %78 : vector<1x64x16xbf16> to vector<64x16xbf16>
    %cst_62 = arith.constant dense<0.000000e+00> : vector<16x16xf32>
    %80 = tpu.matmul %62, %79, %cst_62 {dimension_numbers = #tpu.dot_dimension_numbers<[1], [0], [0], [1], [0, 0, 1, 1], [], []>} : vector<16x64xbf16>, vector<64x16xbf16>, vector<16x16xf32> -> vector<16x16xf32>
    %c6_63 = arith.constant 6 : index
    %c0_64 = arith.constant 0 : index
    %c0_65 = arith.constant 0 : index
    %81 = vector.load %arg3[%c6_63, %c0_64, %c0_65] : memref<9x64x16xbf16, #tpu.memory_space<vmem>>, vector<1x64x16xbf16>
    %82 = vector.shape_cast %81 : vector<1x64x16xbf16> to vector<64x16xbf16>
    %cst_66 = arith.constant dense<0.000000e+00> : vector<16x16xf32>
    %83 = tpu.matmul %62, %82, %cst_66 {dimension_numbers = #tpu.dot_dimension_numbers<[1], [0], [0], [1], [0, 0, 1, 1], [], []>} : vector<16x64xbf16>, vector<64x16xbf16>, vector<16x16xf32> -> vector<16x16xf32>
    %c7_67 = arith.constant 7 : index
    %c0_68 = arith.constant 0 : index
    %c0_69 = arith.constant 0 : index
    %84 = vector.load %arg3[%c7_67, %c0_68, %c0_69] : memref<9x64x16xbf16, #tpu.memory_space<vmem>>, vector<1x64x16xbf16>
    %85 = vector.shape_cast %84 : vector<1x64x16xbf16> to vector<64x16xbf16>
    %cst_70 = arith.constant dense<0.000000e+00> : vector<16x16xf32>
    %86 = tpu.matmul %62, %85, %cst_70 {dimension_numbers = #tpu.dot_dimension_numbers<[1], [0], [0], [1], [0, 0, 1, 1], [], []>} : vector<16x64xbf16>, vector<64x16xbf16>, vector<16x16xf32> -> vector<16x16xf32>
    %c8_71 = arith.constant 8 : index
    %c0_72 = arith.constant 0 : index
    %c0_73 = arith.constant 0 : index
    %87 = vector.load %arg3[%c8_71, %c0_72, %c0_73] : memref<9x64x16xbf16, #tpu.memory_space<vmem>>, vector<1x64x16xbf16>
    %88 = vector.shape_cast %87 : vector<1x64x16xbf16> to vector<64x16xbf16>
    %cst_74 = arith.constant dense<0.000000e+00> : vector<16x16xf32>
    %89 = tpu.matmul %62, %88, %cst_74 {dimension_numbers = #tpu.dot_dimension_numbers<[1], [0], [0], [1], [0, 0, 1, 1], [], []>} : vector<16x64xbf16>, vector<64x16xbf16>, vector<16x16xf32> -> vector<16x16xf32>
    %90 = vector.extract_strided_slice %65 {offsets = [0, 0], sizes = [8, 16], strides = [1, 1]} : vector<16x16xf32> to vector<8x16xf32>
    %91 = vector.extract_strided_slice %68 {offsets = [0, 0], sizes = [8, 16], strides = [1, 1]} : vector<16x16xf32> to vector<8x16xf32>
    %92 = vector.extract_strided_slice %71 {offsets = [0, 0], sizes = [8, 16], strides = [1, 1]} : vector<16x16xf32> to vector<8x16xf32>
    %93 = vector.extract_strided_slice %74 {offsets = [0, 0], sizes = [8, 16], strides = [1, 1]} : vector<16x16xf32> to vector<8x16xf32>
    %94 = vector.extract_strided_slice %77 {offsets = [0, 0], sizes = [8, 16], strides = [1, 1]} : vector<16x16xf32> to vector<8x16xf32>
    %95 = vector.extract_strided_slice %80 {offsets = [0, 0], sizes = [8, 16], strides = [1, 1]} : vector<16x16xf32> to vector<8x16xf32>
    %96 = vector.extract_strided_slice %83 {offsets = [0, 0], sizes = [8, 16], strides = [1, 1]} : vector<16x16xf32> to vector<8x16xf32>
    %97 = vector.extract_strided_slice %86 {offsets = [0, 0], sizes = [8, 16], strides = [1, 1]} : vector<16x16xf32> to vector<8x16xf32>
    %98 = vector.extract_strided_slice %89 {offsets = [0, 0], sizes = [8, 16], strides = [1, 1]} : vector<16x16xf32> to vector<8x16xf32>
    %99 = tpu.concatenate %90, %91, %92, %93, %94, %95, %96, %97, %98 in 0 : vector<8x16xf32>, vector<8x16xf32>, vector<8x16xf32>, vector<8x16xf32>, vector<8x16xf32>, vector<8x16xf32>, vector<8x16xf32>, vector<8x16xf32>, vector<8x16xf32> -> vector<72x16xf32>
    %100 = arith.truncf %99 : vector<72x16xf32> to vector<72x16xbf16>
    %cst_75 = arith.constant dense<0.000000e+00> : vector<16x16xf32>
    %101 = tpu.matmul %60, %100, %cst_75 {dimension_numbers = #tpu.dot_dimension_numbers<[1], [0], [0], [1], [0, 0, 1, 1], [], []>} : vector<16x72xbf16>, vector<72x16xbf16>, vector<16x16xf32> -> vector<16x16xf32>
    %102 = vector.extract_strided_slice %65 {offsets = [8, 0], sizes = [8, 16], strides = [1, 1]} : vector<16x16xf32> to vector<8x16xf32>
    %103 = vector.extract_strided_slice %68 {offsets = [8, 0], sizes = [8, 16], strides = [1, 1]} : vector<16x16xf32> to vector<8x16xf32>
    %104 = vector.extract_strided_slice %71 {offsets = [8, 0], sizes = [8, 16], strides = [1, 1]} : vector<16x16xf32> to vector<8x16xf32>
    %105 = vector.extract_strided_slice %74 {offsets = [8, 0], sizes = [8, 16], strides = [1, 1]} : vector<16x16xf32> to vector<8x16xf32>
    %106 = vector.extract_strided_slice %77 {offsets = [8, 0], sizes = [8, 16], strides = [1, 1]} : vector<16x16xf32> to vector<8x16xf32>
    %107 = vector.extract_strided_slice %80 {offsets = [8, 0], sizes = [8, 16], strides = [1, 1]} : vector<16x16xf32> to vector<8x16xf32>
    %108 = vector.extract_strided_slice %83 {offsets = [8, 0], sizes = [8, 16], strides = [1, 1]} : vector<16x16xf32> to vector<8x16xf32>
    %109 = vector.extract_strided_slice %86 {offsets = [8, 0], sizes = [8, 16], strides = [1, 1]} : vector<16x16xf32> to vector<8x16xf32>
    %110 = vector.extract_strided_slice %89 {offsets = [8, 0], sizes = [8, 16], strides = [1, 1]} : vector<16x16xf32> to vector<8x16xf32>
    %111 = tpu.concatenate %102, %103, %104, %105, %106, %107, %108, %109, %110 in 0 : vector<8x16xf32>, vector<8x16xf32>, vector<8x16xf32>, vector<8x16xf32>, vector<8x16xf32>, vector<8x16xf32>, vector<8x16xf32>, vector<8x16xf32>, vector<8x16xf32> -> vector<72x16xf32>
    %112 = arith.truncf %111 : vector<72x16xf32> to vector<72x16xbf16>
    %cst_76 = arith.constant dense<0.000000e+00> : vector<16x16xf32>
    %113 = tpu.matmul %60, %112, %cst_76 {dimension_numbers = #tpu.dot_dimension_numbers<[1], [0], [0], [1], [0, 0, 1, 1], [], []>} : vector<16x72xbf16>, vector<72x16xbf16>, vector<16x16xf32> -> vector<16x16xf32>
    %114 = tpu.concatenate %101, %113 in 0 : vector<16x16xf32>, vector<16x16xf32> -> vector<32x16xf32>
    %115 = vector.broadcast %61 : vector<32x1xf32> to vector<32x16xf32>
    %116 = arith.addf %114, %115 : vector<32x16xf32>
    %cst_77 = arith.constant 0.000000e+00 : f32
    %117 = vector.broadcast %cst_77 : f32 to vector<32x16xf32>
    %118 = arith.maximumf %116, %117 : vector<32x16xf32>
    %c32 = arith.constant 32 : index
    %c0_78 = arith.constant 0 : index
    %119 = vector.load %arg8[%c32, %c0_78] : memref<128x288xbf16, #tpu.memory_space<vmem>>, vector<32x144xbf16>
    %c48 = arith.constant 48 : index
    %c0_79 = arith.constant 0 : index
    %120 = vector.load %arg9[%c48, %c0_79] : memref<184x1xf32, #tpu.memory_space<vmem>>, vector<64x1xf32>
    %121 = arith.truncf %118 : vector<32x16xf32> to vector<32x16xbf16>
    %c0_80 = arith.constant 0 : index
    %c0_81 = arith.constant 0 : index
    %c0_82 = arith.constant 0 : index
    %122 = vector.load %arg4[%c0_80, %c0_81, %c0_82] : memref<9x16x4xbf16, #tpu.memory_space<vmem>>, vector<1x16x4xbf16>
    %123 = vector.shape_cast %122 : vector<1x16x4xbf16> to vector<16x4xbf16>
    %cst_83 = arith.constant dense<0.000000e+00> : vector<32x4xf32>
    %124 = tpu.matmul %121, %123, %cst_83 {dimension_numbers = #tpu.dot_dimension_numbers<[1], [0], [0], [1], [0, 0, 1, 1], [], []>} : vector<32x16xbf16>, vector<16x4xbf16>, vector<32x4xf32> -> vector<32x4xf32>
    %c1_84 = arith.constant 1 : index
    %c0_85 = arith.constant 0 : index
    %c0_86 = arith.constant 0 : index
    %125 = vector.load %arg4[%c1_84, %c0_85, %c0_86] : memref<9x16x4xbf16, #tpu.memory_space<vmem>>, vector<1x16x4xbf16>
    %126 = vector.shape_cast %125 : vector<1x16x4xbf16> to vector<16x4xbf16>
    %cst_87 = arith.constant dense<0.000000e+00> : vector<32x4xf32>
    %127 = tpu.matmul %121, %126, %cst_87 {dimension_numbers = #tpu.dot_dimension_numbers<[1], [0], [0], [1], [0, 0, 1, 1], [], []>} : vector<32x16xbf16>, vector<16x4xbf16>, vector<32x4xf32> -> vector<32x4xf32>
    %c2_88 = arith.constant 2 : index
    %c0_89 = arith.constant 0 : index
    %c0_90 = arith.constant 0 : index
    %128 = vector.load %arg4[%c2_88, %c0_89, %c0_90] : memref<9x16x4xbf16, #tpu.memory_space<vmem>>, vector<1x16x4xbf16>
    %129 = vector.shape_cast %128 : vector<1x16x4xbf16> to vector<16x4xbf16>
    %cst_91 = arith.constant dense<0.000000e+00> : vector<32x4xf32>
    %130 = tpu.matmul %121, %129, %cst_91 {dimension_numbers = #tpu.dot_dimension_numbers<[1], [0], [0], [1], [0, 0, 1, 1], [], []>} : vector<32x16xbf16>, vector<16x4xbf16>, vector<32x4xf32> -> vector<32x4xf32>
    %c3_92 = arith.constant 3 : index
    %c0_93 = arith.constant 0 : index
    %c0_94 = arith.constant 0 : index
    %131 = vector.load %arg4[%c3_92, %c0_93, %c0_94] : memref<9x16x4xbf16, #tpu.memory_space<vmem>>, vector<1x16x4xbf16>
    %132 = vector.shape_cast %131 : vector<1x16x4xbf16> to vector<16x4xbf16>
    %cst_95 = arith.constant dense<0.000000e+00> : vector<32x4xf32>
    %133 = tpu.matmul %121, %132, %cst_95 {dimension_numbers = #tpu.dot_dimension_numbers<[1], [0], [0], [1], [0, 0, 1, 1], [], []>} : vector<32x16xbf16>, vector<16x4xbf16>, vector<32x4xf32> -> vector<32x4xf32>
    %c4_96 = arith.constant 4 : index
    %c0_97 = arith.constant 0 : index
    %c0_98 = arith.constant 0 : index
    %134 = vector.load %arg4[%c4_96, %c0_97, %c0_98] : memref<9x16x4xbf16, #tpu.memory_space<vmem>>, vector<1x16x4xbf16>
    %135 = vector.shape_cast %134 : vector<1x16x4xbf16> to vector<16x4xbf16>
    %cst_99 = arith.constant dense<0.000000e+00> : vector<32x4xf32>
    %136 = tpu.matmul %121, %135, %cst_99 {dimension_numbers = #tpu.dot_dimension_numbers<[1], [0], [0], [1], [0, 0, 1, 1], [], []>} : vector<32x16xbf16>, vector<16x4xbf16>, vector<32x4xf32> -> vector<32x4xf32>
    %c5_100 = arith.constant 5 : index
    %c0_101 = arith.constant 0 : index
    %c0_102 = arith.constant 0 : index
    %137 = vector.load %arg4[%c5_100, %c0_101, %c0_102] : memref<9x16x4xbf16, #tpu.memory_space<vmem>>, vector<1x16x4xbf16>
    %138 = vector.shape_cast %137 : vector<1x16x4xbf16> to vector<16x4xbf16>
    %cst_103 = arith.constant dense<0.000000e+00> : vector<32x4xf32>
    %139 = tpu.matmul %121, %138, %cst_103 {dimension_numbers = #tpu.dot_dimension_numbers<[1], [0], [0], [1], [0, 0, 1, 1], [], []>} : vector<32x16xbf16>, vector<16x4xbf16>, vector<32x4xf32> -> vector<32x4xf32>
    %c6_104 = arith.constant 6 : index
    %c0_105 = arith.constant 0 : index
    %c0_106 = arith.constant 0 : index
    %140 = vector.load %arg4[%c6_104, %c0_105, %c0_106] : memref<9x16x4xbf16, #tpu.memory_space<vmem>>, vector<1x16x4xbf16>
    %141 = vector.shape_cast %140 : vector<1x16x4xbf16> to vector<16x4xbf16>
    %cst_107 = arith.constant dense<0.000000e+00> : vector<32x4xf32>
    %142 = tpu.matmul %121, %141, %cst_107 {dimension_numbers = #tpu.dot_dimension_numbers<[1], [0], [0], [1], [0, 0, 1, 1], [], []>} : vector<32x16xbf16>, vector<16x4xbf16>, vector<32x4xf32> -> vector<32x4xf32>
    %c7_108 = arith.constant 7 : index
    %c0_109 = arith.constant 0 : index
    %c0_110 = arith.constant 0 : index
    %143 = vector.load %arg4[%c7_108, %c0_109, %c0_110] : memref<9x16x4xbf16, #tpu.memory_space<vmem>>, vector<1x16x4xbf16>
    %144 = vector.shape_cast %143 : vector<1x16x4xbf16> to vector<16x4xbf16>
    %cst_111 = arith.constant dense<0.000000e+00> : vector<32x4xf32>
    %145 = tpu.matmul %121, %144, %cst_111 {dimension_numbers = #tpu.dot_dimension_numbers<[1], [0], [0], [1], [0, 0, 1, 1], [], []>} : vector<32x16xbf16>, vector<16x4xbf16>, vector<32x4xf32> -> vector<32x4xf32>
    %c8_112 = arith.constant 8 : index
    %c0_113 = arith.constant 0 : index
    %c0_114 = arith.constant 0 : index
    %146 = vector.load %arg4[%c8_112, %c0_113, %c0_114] : memref<9x16x4xbf16, #tpu.memory_space<vmem>>, vector<1x16x4xbf16>
    %147 = vector.shape_cast %146 : vector<1x16x4xbf16> to vector<16x4xbf16>
    %cst_115 = arith.constant dense<0.000000e+00> : vector<32x4xf32>
    %148 = tpu.matmul %121, %147, %cst_115 {dimension_numbers = #tpu.dot_dimension_numbers<[1], [0], [0], [1], [0, 0, 1, 1], [], []>} : vector<32x16xbf16>, vector<16x4xbf16>, vector<32x4xf32> -> vector<32x4xf32>
    %149 = vector.extract_strided_slice %124 {offsets = [0, 0], sizes = [16, 4], strides = [1, 1]} : vector<32x4xf32> to vector<16x4xf32>
    %150 = vector.extract_strided_slice %127 {offsets = [0, 0], sizes = [16, 4], strides = [1, 1]} : vector<32x4xf32> to vector<16x4xf32>
    %151 = vector.extract_strided_slice %130 {offsets = [0, 0], sizes = [16, 4], strides = [1, 1]} : vector<32x4xf32> to vector<16x4xf32>
    %152 = vector.extract_strided_slice %133 {offsets = [0, 0], sizes = [16, 4], strides = [1, 1]} : vector<32x4xf32> to vector<16x4xf32>
    %153 = vector.extract_strided_slice %136 {offsets = [0, 0], sizes = [16, 4], strides = [1, 1]} : vector<32x4xf32> to vector<16x4xf32>
    %154 = vector.extract_strided_slice %139 {offsets = [0, 0], sizes = [16, 4], strides = [1, 1]} : vector<32x4xf32> to vector<16x4xf32>
    %155 = vector.extract_strided_slice %142 {offsets = [0, 0], sizes = [16, 4], strides = [1, 1]} : vector<32x4xf32> to vector<16x4xf32>
    %156 = vector.extract_strided_slice %145 {offsets = [0, 0], sizes = [16, 4], strides = [1, 1]} : vector<32x4xf32> to vector<16x4xf32>
    %157 = vector.extract_strided_slice %148 {offsets = [0, 0], sizes = [16, 4], strides = [1, 1]} : vector<32x4xf32> to vector<16x4xf32>
    %158 = tpu.concatenate %149, %150, %151, %152, %153, %154, %155, %156, %157 in 0 : vector<16x4xf32>, vector<16x4xf32>, vector<16x4xf32>, vector<16x4xf32>, vector<16x4xf32>, vector<16x4xf32>, vector<16x4xf32>, vector<16x4xf32>, vector<16x4xf32> -> vector<144x4xf32>
    %159 = arith.truncf %158 : vector<144x4xf32> to vector<144x4xbf16>
    %cst_116 = arith.constant dense<0.000000e+00> : vector<32x4xf32>
    %160 = tpu.matmul %119, %159, %cst_116 {dimension_numbers = #tpu.dot_dimension_numbers<[1], [0], [0], [1], [0, 0, 1, 1], [], []>} : vector<32x144xbf16>, vector<144x4xbf16>, vector<32x4xf32> -> vector<32x4xf32>
    %161 = vector.extract_strided_slice %124 {offsets = [16, 0], sizes = [16, 4], strides = [1, 1]} : vector<32x4xf32> to vector<16x4xf32>
    %162 = vector.extract_strided_slice %127 {offsets = [16, 0], sizes = [16, 4], strides = [1, 1]} : vector<32x4xf32> to vector<16x4xf32>
    %163 = vector.extract_strided_slice %130 {offsets = [16, 0], sizes = [16, 4], strides = [1, 1]} : vector<32x4xf32> to vector<16x4xf32>
    %164 = vector.extract_strided_slice %133 {offsets = [16, 0], sizes = [16, 4], strides = [1, 1]} : vector<32x4xf32> to vector<16x4xf32>
    %165 = vector.extract_strided_slice %136 {offsets = [16, 0], sizes = [16, 4], strides = [1, 1]} : vector<32x4xf32> to vector<16x4xf32>
    %166 = vector.extract_strided_slice %139 {offsets = [16, 0], sizes = [16, 4], strides = [1, 1]} : vector<32x4xf32> to vector<16x4xf32>
    %167 = vector.extract_strided_slice %142 {offsets = [16, 0], sizes = [16, 4], strides = [1, 1]} : vector<32x4xf32> to vector<16x4xf32>
    %168 = vector.extract_strided_slice %145 {offsets = [16, 0], sizes = [16, 4], strides = [1, 1]} : vector<32x4xf32> to vector<16x4xf32>
    %169 = vector.extract_strided_slice %148 {offsets = [16, 0], sizes = [16, 4], strides = [1, 1]} : vector<32x4xf32> to vector<16x4xf32>
    %170 = tpu.concatenate %161, %162, %163, %164, %165, %166, %167, %168, %169 in 0 : vector<16x4xf32>, vector<16x4xf32>, vector<16x4xf32>, vector<16x4xf32>, vector<16x4xf32>, vector<16x4xf32>, vector<16x4xf32>, vector<16x4xf32>, vector<16x4xf32> -> vector<144x4xf32>
    %171 = arith.truncf %170 : vector<144x4xf32> to vector<144x4xbf16>
    %cst_117 = arith.constant dense<0.000000e+00> : vector<32x4xf32>
    %172 = tpu.matmul %119, %171, %cst_117 {dimension_numbers = #tpu.dot_dimension_numbers<[1], [0], [0], [1], [0, 0, 1, 1], [], []>} : vector<32x144xbf16>, vector<144x4xbf16>, vector<32x4xf32> -> vector<32x4xf32>
    %173 = tpu.concatenate %160, %172 in 0 : vector<32x4xf32>, vector<32x4xf32> -> vector<64x4xf32>
    %174 = vector.broadcast %120 : vector<64x1xf32> to vector<64x4xf32>
    %175 = arith.addf %173, %174 : vector<64x4xf32>
    %cst_118 = arith.constant 0.000000e+00 : f32
    %176 = vector.broadcast %cst_118 : f32 to vector<64x4xf32>
    %177 = arith.maximumf %175, %176 : vector<64x4xf32>
    %c64 = arith.constant 64 : index
    %c0_119 = arith.constant 0 : index
    %178 = vector.load %arg8[%c64, %c0_119] : memref<128x288xbf16, #tpu.memory_space<vmem>>, vector<16x288xbf16>
    %c112 = arith.constant 112 : index
    %c0_120 = arith.constant 0 : index
    %179 = vector.load %arg9[%c112, %c0_120] : memref<184x1xf32, #tpu.memory_space<vmem>>, vector<32x1xf32>
    %180 = arith.truncf %177 : vector<64x4xf32> to vector<64x4xbf16>
    %c0_121 = arith.constant 0 : index
    %c0_122 = arith.constant 0 : index
    %c0_123 = arith.constant 0 : index
    %181 = vector.load %arg5[%c0_121, %c0_122, %c0_123] : memref<9x4x16xbf16, #tpu.memory_space<vmem>>, vector<1x4x16xbf16>
    %182 = vector.shape_cast %181 : vector<1x4x16xbf16> to vector<4x16xbf16>
    %cst_124 = arith.constant dense<0.000000e+00> : vector<64x16xf32>
    %183 = tpu.matmul %180, %182, %cst_124 {dimension_numbers = #tpu.dot_dimension_numbers<[1], [0], [0], [1], [0, 0, 1, 1], [], []>} : vector<64x4xbf16>, vector<4x16xbf16>, vector<64x16xf32> -> vector<64x16xf32>
    %c1_125 = arith.constant 1 : index
    %c0_126 = arith.constant 0 : index
    %c0_127 = arith.constant 0 : index
    %184 = vector.load %arg5[%c1_125, %c0_126, %c0_127] : memref<9x4x16xbf16, #tpu.memory_space<vmem>>, vector<1x4x16xbf16>
    %185 = vector.shape_cast %184 : vector<1x4x16xbf16> to vector<4x16xbf16>
    %cst_128 = arith.constant dense<0.000000e+00> : vector<64x16xf32>
    %186 = tpu.matmul %180, %185, %cst_128 {dimension_numbers = #tpu.dot_dimension_numbers<[1], [0], [0], [1], [0, 0, 1, 1], [], []>} : vector<64x4xbf16>, vector<4x16xbf16>, vector<64x16xf32> -> vector<64x16xf32>
    %c2_129 = arith.constant 2 : index
    %c0_130 = arith.constant 0 : index
    %c0_131 = arith.constant 0 : index
    %187 = vector.load %arg5[%c2_129, %c0_130, %c0_131] : memref<9x4x16xbf16, #tpu.memory_space<vmem>>, vector<1x4x16xbf16>
    %188 = vector.shape_cast %187 : vector<1x4x16xbf16> to vector<4x16xbf16>
    %cst_132 = arith.constant dense<0.000000e+00> : vector<64x16xf32>
    %189 = tpu.matmul %180, %188, %cst_132 {dimension_numbers = #tpu.dot_dimension_numbers<[1], [0], [0], [1], [0, 0, 1, 1], [], []>} : vector<64x4xbf16>, vector<4x16xbf16>, vector<64x16xf32> -> vector<64x16xf32>
    %c3_133 = arith.constant 3 : index
    %c0_134 = arith.constant 0 : index
    %c0_135 = arith.constant 0 : index
    %190 = vector.load %arg5[%c3_133, %c0_134, %c0_135] : memref<9x4x16xbf16, #tpu.memory_space<vmem>>, vector<1x4x16xbf16>
    %191 = vector.shape_cast %190 : vector<1x4x16xbf16> to vector<4x16xbf16>
    %cst_136 = arith.constant dense<0.000000e+00> : vector<64x16xf32>
    %192 = tpu.matmul %180, %191, %cst_136 {dimension_numbers = #tpu.dot_dimension_numbers<[1], [0], [0], [1], [0, 0, 1, 1], [], []>} : vector<64x4xbf16>, vector<4x16xbf16>, vector<64x16xf32> -> vector<64x16xf32>
    %c4_137 = arith.constant 4 : index
    %c0_138 = arith.constant 0 : index
    %c0_139 = arith.constant 0 : index
    %193 = vector.load %arg5[%c4_137, %c0_138, %c0_139] : memref<9x4x16xbf16, #tpu.memory_space<vmem>>, vector<1x4x16xbf16>
    %194 = vector.shape_cast %193 : vector<1x4x16xbf16> to vector<4x16xbf16>
    %cst_140 = arith.constant dense<0.000000e+00> : vector<64x16xf32>
    %195 = tpu.matmul %180, %194, %cst_140 {dimension_numbers = #tpu.dot_dimension_numbers<[1], [0], [0], [1], [0, 0, 1, 1], [], []>} : vector<64x4xbf16>, vector<4x16xbf16>, vector<64x16xf32> -> vector<64x16xf32>
    %c5_141 = arith.constant 5 : index
    %c0_142 = arith.constant 0 : index
    %c0_143 = arith.constant 0 : index
    %196 = vector.load %arg5[%c5_141, %c0_142, %c0_143] : memref<9x4x16xbf16, #tpu.memory_space<vmem>>, vector<1x4x16xbf16>
    %197 = vector.shape_cast %196 : vector<1x4x16xbf16> to vector<4x16xbf16>
    %cst_144 = arith.constant dense<0.000000e+00> : vector<64x16xf32>
    %198 = tpu.matmul %180, %197, %cst_144 {dimension_numbers = #tpu.dot_dimension_numbers<[1], [0], [0], [1], [0, 0, 1, 1], [], []>} : vector<64x4xbf16>, vector<4x16xbf16>, vector<64x16xf32> -> vector<64x16xf32>
    %c6_145 = arith.constant 6 : index
    %c0_146 = arith.constant 0 : index
    %c0_147 = arith.constant 0 : index
    %199 = vector.load %arg5[%c6_145, %c0_146, %c0_147] : memref<9x4x16xbf16, #tpu.memory_space<vmem>>, vector<1x4x16xbf16>
    %200 = vector.shape_cast %199 : vector<1x4x16xbf16> to vector<4x16xbf16>
    %cst_148 = arith.constant dense<0.000000e+00> : vector<64x16xf32>
    %201 = tpu.matmul %180, %200, %cst_148 {dimension_numbers = #tpu.dot_dimension_numbers<[1], [0], [0], [1], [0, 0, 1, 1], [], []>} : vector<64x4xbf16>, vector<4x16xbf16>, vector<64x16xf32> -> vector<64x16xf32>
    %c7_149 = arith.constant 7 : index
    %c0_150 = arith.constant 0 : index
    %c0_151 = arith.constant 0 : index
    %202 = vector.load %arg5[%c7_149, %c0_150, %c0_151] : memref<9x4x16xbf16, #tpu.memory_space<vmem>>, vector<1x4x16xbf16>
    %203 = vector.shape_cast %202 : vector<1x4x16xbf16> to vector<4x16xbf16>
    %cst_152 = arith.constant dense<0.000000e+00> : vector<64x16xf32>
    %204 = tpu.matmul %180, %203, %cst_152 {dimension_numbers = #tpu.dot_dimension_numbers<[1], [0], [0], [1], [0, 0, 1, 1], [], []>} : vector<64x4xbf16>, vector<4x16xbf16>, vector<64x16xf32> -> vector<64x16xf32>
    %c8_153 = arith.constant 8 : index
    %c0_154 = arith.constant 0 : index
    %c0_155 = arith.constant 0 : index
    %205 = vector.load %arg5[%c8_153, %c0_154, %c0_155] : memref<9x4x16xbf16, #tpu.memory_space<vmem>>, vector<1x4x16xbf16>
    %206 = vector.shape_cast %205 : vector<1x4x16xbf16> to vector<4x16xbf16>
    %cst_156 = arith.constant dense<0.000000e+00> : vector<64x16xf32>
    %207 = tpu.matmul %180, %206, %cst_156 {dimension_numbers = #tpu.dot_dimension_numbers<[1], [0], [0], [1], [0, 0, 1, 1], [], []>} : vector<64x4xbf16>, vector<4x16xbf16>, vector<64x16xf32> -> vector<64x16xf32>
    %208 = vector.extract_strided_slice %183 {offsets = [0, 0], sizes = [32, 16], strides = [1, 1]} : vector<64x16xf32> to vector<32x16xf32>
    %209 = vector.extract_strided_slice %186 {offsets = [0, 0], sizes = [32, 16], strides = [1, 1]} : vector<64x16xf32> to vector<32x16xf32>
    %210 = vector.extract_strided_slice %189 {offsets = [0, 0], sizes = [32, 16], strides = [1, 1]} : vector<64x16xf32> to vector<32x16xf32>
    %211 = vector.extract_strided_slice %192 {offsets = [0, 0], sizes = [32, 16], strides = [1, 1]} : vector<64x16xf32> to vector<32x16xf32>
    %212 = vector.extract_strided_slice %195 {offsets = [0, 0], sizes = [32, 16], strides = [1, 1]} : vector<64x16xf32> to vector<32x16xf32>
    %213 = vector.extract_strided_slice %198 {offsets = [0, 0], sizes = [32, 16], strides = [1, 1]} : vector<64x16xf32> to vector<32x16xf32>
    %214 = vector.extract_strided_slice %201 {offsets = [0, 0], sizes = [32, 16], strides = [1, 1]} : vector<64x16xf32> to vector<32x16xf32>
    %215 = vector.extract_strided_slice %204 {offsets = [0, 0], sizes = [32, 16], strides = [1, 1]} : vector<64x16xf32> to vector<32x16xf32>
    %216 = vector.extract_strided_slice %207 {offsets = [0, 0], sizes = [32, 16], strides = [1, 1]} : vector<64x16xf32> to vector<32x16xf32>
    %217 = tpu.concatenate %208, %209, %210, %211, %212, %213, %214, %215, %216 in 0 : vector<32x16xf32>, vector<32x16xf32>, vector<32x16xf32>, vector<32x16xf32>, vector<32x16xf32>, vector<32x16xf32>, vector<32x16xf32>, vector<32x16xf32>, vector<32x16xf32> -> vector<288x16xf32>
    %218 = arith.truncf %217 : vector<288x16xf32> to vector<288x16xbf16>
    %cst_157 = arith.constant dense<0.000000e+00> : vector<16x16xf32>
    %219 = tpu.matmul %178, %218, %cst_157 {dimension_numbers = #tpu.dot_dimension_numbers<[1], [0], [0], [1], [0, 0, 1, 1], [], []>} : vector<16x288xbf16>, vector<288x16xbf16>, vector<16x16xf32> -> vector<16x16xf32>
    %220 = vector.extract_strided_slice %183 {offsets = [32, 0], sizes = [32, 16], strides = [1, 1]} : vector<64x16xf32> to vector<32x16xf32>
    %221 = vector.extract_strided_slice %186 {offsets = [32, 0], sizes = [32, 16], strides = [1, 1]} : vector<64x16xf32> to vector<32x16xf32>
    %222 = vector.extract_strided_slice %189 {offsets = [32, 0], sizes = [32, 16], strides = [1, 1]} : vector<64x16xf32> to vector<32x16xf32>
    %223 = vector.extract_strided_slice %192 {offsets = [32, 0], sizes = [32, 16], strides = [1, 1]} : vector<64x16xf32> to vector<32x16xf32>
    %224 = vector.extract_strided_slice %195 {offsets = [32, 0], sizes = [32, 16], strides = [1, 1]} : vector<64x16xf32> to vector<32x16xf32>
    %225 = vector.extract_strided_slice %198 {offsets = [32, 0], sizes = [32, 16], strides = [1, 1]} : vector<64x16xf32> to vector<32x16xf32>
    %226 = vector.extract_strided_slice %201 {offsets = [32, 0], sizes = [32, 16], strides = [1, 1]} : vector<64x16xf32> to vector<32x16xf32>
    %227 = vector.extract_strided_slice %204 {offsets = [32, 0], sizes = [32, 16], strides = [1, 1]} : vector<64x16xf32> to vector<32x16xf32>
    %228 = vector.extract_strided_slice %207 {offsets = [32, 0], sizes = [32, 16], strides = [1, 1]} : vector<64x16xf32> to vector<32x16xf32>
    %229 = tpu.concatenate %220, %221, %222, %223, %224, %225, %226, %227, %228 in 0 : vector<32x16xf32>, vector<32x16xf32>, vector<32x16xf32>, vector<32x16xf32>, vector<32x16xf32>, vector<32x16xf32>, vector<32x16xf32>, vector<32x16xf32>, vector<32x16xf32> -> vector<288x16xf32>
    %230 = arith.truncf %229 : vector<288x16xf32> to vector<288x16xbf16>
    %cst_158 = arith.constant dense<0.000000e+00> : vector<16x16xf32>
    %231 = tpu.matmul %178, %230, %cst_158 {dimension_numbers = #tpu.dot_dimension_numbers<[1], [0], [0], [1], [0, 0, 1, 1], [], []>} : vector<16x288xbf16>, vector<288x16xbf16>, vector<16x16xf32> -> vector<16x16xf32>
    %232 = tpu.concatenate %219, %231 in 0 : vector<16x16xf32>, vector<16x16xf32> -> vector<32x16xf32>
    %233 = vector.broadcast %179 : vector<32x1xf32> to vector<32x16xf32>
    %234 = arith.addf %232, %233 : vector<32x16xf32>
    %cst_159 = arith.constant 0.000000e+00 : f32
    %235 = vector.broadcast %cst_159 : f32 to vector<32x16xf32>
    %236 = arith.maximumf %234, %235 : vector<32x16xf32>
    %237 = arith.addf %236, %118 : vector<32x16xf32>
    %c80 = arith.constant 80 : index
    %c0_160 = arith.constant 0 : index
    %238 = vector.load %arg8[%c80, %c0_160] : memref<128x288xbf16, #tpu.memory_space<vmem>>, vector<8x144xbf16>
    %c144 = arith.constant 144 : index
    %c0_161 = arith.constant 0 : index
    %239 = vector.load %arg9[%c144, %c0_161] : memref<184x1xf32, #tpu.memory_space<vmem>>, vector<16x1xf32>
    %240 = arith.truncf %237 : vector<32x16xf32> to vector<32x16xbf16>
    %c0_162 = arith.constant 0 : index
    %c0_163 = arith.constant 0 : index
    %c0_164 = arith.constant 0 : index
    %241 = vector.load %arg6[%c0_162, %c0_163, %c0_164] : memref<9x16x64xbf16, #tpu.memory_space<vmem>>, vector<1x16x64xbf16>
    %242 = vector.shape_cast %241 : vector<1x16x64xbf16> to vector<16x64xbf16>
    %cst_165 = arith.constant dense<0.000000e+00> : vector<32x64xf32>
    %243 = tpu.matmul %240, %242, %cst_165 {dimension_numbers = #tpu.dot_dimension_numbers<[1], [0], [0], [1], [0, 0, 1, 1], [], []>} : vector<32x16xbf16>, vector<16x64xbf16>, vector<32x64xf32> -> vector<32x64xf32>
    %c1_166 = arith.constant 1 : index
    %c0_167 = arith.constant 0 : index
    %c0_168 = arith.constant 0 : index
    %244 = vector.load %arg6[%c1_166, %c0_167, %c0_168] : memref<9x16x64xbf16, #tpu.memory_space<vmem>>, vector<1x16x64xbf16>
    %245 = vector.shape_cast %244 : vector<1x16x64xbf16> to vector<16x64xbf16>
    %cst_169 = arith.constant dense<0.000000e+00> : vector<32x64xf32>
    %246 = tpu.matmul %240, %245, %cst_169 {dimension_numbers = #tpu.dot_dimension_numbers<[1], [0], [0], [1], [0, 0, 1, 1], [], []>} : vector<32x16xbf16>, vector<16x64xbf16>, vector<32x64xf32> -> vector<32x64xf32>
    %c2_170 = arith.constant 2 : index
    %c0_171 = arith.constant 0 : index
    %c0_172 = arith.constant 0 : index
    %247 = vector.load %arg6[%c2_170, %c0_171, %c0_172] : memref<9x16x64xbf16, #tpu.memory_space<vmem>>, vector<1x16x64xbf16>
    %248 = vector.shape_cast %247 : vector<1x16x64xbf16> to vector<16x64xbf16>
    %cst_173 = arith.constant dense<0.000000e+00> : vector<32x64xf32>
    %249 = tpu.matmul %240, %248, %cst_173 {dimension_numbers = #tpu.dot_dimension_numbers<[1], [0], [0], [1], [0, 0, 1, 1], [], []>} : vector<32x16xbf16>, vector<16x64xbf16>, vector<32x64xf32> -> vector<32x64xf32>
    %c3_174 = arith.constant 3 : index
    %c0_175 = arith.constant 0 : index
    %c0_176 = arith.constant 0 : index
    %250 = vector.load %arg6[%c3_174, %c0_175, %c0_176] : memref<9x16x64xbf16, #tpu.memory_space<vmem>>, vector<1x16x64xbf16>
    %251 = vector.shape_cast %250 : vector<1x16x64xbf16> to vector<16x64xbf16>
    %cst_177 = arith.constant dense<0.000000e+00> : vector<32x64xf32>
    %252 = tpu.matmul %240, %251, %cst_177 {dimension_numbers = #tpu.dot_dimension_numbers<[1], [0], [0], [1], [0, 0, 1, 1], [], []>} : vector<32x16xbf16>, vector<16x64xbf16>, vector<32x64xf32> -> vector<32x64xf32>
    %c4_178 = arith.constant 4 : index
    %c0_179 = arith.constant 0 : index
    %c0_180 = arith.constant 0 : index
    %253 = vector.load %arg6[%c4_178, %c0_179, %c0_180] : memref<9x16x64xbf16, #tpu.memory_space<vmem>>, vector<1x16x64xbf16>
    %254 = vector.shape_cast %253 : vector<1x16x64xbf16> to vector<16x64xbf16>
    %cst_181 = arith.constant dense<0.000000e+00> : vector<32x64xf32>
    %255 = tpu.matmul %240, %254, %cst_181 {dimension_numbers = #tpu.dot_dimension_numbers<[1], [0], [0], [1], [0, 0, 1, 1], [], []>} : vector<32x16xbf16>, vector<16x64xbf16>, vector<32x64xf32> -> vector<32x64xf32>
    %c5_182 = arith.constant 5 : index
    %c0_183 = arith.constant 0 : index
    %c0_184 = arith.constant 0 : index
    %256 = vector.load %arg6[%c5_182, %c0_183, %c0_184] : memref<9x16x64xbf16, #tpu.memory_space<vmem>>, vector<1x16x64xbf16>
    %257 = vector.shape_cast %256 : vector<1x16x64xbf16> to vector<16x64xbf16>
    %cst_185 = arith.constant dense<0.000000e+00> : vector<32x64xf32>
    %258 = tpu.matmul %240, %257, %cst_185 {dimension_numbers = #tpu.dot_dimension_numbers<[1], [0], [0], [1], [0, 0, 1, 1], [], []>} : vector<32x16xbf16>, vector<16x64xbf16>, vector<32x64xf32> -> vector<32x64xf32>
    %c6_186 = arith.constant 6 : index
    %c0_187 = arith.constant 0 : index
    %c0_188 = arith.constant 0 : index
    %259 = vector.load %arg6[%c6_186, %c0_187, %c0_188] : memref<9x16x64xbf16, #tpu.memory_space<vmem>>, vector<1x16x64xbf16>
    %260 = vector.shape_cast %259 : vector<1x16x64xbf16> to vector<16x64xbf16>
    %cst_189 = arith.constant dense<0.000000e+00> : vector<32x64xf32>
    %261 = tpu.matmul %240, %260, %cst_189 {dimension_numbers = #tpu.dot_dimension_numbers<[1], [0], [0], [1], [0, 0, 1, 1], [], []>} : vector<32x16xbf16>, vector<16x64xbf16>, vector<32x64xf32> -> vector<32x64xf32>
    %c7_190 = arith.constant 7 : index
    %c0_191 = arith.constant 0 : index
    %c0_192 = arith.constant 0 : index
    %262 = vector.load %arg6[%c7_190, %c0_191, %c0_192] : memref<9x16x64xbf16, #tpu.memory_space<vmem>>, vector<1x16x64xbf16>
    %263 = vector.shape_cast %262 : vector<1x16x64xbf16> to vector<16x64xbf16>
    %cst_193 = arith.constant dense<0.000000e+00> : vector<32x64xf32>
    %264 = tpu.matmul %240, %263, %cst_193 {dimension_numbers = #tpu.dot_dimension_numbers<[1], [0], [0], [1], [0, 0, 1, 1], [], []>} : vector<32x16xbf16>, vector<16x64xbf16>, vector<32x64xf32> -> vector<32x64xf32>
    %c8_194 = arith.constant 8 : index
    %c0_195 = arith.constant 0 : index
    %c0_196 = arith.constant 0 : index
    %265 = vector.load %arg6[%c8_194, %c0_195, %c0_196] : memref<9x16x64xbf16, #tpu.memory_space<vmem>>, vector<1x16x64xbf16>
    %266 = vector.shape_cast %265 : vector<1x16x64xbf16> to vector<16x64xbf16>
    %cst_197 = arith.constant dense<0.000000e+00> : vector<32x64xf32>
    %267 = tpu.matmul %240, %266, %cst_197 {dimension_numbers = #tpu.dot_dimension_numbers<[1], [0], [0], [1], [0, 0, 1, 1], [], []>} : vector<32x16xbf16>, vector<16x64xbf16>, vector<32x64xf32> -> vector<32x64xf32>
    %268 = vector.extract_strided_slice %243 {offsets = [0, 0], sizes = [16, 64], strides = [1, 1]} : vector<32x64xf32> to vector<16x64xf32>
    %269 = vector.extract_strided_slice %246 {offsets = [0, 0], sizes = [16, 64], strides = [1, 1]} : vector<32x64xf32> to vector<16x64xf32>
    %270 = vector.extract_strided_slice %249 {offsets = [0, 0], sizes = [16, 64], strides = [1, 1]} : vector<32x64xf32> to vector<16x64xf32>
    %271 = vector.extract_strided_slice %252 {offsets = [0, 0], sizes = [16, 64], strides = [1, 1]} : vector<32x64xf32> to vector<16x64xf32>
    %272 = vector.extract_strided_slice %255 {offsets = [0, 0], sizes = [16, 64], strides = [1, 1]} : vector<32x64xf32> to vector<16x64xf32>
    %273 = vector.extract_strided_slice %258 {offsets = [0, 0], sizes = [16, 64], strides = [1, 1]} : vector<32x64xf32> to vector<16x64xf32>
    %274 = vector.extract_strided_slice %261 {offsets = [0, 0], sizes = [16, 64], strides = [1, 1]} : vector<32x64xf32> to vector<16x64xf32>
    %275 = vector.extract_strided_slice %264 {offsets = [0, 0], sizes = [16, 64], strides = [1, 1]} : vector<32x64xf32> to vector<16x64xf32>
    %276 = vector.extract_strided_slice %267 {offsets = [0, 0], sizes = [16, 64], strides = [1, 1]} : vector<32x64xf32> to vector<16x64xf32>
    %277 = tpu.concatenate %268, %269, %270, %271, %272, %273, %274, %275, %276 in 0 : vector<16x64xf32>, vector<16x64xf32>, vector<16x64xf32>, vector<16x64xf32>, vector<16x64xf32>, vector<16x64xf32>, vector<16x64xf32>, vector<16x64xf32>, vector<16x64xf32> -> vector<144x64xf32>
    %278 = arith.truncf %277 : vector<144x64xf32> to vector<144x64xbf16>
    %cst_198 = arith.constant dense<0.000000e+00> : vector<8x64xf32>
    %279 = tpu.matmul %238, %278, %cst_198 {dimension_numbers = #tpu.dot_dimension_numbers<[1], [0], [0], [1], [0, 0, 1, 1], [], []>} : vector<8x144xbf16>, vector<144x64xbf16>, vector<8x64xf32> -> vector<8x64xf32>
    %280 = vector.extract_strided_slice %243 {offsets = [16, 0], sizes = [16, 64], strides = [1, 1]} : vector<32x64xf32> to vector<16x64xf32>
    %281 = vector.extract_strided_slice %246 {offsets = [16, 0], sizes = [16, 64], strides = [1, 1]} : vector<32x64xf32> to vector<16x64xf32>
    %282 = vector.extract_strided_slice %249 {offsets = [16, 0], sizes = [16, 64], strides = [1, 1]} : vector<32x64xf32> to vector<16x64xf32>
    %283 = vector.extract_strided_slice %252 {offsets = [16, 0], sizes = [16, 64], strides = [1, 1]} : vector<32x64xf32> to vector<16x64xf32>
    %284 = vector.extract_strided_slice %255 {offsets = [16, 0], sizes = [16, 64], strides = [1, 1]} : vector<32x64xf32> to vector<16x64xf32>
    %285 = vector.extract_strided_slice %258 {offsets = [16, 0], sizes = [16, 64], strides = [1, 1]} : vector<32x64xf32> to vector<16x64xf32>
    %286 = vector.extract_strided_slice %261 {offsets = [16, 0], sizes = [16, 64], strides = [1, 1]} : vector<32x64xf32> to vector<16x64xf32>
    %287 = vector.extract_strided_slice %264 {offsets = [16, 0], sizes = [16, 64], strides = [1, 1]} : vector<32x64xf32> to vector<16x64xf32>
    %288 = vector.extract_strided_slice %267 {offsets = [16, 0], sizes = [16, 64], strides = [1, 1]} : vector<32x64xf32> to vector<16x64xf32>
    %289 = tpu.concatenate %280, %281, %282, %283, %284, %285, %286, %287, %288 in 0 : vector<16x64xf32>, vector<16x64xf32>, vector<16x64xf32>, vector<16x64xf32>, vector<16x64xf32>, vector<16x64xf32>, vector<16x64xf32>, vector<16x64xf32>, vector<16x64xf32> -> vector<144x64xf32>
    %290 = arith.truncf %289 : vector<144x64xf32> to vector<144x64xbf16>
    %cst_199 = arith.constant dense<0.000000e+00> : vector<8x64xf32>
    %291 = tpu.matmul %238, %290, %cst_199 {dimension_numbers = #tpu.dot_dimension_numbers<[1], [0], [0], [1], [0, 0, 1, 1], [], []>} : vector<8x144xbf16>, vector<144x64xbf16>, vector<8x64xf32> -> vector<8x64xf32>
    %292 = tpu.concatenate %279, %291 in 0 : vector<8x64xf32>, vector<8x64xf32> -> vector<16x64xf32>
    %293 = vector.broadcast %239 : vector<16x1xf32> to vector<16x64xf32>
    %294 = arith.addf %292, %293 : vector<16x64xf32>
    %cst_200 = arith.constant 0.000000e+00 : f32
    %295 = vector.broadcast %cst_200 : f32 to vector<16x64xf32>
    %296 = arith.maximumf %294, %295 : vector<16x64xf32>
    %297 = arith.addf %296, %59 : vector<16x64xf32>
    %c96 = arith.constant 96 : index
    %c0_201 = arith.constant 0 : index
    %298 = vector.load %arg8[%c96, %c0_201] : memref<128x288xbf16, #tpu.memory_space<vmem>>, vector<8x72xbf16>
    %c160 = arith.constant 160 : index
    %c0_202 = arith.constant 0 : index
    %299 = vector.load %arg9[%c160, %c0_202] : memref<184x1xf32, #tpu.memory_space<vmem>>, vector<16x1xf32>
    %300 = arith.truncf %297 : vector<16x64xf32> to vector<16x64xbf16>
    %c0_203 = arith.constant 0 : index
    %c0_204 = arith.constant 0 : index
    %c0_205 = arith.constant 0 : index
    %301 = vector.load %arg7[%c0_203, %c0_204, %c0_205] : memref<9x64x256xbf16, #tpu.memory_space<vmem>>, vector<1x64x256xbf16>
    %302 = vector.shape_cast %301 : vector<1x64x256xbf16> to vector<64x256xbf16>
    %cst_206 = arith.constant dense<0.000000e+00> : vector<16x256xf32>
    %303 = tpu.matmul %300, %302, %cst_206 {dimension_numbers = #tpu.dot_dimension_numbers<[1], [0], [0], [1], [0, 0, 1, 1], [], []>} : vector<16x64xbf16>, vector<64x256xbf16>, vector<16x256xf32> -> vector<16x256xf32>
    %c1_207 = arith.constant 1 : index
    %c0_208 = arith.constant 0 : index
    %c0_209 = arith.constant 0 : index
    %304 = vector.load %arg7[%c1_207, %c0_208, %c0_209] : memref<9x64x256xbf16, #tpu.memory_space<vmem>>, vector<1x64x256xbf16>
    %305 = vector.shape_cast %304 : vector<1x64x256xbf16> to vector<64x256xbf16>
    %cst_210 = arith.constant dense<0.000000e+00> : vector<16x256xf32>
    %306 = tpu.matmul %300, %305, %cst_210 {dimension_numbers = #tpu.dot_dimension_numbers<[1], [0], [0], [1], [0, 0, 1, 1], [], []>} : vector<16x64xbf16>, vector<64x256xbf16>, vector<16x256xf32> -> vector<16x256xf32>
    %c2_211 = arith.constant 2 : index
    %c0_212 = arith.constant 0 : index
    %c0_213 = arith.constant 0 : index
    %307 = vector.load %arg7[%c2_211, %c0_212, %c0_213] : memref<9x64x256xbf16, #tpu.memory_space<vmem>>, vector<1x64x256xbf16>
    %308 = vector.shape_cast %307 : vector<1x64x256xbf16> to vector<64x256xbf16>
    %cst_214 = arith.constant dense<0.000000e+00> : vector<16x256xf32>
    %309 = tpu.matmul %300, %308, %cst_214 {dimension_numbers = #tpu.dot_dimension_numbers<[1], [0], [0], [1], [0, 0, 1, 1], [], []>} : vector<16x64xbf16>, vector<64x256xbf16>, vector<16x256xf32> -> vector<16x256xf32>
    %c3_215 = arith.constant 3 : index
    %c0_216 = arith.constant 0 : index
    %c0_217 = arith.constant 0 : index
    %310 = vector.load %arg7[%c3_215, %c0_216, %c0_217] : memref<9x64x256xbf16, #tpu.memory_space<vmem>>, vector<1x64x256xbf16>
    %311 = vector.shape_cast %310 : vector<1x64x256xbf16> to vector<64x256xbf16>
    %cst_218 = arith.constant dense<0.000000e+00> : vector<16x256xf32>
    %312 = tpu.matmul %300, %311, %cst_218 {dimension_numbers = #tpu.dot_dimension_numbers<[1], [0], [0], [1], [0, 0, 1, 1], [], []>} : vector<16x64xbf16>, vector<64x256xbf16>, vector<16x256xf32> -> vector<16x256xf32>
    %c4_219 = arith.constant 4 : index
    %c0_220 = arith.constant 0 : index
    %c0_221 = arith.constant 0 : index
    %313 = vector.load %arg7[%c4_219, %c0_220, %c0_221] : memref<9x64x256xbf16, #tpu.memory_space<vmem>>, vector<1x64x256xbf16>
    %314 = vector.shape_cast %313 : vector<1x64x256xbf16> to vector<64x256xbf16>
    %cst_222 = arith.constant dense<0.000000e+00> : vector<16x256xf32>
    %315 = tpu.matmul %300, %314, %cst_222 {dimension_numbers = #tpu.dot_dimension_numbers<[1], [0], [0], [1], [0, 0, 1, 1], [], []>} : vector<16x64xbf16>, vector<64x256xbf16>, vector<16x256xf32> -> vector<16x256xf32>
    %c5_223 = arith.constant 5 : index
    %c0_224 = arith.constant 0 : index
    %c0_225 = arith.constant 0 : index
    %316 = vector.load %arg7[%c5_223, %c0_224, %c0_225] : memref<9x64x256xbf16, #tpu.memory_space<vmem>>, vector<1x64x256xbf16>
    %317 = vector.shape_cast %316 : vector<1x64x256xbf16> to vector<64x256xbf16>
    %cst_226 = arith.constant dense<0.000000e+00> : vector<16x256xf32>
    %318 = tpu.matmul %300, %317, %cst_226 {dimension_numbers = #tpu.dot_dimension_numbers<[1], [0], [0], [1], [0, 0, 1, 1], [], []>} : vector<16x64xbf16>, vector<64x256xbf16>, vector<16x256xf32> -> vector<16x256xf32>
    %c6_227 = arith.constant 6 : index
    %c0_228 = arith.constant 0 : index
    %c0_229 = arith.constant 0 : index
    %319 = vector.load %arg7[%c6_227, %c0_228, %c0_229] : memref<9x64x256xbf16, #tpu.memory_space<vmem>>, vector<1x64x256xbf16>
    %320 = vector.shape_cast %319 : vector<1x64x256xbf16> to vector<64x256xbf16>
    %cst_230 = arith.constant dense<0.000000e+00> : vector<16x256xf32>
    %321 = tpu.matmul %300, %320, %cst_230 {dimension_numbers = #tpu.dot_dimension_numbers<[1], [0], [0], [1], [0, 0, 1, 1], [], []>} : vector<16x64xbf16>, vector<64x256xbf16>, vector<16x256xf32> -> vector<16x256xf32>
    %c7_231 = arith.constant 7 : index
    %c0_232 = arith.constant 0 : index
    %c0_233 = arith.constant 0 : index
    %322 = vector.load %arg7[%c7_231, %c0_232, %c0_233] : memref<9x64x256xbf16, #tpu.memory_space<vmem>>, vector<1x64x256xbf16>
    %323 = vector.shape_cast %322 : vector<1x64x256xbf16> to vector<64x256xbf16>
    %cst_234 = arith.constant dense<0.000000e+00> : vector<16x256xf32>
    %324 = tpu.matmul %300, %323, %cst_234 {dimension_numbers = #tpu.dot_dimension_numbers<[1], [0], [0], [1], [0, 0, 1, 1], [], []>} : vector<16x64xbf16>, vector<64x256xbf16>, vector<16x256xf32> -> vector<16x256xf32>
    %c8_235 = arith.constant 8 : index
    %c0_236 = arith.constant 0 : index
    %c0_237 = arith.constant 0 : index
    %325 = vector.load %arg7[%c8_235, %c0_236, %c0_237] : memref<9x64x256xbf16, #tpu.memory_space<vmem>>, vector<1x64x256xbf16>
    %326 = vector.shape_cast %325 : vector<1x64x256xbf16> to vector<64x256xbf16>
    %cst_238 = arith.constant dense<0.000000e+00> : vector<16x256xf32>
    %327 = tpu.matmul %300, %326, %cst_238 {dimension_numbers = #tpu.dot_dimension_numbers<[1], [0], [0], [1], [0, 0, 1, 1], [], []>} : vector<16x64xbf16>, vector<64x256xbf16>, vector<16x256xf32> -> vector<16x256xf32>
    %328 = vector.extract_strided_slice %303 {offsets = [0, 0], sizes = [8, 256], strides = [1, 1]} : vector<16x256xf32> to vector<8x256xf32>
    %329 = vector.extract_strided_slice %306 {offsets = [0, 0], sizes = [8, 256], strides = [1, 1]} : vector<16x256xf32> to vector<8x256xf32>
    %330 = vector.extract_strided_slice %309 {offsets = [0, 0], sizes = [8, 256], strides = [1, 1]} : vector<16x256xf32> to vector<8x256xf32>
    %331 = vector.extract_strided_slice %312 {offsets = [0, 0], sizes = [8, 256], strides = [1, 1]} : vector<16x256xf32> to vector<8x256xf32>
    %332 = vector.extract_strided_slice %315 {offsets = [0, 0], sizes = [8, 256], strides = [1, 1]} : vector<16x256xf32> to vector<8x256xf32>
    %333 = vector.extract_strided_slice %318 {offsets = [0, 0], sizes = [8, 256], strides = [1, 1]} : vector<16x256xf32> to vector<8x256xf32>
    %334 = vector.extract_strided_slice %321 {offsets = [0, 0], sizes = [8, 256], strides = [1, 1]} : vector<16x256xf32> to vector<8x256xf32>
    %335 = vector.extract_strided_slice %324 {offsets = [0, 0], sizes = [8, 256], strides = [1, 1]} : vector<16x256xf32> to vector<8x256xf32>
    %336 = vector.extract_strided_slice %327 {offsets = [0, 0], sizes = [8, 256], strides = [1, 1]} : vector<16x256xf32> to vector<8x256xf32>
    %337 = tpu.concatenate %328, %329, %330, %331, %332, %333, %334, %335, %336 in 0 : vector<8x256xf32>, vector<8x256xf32>, vector<8x256xf32>, vector<8x256xf32>, vector<8x256xf32>, vector<8x256xf32>, vector<8x256xf32>, vector<8x256xf32>, vector<8x256xf32> -> vector<72x256xf32>
    %338 = arith.truncf %337 : vector<72x256xf32> to vector<72x256xbf16>
    %cst_239 = arith.constant dense<0.000000e+00> : vector<8x256xf32>
    %339 = tpu.matmul %298, %338, %cst_239 {dimension_numbers = #tpu.dot_dimension_numbers<[1], [0], [0], [1], [0, 0, 1, 1], [], []>} : vector<8x72xbf16>, vector<72x256xbf16>, vector<8x256xf32> -> vector<8x256xf32>
    %340 = vector.extract_strided_slice %303 {offsets = [8, 0], sizes = [8, 256], strides = [1, 1]} : vector<16x256xf32> to vector<8x256xf32>
    %341 = vector.extract_strided_slice %306 {offsets = [8, 0], sizes = [8, 256], strides = [1, 1]} : vector<16x256xf32> to vector<8x256xf32>
    %342 = vector.extract_strided_slice %309 {offsets = [8, 0], sizes = [8, 256], strides = [1, 1]} : vector<16x256xf32> to vector<8x256xf32>
    %343 = vector.extract_strided_slice %312 {offsets = [8, 0], sizes = [8, 256], strides = [1, 1]} : vector<16x256xf32> to vector<8x256xf32>
    %344 = vector.extract_strided_slice %315 {offsets = [8, 0], sizes = [8, 256], strides = [1, 1]} : vector<16x256xf32> to vector<8x256xf32>
    %345 = vector.extract_strided_slice %318 {offsets = [8, 0], sizes = [8, 256], strides = [1, 1]} : vector<16x256xf32> to vector<8x256xf32>
    %346 = vector.extract_strided_slice %321 {offsets = [8, 0], sizes = [8, 256], strides = [1, 1]} : vector<16x256xf32> to vector<8x256xf32>
    %347 = vector.extract_strided_slice %324 {offsets = [8, 0], sizes = [8, 256], strides = [1, 1]} : vector<16x256xf32> to vector<8x256xf32>
    %348 = vector.extract_strided_slice %327 {offsets = [8, 0], sizes = [8, 256], strides = [1, 1]} : vector<16x256xf32> to vector<8x256xf32>
    %349 = tpu.concatenate %340, %341, %342, %343, %344, %345, %346, %347, %348 in 0 : vector<8x256xf32>, vector<8x256xf32>, vector<8x256xf32>, vector<8x256xf32>, vector<8x256xf32>, vector<8x256xf32>, vector<8x256xf32>, vector<8x256xf32>, vector<8x256xf32> -> vector<72x256xf32>
    %350 = arith.truncf %349 : vector<72x256xf32> to vector<72x256xbf16>
    %cst_240 = arith.constant dense<0.000000e+00> : vector<8x256xf32>
    %351 = tpu.matmul %298, %350, %cst_240 {dimension_numbers = #tpu.dot_dimension_numbers<[1], [0], [0], [1], [0, 0, 1, 1], [], []>} : vector<8x72xbf16>, vector<72x256xbf16>, vector<8x256xf32> -> vector<8x256xf32>
    %352 = tpu.concatenate %339, %351 in 0 : vector<8x256xf32>, vector<8x256xf32> -> vector<16x256xf32>
    %353 = vector.broadcast %299 : vector<16x1xf32> to vector<16x256xf32>
    %354 = arith.addf %352, %353 : vector<16x256xf32>
    %cst_241 = arith.constant 0.000000e+00 : f32
    %355 = vector.broadcast %cst_241 : f32 to vector<16x256xf32>
    %356 = arith.maximumf %354, %355 : vector<16x256xf32>
    %c112_242 = arith.constant 112 : index
    %c0_243 = arith.constant 0 : index
    %357 = vector.load %arg8[%c112_242, %c0_243] : memref<128x288xbf16, #tpu.memory_space<vmem>>, vector<2x4xbf16>
    %358 = arith.extf %357 : vector<2x4xbf16> to vector<2x4xf32>
    %c176 = arith.constant 176 : index
    %c0_244 = arith.constant 0 : index
    %359 = vector.load %arg9[%c176, %c0_244] : memref<184x1xf32, #tpu.memory_space<vmem>>, vector<2x1xf32>
    %360 = vector.extract_strided_slice %356 {offsets = [0, 0], sizes = [4, 256], strides = [1, 1]} : vector<16x256xf32> to vector<4x256xf32>
    %361 = vector.extract_strided_slice %358 {offsets = [0, 0], sizes = [2, 1], strides = [1, 1]} : vector<2x4xf32> to vector<2x1xf32>
    %362 = vector.extract_strided_slice %360 {offsets = [0, 0], sizes = [1, 256], strides = [1, 1]} : vector<4x256xf32> to vector<1x256xf32>
    %363 = vector.broadcast %361 : vector<2x1xf32> to vector<2x256xf32>
    %364 = vector.broadcast %362 : vector<1x256xf32> to vector<2x256xf32>
    %365 = arith.mulf %363, %364 : vector<2x256xf32>
    %366 = vector.extract_strided_slice %358 {offsets = [0, 1], sizes = [2, 1], strides = [1, 1]} : vector<2x4xf32> to vector<2x1xf32>
    %367 = vector.extract_strided_slice %360 {offsets = [1, 0], sizes = [1, 256], strides = [1, 1]} : vector<4x256xf32> to vector<1x256xf32>
    %368 = vector.broadcast %366 : vector<2x1xf32> to vector<2x256xf32>
    %369 = vector.broadcast %367 : vector<1x256xf32> to vector<2x256xf32>
    %370 = arith.mulf %368, %369 : vector<2x256xf32>
    %371 = arith.addf %365, %370 : vector<2x256xf32>
    %372 = vector.extract_strided_slice %358 {offsets = [0, 2], sizes = [2, 1], strides = [1, 1]} : vector<2x4xf32> to vector<2x1xf32>
    %373 = vector.extract_strided_slice %360 {offsets = [2, 0], sizes = [1, 256], strides = [1, 1]} : vector<4x256xf32> to vector<1x256xf32>
    %374 = vector.broadcast %372 : vector<2x1xf32> to vector<2x256xf32>
    %375 = vector.broadcast %373 : vector<1x256xf32> to vector<2x256xf32>
    %376 = arith.mulf %374, %375 : vector<2x256xf32>
    %377 = arith.addf %371, %376 : vector<2x256xf32>
    %378 = vector.extract_strided_slice %358 {offsets = [0, 3], sizes = [2, 1], strides = [1, 1]} : vector<2x4xf32> to vector<2x1xf32>
    %379 = vector.extract_strided_slice %360 {offsets = [3, 0], sizes = [1, 256], strides = [1, 1]} : vector<4x256xf32> to vector<1x256xf32>
    %380 = vector.broadcast %378 : vector<2x1xf32> to vector<2x256xf32>
    %381 = vector.broadcast %379 : vector<1x256xf32> to vector<2x256xf32>
    %382 = arith.mulf %380, %381 : vector<2x256xf32>
    %383 = arith.addf %377, %382 : vector<2x256xf32>
    %384 = vector.broadcast %359 : vector<2x1xf32> to vector<2x256xf32>
    %385 = arith.addf %383, %384 : vector<2x256xf32>
    %c0_245 = arith.constant 0 : index
    %c0_246 = arith.constant 0 : index
    %c0_247 = arith.constant 0 : index
    %386 = vector.load %arg10[%c0_245, %c0_246, %c0_247] : memref<1x16x256xf32, #tpu.memory_space<vmem>>, vector<1x2x256xf32>
    %387 = vector.shape_cast %386 : vector<1x2x256xf32> to vector<2x256xf32>
    %388 = vector.shape_cast %385 : vector<2x256xf32> to vector<1x2x256xf32>
    tpu.vector_store %arg10[%c0_245, %c0_246, %c0_247], %388 {strides = array<i32>} : memref<1x16x256xf32, #tpu.memory_space<vmem>>, vector<1x2x256xf32>,
    %389 = vector.extract_strided_slice %356 {offsets = [8, 0], sizes = [4, 256], strides = [1, 1]} : vector<16x256xf32> to vector<4x256xf32>
    %390 = vector.extract_strided_slice %358 {offsets = [0, 0], sizes = [2, 1], strides = [1, 1]} : vector<2x4xf32> to vector<2x1xf32>
    %391 = vector.extract_strided_slice %389 {offsets = [0, 0], sizes = [1, 256], strides = [1, 1]} : vector<4x256xf32> to vector<1x256xf32>
    %392 = vector.broadcast %390 : vector<2x1xf32> to vector<2x256xf32>
    %393 = vector.broadcast %391 : vector<1x256xf32> to vector<2x256xf32>
    %394 = arith.mulf %392, %393 : vector<2x256xf32>
    %395 = vector.extract_strided_slice %358 {offsets = [0, 1], sizes = [2, 1], strides = [1, 1]} : vector<2x4xf32> to vector<2x1xf32>
    %396 = vector.extract_strided_slice %389 {offsets = [1, 0], sizes = [1, 256], strides = [1, 1]} : vector<4x256xf32> to vector<1x256xf32>
    %397 = vector.broadcast %395 : vector<2x1xf32> to vector<2x256xf32>
    %398 = vector.broadcast %396 : vector<1x256xf32> to vector<2x256xf32>
    %399 = arith.mulf %397, %398 : vector<2x256xf32>
    %400 = arith.addf %394, %399 : vector<2x256xf32>
    %401 = vector.extract_strided_slice %358 {offsets = [0, 2], sizes = [2, 1], strides = [1, 1]} : vector<2x4xf32> to vector<2x1xf32>
    %402 = vector.extract_strided_slice %389 {offsets = [2, 0], sizes = [1, 256], strides = [1, 1]} : vector<4x256xf32> to vector<1x256xf32>
    %403 = vector.broadcast %401 : vector<2x1xf32> to vector<2x256xf32>
    %404 = vector.broadcast %402 : vector<1x256xf32> to vector<2x256xf32>
    %405 = arith.mulf %403, %404 : vector<2x256xf32>
    %406 = arith.addf %400, %405 : vector<2x256xf32>
    %407 = vector.extract_strided_slice %358 {offsets = [0, 3], sizes = [2, 1], strides = [1, 1]} : vector<2x4xf32> to vector<2x1xf32>
    %408 = vector.extract_strided_slice %389 {offsets = [3, 0], sizes = [1, 256], strides = [1, 1]} : vector<4x256xf32> to vector<1x256xf32>
    %409 = vector.broadcast %407 : vector<2x1xf32> to vector<2x256xf32>
    %410 = vector.broadcast %408 : vector<1x256xf32> to vector<2x256xf32>
    %411 = arith.mulf %409, %410 : vector<2x256xf32>
    %412 = arith.addf %406, %411 : vector<2x256xf32>
    %413 = vector.broadcast %359 : vector<2x1xf32> to vector<2x256xf32>
    %414 = arith.addf %412, %413 : vector<2x256xf32>
    %c0_248 = arith.constant 0 : index
    %c8_249 = arith.constant 8 : index
    %c0_250 = arith.constant 0 : index
    %415 = vector.load %arg10[%c0_248, %c8_249, %c0_250] : memref<1x16x256xf32, #tpu.memory_space<vmem>>, vector<1x2x256xf32>
    %416 = vector.shape_cast %415 : vector<1x2x256xf32> to vector<2x256xf32>
    %417 = vector.shape_cast %414 : vector<2x256xf32> to vector<1x2x256xf32>
    tpu.vector_store %arg10[%c0_248, %c8_249, %c0_250], %417 {strides = array<i32>} : memref<1x16x256xf32, #tpu.memory_space<vmem>>, vector<1x2x256xf32>,
    return
  }
  func.func @transform_0(%arg0: i32) -> (i32, i32, i32) {
    %c0_i32 = arith.constant 0 : i32
    %c0_i32_0 = arith.constant 0 : i32
    %c0_i32_1 = arith.constant 0 : i32
    return %arg0, %c0_i32, %c0_i32_0 : i32, i32, i32
  }
  func.func @transform_1(%arg0: i32) -> (i32, i32, i32) {
    %c0_i32 = arith.constant 0 : i32
    %c0_i32_0 = arith.constant 0 : i32
    %c0_i32_1 = arith.constant 0 : i32
    %c0_i32_2 = arith.constant 0 : i32
    return %c0_i32, %c0_i32_0, %c0_i32_1 : i32, i32, i32
  }
  func.func @transform_2(%arg0: i32) -> (i32, i32, i32) {
    %c0_i32 = arith.constant 0 : i32
    %c0_i32_0 = arith.constant 0 : i32
    %c0_i32_1 = arith.constant 0 : i32
    %c0_i32_2 = arith.constant 0 : i32
    return %c0_i32, %c0_i32_0, %c0_i32_1 : i32, i32, i32
  }
  func.func @transform_3(%arg0: i32) -> (i32, i32, i32) {
    %c0_i32 = arith.constant 0 : i32
    %c0_i32_0 = arith.constant 0 : i32
    %c0_i32_1 = arith.constant 0 : i32
    %c0_i32_2 = arith.constant 0 : i32
    return %c0_i32, %c0_i32_0, %c0_i32_1 : i32, i32, i32
  }
  func.func @transform_4(%arg0: i32) -> (i32, i32, i32) {
    %c0_i32 = arith.constant 0 : i32
    %c0_i32_0 = arith.constant 0 : i32
    %c0_i32_1 = arith.constant 0 : i32
    %c0_i32_2 = arith.constant 0 : i32
    return %c0_i32, %c0_i32_0, %c0_i32_1 : i32, i32, i32
  }
  func.func @transform_5(%arg0: i32) -> (i32, i32, i32) {
    %c0_i32 = arith.constant 0 : i32
    %c0_i32_0 = arith.constant 0 : i32
    %c0_i32_1 = arith.constant 0 : i32
    %c0_i32_2 = arith.constant 0 : i32
    return %c0_i32, %c0_i32_0, %c0_i32_1 : i32, i32, i32
  }
  func.func @transform_6(%arg0: i32) -> (i32, i32, i32) {
    %c0_i32 = arith.constant 0 : i32
    %c0_i32_0 = arith.constant 0 : i32
    %c0_i32_1 = arith.constant 0 : i32
    %c0_i32_2 = arith.constant 0 : i32
    return %c0_i32, %c0_i32_0, %c0_i32_1 : i32, i32, i32
  }
  func.func @transform_7(%arg0: i32) -> (i32, i32) {
    %c0_i32 = arith.constant 0 : i32
    %c0_i32_0 = arith.constant 0 : i32
    %c0_i32_1 = arith.constant 0 : i32
    return %c0_i32, %c0_i32_0 : i32, i32
  }
  func.func @transform_8(%arg0: i32) -> (i32, i32) {
    %c0_i32 = arith.constant 0 : i32
    %c0_i32_0 = arith.constant 0 : i32
    %c0_i32_1 = arith.constant 0 : i32
    return %c0_i32, %c0_i32_0 : i32, i32
  }
  func.func @transform_9(%arg0: i32) -> (i32, i32, i32) {
    %c0_i32 = arith.constant 0 : i32
    %c0_i32_0 = arith.constant 0 : i32
    %c0_i32_1 = arith.constant 0 : i32
    return %arg0, %c0_i32, %c0_i32_0 : i32, i32, i32
  }
}

</mosaic_0001>

<bundles_post_ra>
// kernel: tile.48
= control target key start
LH: loop header
LB: loop body
LE: loop exit
PB: predicated region body
PF: predicated region fallthrough
CT: control target
= control target key end

     0   :  { %s22_s0 = inlined_call_operand.vmem [shape: f32[16], index: 0, kind: input, shape index: {}]   ;;  %s23_s1 = inlined_call_operand.vmem [shape: f32[2,16], index: 1, kind: output, shape index: {}]  }
   0x1   :  { %v4_v0 = vld [vmem:[%s22_s0] ss:$0 sm:$0xff] }
   0x2   :  { %5 = vst [vmem:[%s23_s1] sm:$0x3] %v4_v0 }

// kernel: tile.53
= control target key start
LH: loop header
LB: loop body
LE: loop exit
PB: predicated region body
PF: predicated region fallthrough
CT: control target
= control target key end

     0   :  { %s22_s0 = inlined_call_operand.vmem [shape: f32[8], index: 0, kind: input, shape index: {}]   ;;  %s23_s1 = inlined_call_operand.vmem [shape: f32[2,8], index: 1, kind: output, shape index: {}]  }
   0x1   :  { %v4_v0 = vld [vmem:[%s22_s0] ss:$0 sm:$0xff] }
   0x2   :  { %5 = vst [vmem:[%s23_s1] sm:$0x3] %v4_v0 }

// kernel: tile.43
= control target key start
LH: loop header
LB: loop body
LE: loop exit
PB: predicated region body
PF: predicated region fallthrough
CT: control target
= control target key end

     0   :  { %s22_s0 = inlined_call_operand.vmem [shape: f32[32], index: 0, kind: input, shape index: {}]   ;;  %s23_s1 = inlined_call_operand.vmem [shape: f32[2,32], index: 1, kind: output, shape index: {}]  }
   0x1   :  { %v4_v0 = vld [vmem:[%s22_s0] ss:$0 sm:$0xff] }
   0x2   :  { %5 = vst [vmem:[%s23_s1] sm:$0x3] %v4_v0 }

// kernel: fcnn_forward.1
= control target key start
LH: loop header
LB: loop body
LE: loop exit
PB: predicated region body
PF: predicated region fallthrough
CT: control target
= control target key end

     0   :  { %vm7850_vm0 = vmmov 0   ;;  %vm1586_vm1 = vcmask 1043456   ;;  %vm1582_vm2 = vcmask 588800   ;;  %vm1731_vm3 = vcmask 523264   ;;  %s9435_s1 = inlined_call_operand.vmem [shape: bf16[9,256,64], index: 1, kind: input, shape index: {}]   ;;  %s9436_s0 = inlined_call_operand.vmem [shape: bf16[1,16,256], index: 0, kind: input, shape index: {}]   ;;  %s9437_s7 = inlined_call_operand.vmem [shape: bf16[128,288], index: 7, kind: input, shape index: {}]   ;;  %s9438_s8 = inlined_call_operand.vmem [shape: f32[184,1], index: 8, kind: input, shape index: {}]   ;;  %s9439_s2 = inlined_call_operand.vmem [shape: bf16[9,64,16], index: 2, kind: input, shape index: {}]   ;;  %s9440_s3 = inlined_call_operand.vmem [shape: bf16[9,16,4], index: 3, kind: input, shape index: {}]   ;;  %s9441_s4 = inlined_call_operand.vmem [shape: bf16[9,4,16], index: 4, kind: input, shape index: {}]   ;;  %s9442_s5 = inlined_call_operand.vmem [shape: bf16[9,16,64], index: 5, kind: input, shape index: {}]   ;;  %s9443_s6 = inlined_call_operand.vmem [shape: bf16[9,64,256], index: 6, kind: input, shape index: {}]   ;;  %s9444_s9 = inlined_call_operand.vmem [shape: f32[1,16,256], index: 9, kind: output, shape index: {}]  }
   0x1   :  { %v7527_v0 = vld [vmem:[%s9435_s1 + $0x40] sm:$0xff]   ;;  %v7531_v4 = vld [vmem:[%s9435_s1 + $0x48] sm:$0xff]   ;;  %v7535_v8 = vld [vmem:[%s9435_s1 + $0x50] sm:$0xff]   ;;  %vm2524_vm4 = vcmask 130048   ;;  %vm3266_vm5 = vcmask 1041408   ;;  %vm3253_vm6 = vcmask 31744  }
   0x2   :  { %v7528_v1 = vld [vmem:[%s9435_s1 + $0xc0] sm:$0xff]   ;;  %6711 = vmatprep.subr.bf16.mxu0 %v7527_v0  ;;  %v7532_v5 = vld [vmem:[%s9435_s1 + $0xc8] sm:$0xff]   ;;  %v7536_v9 = vld [vmem:[%s9435_s1 + $0xd0] sm:$0xff]   ;;  %vm3928_vm7 = vcmask 261120  }
   0x3   :  { %v7529_v2 = vld [vmem:[%s9435_s1] sm:$0xff]   ;;  %6733 = vmatprep.subr.bf16.mxu1 %v7528_v1  ;;  %v7533_v6 = vld [vmem:[%s9435_s1 + $0x8] sm:$0xff]   ;;  %v7537_v10 = vld [vmem:[%s9435_s1 + $0x10] sm:$0xff]  }
   0x4   :  { %v7530_v3 = vld [vmem:[%s9435_s1 + $0x80] sm:$0xff]   ;;  %6712 = vmatpush3.bf16.msra.mxu0 %v7529_v2  ;;  %v7534_v7 = vld [vmem:[%s9435_s1 + $0x88] sm:$0xff]   ;;  %v7538_v11 = vld [vmem:[%s9435_s1 + $0x90] sm:$0xff]  }
   0x5   :  { %6734 = vmatpush3.bf16.msra.mxu1 %v7530_v3  ;;  %6713 = vmatprep.subr.bf16.mxu0 %v7531_v4  ;;  %v7539_v12 = vld [vmem:[%s9435_s1 + $0x58] sm:$0xff]   ;;  %v7543_v16 = vld [vmem:[%s9435_s1 + $0x60] sm:$0xff]   ;;  %v7547_v20 = vld [vmem:[%s9435_s1 + $0x68] sm:$0xff]  }
   0x6   :  { %6735 = vmatprep.subr.bf16.mxu1 %v7532_v5  ;;  %v7540_v13 = vld [vmem:[%s9435_s1 + $0xd8] sm:$0xff]   ;;  %v7544_v17 = vld [vmem:[%s9435_s1 + $0xe0] sm:$0xff]   ;;  %v7548_v21 = vld [vmem:[%s9435_s1 + $0xe8] sm:$0xff]  }
   0x7   :  { %v7541_v14 = vld [vmem:[%s9435_s1 + $0x18] sm:$0xff]   ;;  %v7545_v18 = vld [vmem:[%s9435_s1 + $0x20] sm:$0xff]   ;;  %v7549_v22 = vld [vmem:[%s9435_s1 + $0x28] sm:$0xff]  }
   0x8   :  { %6714 = vmatpush3.bf16.msra.mxu0 %v7533_v6  ;;  %v7542_v15 = vld [vmem:[%s9435_s1 + $0x98] sm:$0xff]   ;;  %v7546_v19 = vld [vmem:[%s9435_s1 + $0xa0] sm:$0xff]   ;;  %v7550_v23 = vld [vmem:[%s9435_s1 + $0xa8] sm:$0xff]  }
   0x9   :  { %6736 = vmatpush3.bf16.msra.mxu1 %v7534_v7  ;;  %6715 = vmatprep.subr.bf16.mxu0 %v7535_v8  ;;  %v7551_v24 = vld [vmem:[%s9435_s1 + $0x70] sm:$0xff]   ;;  %v7555_v28 = vld [vmem:[%s9435_s1 + $0x78] sm:$0xff]   ;;  %v8004_v32 = vld [vmem:[%s9436_s0 + $0x4] ss:$8 sps:$4 sm:$0xff]  }
   0xa   :  { %6737 = vmatprep.subr.bf16.mxu1 %v7536_v9  ;;  %v7552_v25 = vld [vmem:[%s9435_s1 + $0xf0] sm:$0xff]   ;;  %v7556_v29 = vld [vmem:[%s9435_s1 + $0xf8] sm:$0xff]   ;;  %v8009_v33 = vld [vmem:[%s9436_s0] ss:$8 sps:$4 sm:$0xff]   ;;  %208 = vmatprep.mubr.bf16.mxu0 %v8004_v32 }
   0xb   :  { %v7553_v26 = vld [vmem:[%s9435_s1 + $0x30] sm:$0xff]   ;;  %v7557_v30 = vld [vmem:[%s9435_s1 + $0x38] sm:$0xff]   ;;  %378 = vmatprep.mubr.bf16.mxu1 %v8004_v32  ;;  %v7562_v34 = vld [vmem:[%s9435_s1 + $0x140] sm:$0xff]  }
   0xc   :  { %6716 = vmatpush3.bf16.msra.mxu0 %v7537_v10  ;;  %v7554_v27 = vld [vmem:[%s9435_s1 + $0xb0] sm:$0xff]   ;;  %v7558_v31 = vld [vmem:[%s9435_s1 + $0xb8] sm:$0xff]   ;;  %v7563_v35 = vld [vmem:[%s9435_s1 + $0x1c0] sm:$0xff]  }
   0xd   :  { %6738 = vmatpush3.bf16.msra.mxu1 %v7538_v11  ;;  %6717 = vmatprep.subr.bf16.mxu0 %v7539_v12  ;;  %v7564_v36 = vld [vmem:[%s9435_s1 + $0x100] sm:$0xff]   ;;  %v7566_v38 = vld [vmem:[%s9435_s1 + $0x148] sm:$0xff]   ;;  %v7570_v42 = vld [vmem:[%s9435_s1 + $0x150] sm:$0xff]  }
   0xe   :  { %6739 = vmatprep.subr.bf16.mxu1 %v7540_v13  ;;  %v7565_v37 = vld [vmem:[%s9435_s1 + $0x180] sm:$0xff]   ;;  %v7567_v39 = vld [vmem:[%s9435_s1 + $0x1c8] sm:$0xff]   ;;  %v7571_v43 = vld [vmem:[%s9435_s1 + $0x1d0] sm:$0xff]  }
   0xf   :  { %v7568_v40 = vld [vmem:[%s9435_s1 + $0x108] sm:$0xff]   ;;  %v7572_v44 = vld [vmem:[%s9435_s1 + $0x110] sm:$0xff]   ;;  %v7574_v46 = vld [vmem:[%s9435_s1 + $0x158] sm:$0xff]  }
  0x10   :  { %6718 = vmatpush3.bf16.msra.mxu0 %v7541_v14  ;;  %v7569_v41 = vld [vmem:[%s9435_s1 + $0x188] sm:$0xff]   ;;  %v7573_v45 = vld [vmem:[%s9435_s1 + $0x190] sm:$0xff]   ;;  %v7575_v47 = vld [vmem:[%s9435_s1 + $0x1d8] sm:$0xff]  }
  0x11   :  { %6740 = vmatpush3.bf16.msra.mxu1 %v7542_v15  ;;  %6719 = vmatprep.subr.bf16.mxu0 %v7543_v16  ;;  %v7576_v48 = vld [vmem:[%s9435_s1 + $0x118] sm:$0xff]   ;;  %v7578_v50 = vld [vmem:[%s9435_s1 + $0x160] sm:$0xff]   ;;  %v7582_v54 = vld [vmem:[%s9435_s1 + $0x168] sm:$0xff]  }
  0x12   :  { %6741 = vmatprep.subr.bf16.mxu1 %v7544_v17  ;;  %v7577_v49 = vld [vmem:[%s9435_s1 + $0x198] sm:$0xff]   ;;  %v7579_v51 = vld [vmem:[%s9435_s1 + $0x1e0] sm:$0xff]   ;;  %v7583_v55 = vld [vmem:[%s9435_s1 + $0x1e8] sm:$0xff]  }
  0x13   :  { %v7580_v52 = vld [vmem:[%s9435_s1 + $0x120] sm:$0xff]   ;;  %v7584_v56 = vld [vmem:[%s9435_s1 + $0x128] sm:$0xff]   ;;  %v7586_v58 = vld [vmem:[%s9435_s1 + $0x170] sm:$0xff]  }
  0x14   :  { %6720 = vmatpush3.bf16.msra.mxu0 %v7545_v18  ;;  %v7581_v53 = vld [vmem:[%s9435_s1 + $0x1a0] sm:$0xff]   ;;  %v7585_v57 = vld [vmem:[%s9435_s1 + $0x1a8] sm:$0xff]   ;;  %v7587_v59 = vld [vmem:[%s9435_s1 + $0x1f0] sm:$0xff]  }
  0x15   :  { %6742 = vmatpush3.bf16.msra.mxu1 %v7546_v19  ;;  %6721 = vmatprep.subr.bf16.mxu0 %v7547_v20  ;;  %v7588_v60 = vld [vmem:[%s9435_s1 + $0x130] sm:$0xff]   ;;  %v7590_v62 = vld [vmem:[%s9435_s1 + $0x178] sm:$0xff]   ;;  %v7594_v2 = vld [vmem:[%s9435_s1 + $0x240] sm:$0xff]  }
  0x16   :  { %6743 = vmatprep.subr.bf16.mxu1 %v7548_v21  ;;  %v7589_v61 = vld [vmem:[%s9435_s1 + $0x1b0] sm:$0xff]   ;;  %v7591_v63 = vld [vmem:[%s9435_s1 + $0x1f8] sm:$0xff]   ;;  %v7595_v3 = vld [vmem:[%s9435_s1 + $0x2c0] sm:$0xff]  }
  0x17   :  { %v7592_v0 = vld [vmem:[%s9435_s1 + $0x138] sm:$0xff]   ;;  %v7596_v4 = vld [vmem:[%s9435_s1 + $0x200] sm:$0xff]   ;;  %v7598_v6 = vld [vmem:[%s9435_s1 + $0x248] sm:$0xff]  }
  0x18   :  { %6722 = vmatpush3.bf16.msra.mxu0 %v7549_v22  ;;  %v7593_v1 = vld [vmem:[%s9435_s1 + $0x1b8] sm:$0xff]   ;;  %v7597_v5 = vld [vmem:[%s9435_s1 + $0x280] sm:$0xff]   ;;  %v7599_v7 = vld [vmem:[%s9435_s1 + $0x2c8] sm:$0xff]  }
  0x19   :  { %6744 = vmatpush3.bf16.msra.mxu1 %v7550_v23  ;;  %6723 = vmatprep.subr.bf16.mxu0 %v7551_v24  ;;  %v7600_v8 = vld [vmem:[%s9435_s1 + $0x208] sm:$0xff]   ;;  %v7602_v10 = vld [vmem:[%s9435_s1 + $0x250] sm:$0xff]   ;;  %v7606_v14 = vld [vmem:[%s9435_s1 + $0x258] sm:$0xff]  }
  0x1a   :  { %6745 = vmatprep.subr.bf16.mxu1 %v7552_v25  ;;  %v7601_v9 = vld [vmem:[%s9435_s1 + $0x288] sm:$0xff]   ;;  %v7603_v11 = vld [vmem:[%s9435_s1 + $0x2d0] sm:$0xff]   ;;  %v7607_v15 = vld [vmem:[%s9435_s1 + $0x2d8] sm:$0xff]  }
  0x1b   :  { %v7604_v12 = vld [vmem:[%s9435_s1 + $0x210] sm:$0xff]   ;;  %v7608_v16 = vld [vmem:[%s9435_s1 + $0x218] sm:$0xff]   ;;  %v7610_v18 = vld [vmem:[%s9435_s1 + $0x260] sm:$0xff]  }
  0x1c   :  { %6724 = vmatpush3.bf16.msra.mxu0 %v7553_v26  ;;  %v7605_v13 = vld [vmem:[%s9435_s1 + $0x290] sm:$0xff]   ;;  %v7609_v17 = vld [vmem:[%s9435_s1 + $0x298] sm:$0xff]   ;;  %v7611_v19 = vld [vmem:[%s9435_s1 + $0x2e0] sm:$0xff]  }
  0x1d   :  { %6746 = vmatpush3.bf16.msra.mxu1 %v7554_v27  ;;  %6725 = vmatprep.subr.bf16.mxu0 %v7555_v28  ;;  %v7612_v20 = vld [vmem:[%s9435_s1 + $0x220] sm:$0xff]   ;;  %v7614_v22 = vld [vmem:[%s9435_s1 + $0x268] sm:$0xff]   ;;  %v7618_v26 = vld [vmem:[%s9435_s1 + $0x270] sm:$0xff]  }
  0x1e   :  { %6747 = vmatprep.subr.bf16.mxu1 %v7556_v29  ;;  %v7613_v21 = vld [vmem:[%s9435_s1 + $0x2a0] sm:$0xff]   ;;  %v7615_v23 = vld [vmem:[%s9435_s1 + $0x2e8] sm:$0xff]   ;;  %v7619_v27 = vld [vmem:[%s9435_s1 + $0x2f0] sm:$0xff]  }
  0x1f   :  { %v7616_v24 = vld [vmem:[%s9435_s1 + $0x228] sm:$0xff]   ;;  %v7620_v28 = vld [vmem:[%s9435_s1 + $0x230] sm:$0xff]  }
  0x20   :  { %6726 = vmatpush3.bf16.msra.mxu0 %v7557_v30  ;;  %v7617_v25 = vld [vmem:[%s9435_s1 + $0x2a8] sm:$0xff]   ;;  %v7621_v29 = vld [vmem:[%s9435_s1 + $0x2b0] sm:$0xff]   ;;  %v7622_v30 = vld [vmem:[%s9435_s1 + $0x278] sm:$0xff]  }
  0x21   :  { %6748 = vmatpush3.bf16.msra.mxu1 %v7558_v31  ;;  %6755 = vmatprep.subr.bf16.mxu0 %v7562_v34  ;;  %v7623_v31 = vld [vmem:[%s9435_s1 + $0x2f8] sm:$0xff]  }
  0x22   :  { %6777 = vmatprep.subr.bf16.mxu1 %v7563_v35  ;;  %v7624_v34 = vld [vmem:[%s9435_s1 + $0x238] sm:$0xff]  }
  0x23   :  { %209 = vmatmul.mubr.bf16.vlgmr.msra.gmra.mrb[0].mxu0 %v8009_v33  ;;  %v7625_v35 = vld [vmem:[%s9435_s1 + $0x2b8] sm:$0xff]  }
  0x24   :  { %379 = vmatmul.mubr.bf16.vlgmr.msra.gmra.mrb[0].mxu1 %v8009_v33  ;;  %548 = vmatprep.mubr.bf16.mxu0 %v8004_v32 }
  0x25   :  { %6756 = vmatpush3.bf16.msra.mxu0 %v7564_v36  ;;  %718 = vmatprep.mubr.bf16.mxu1 %v8004_v32  ;;  %v7626_v36 = vld [vmem:[%s9435_s1 + $0x340] sm:$0xff]  }
  0x26   :  { %6778 = vmatpush3.bf16.msra.mxu1 %v7565_v37  ;;  %6757 = vmatprep.subr.bf16.mxu0 %v7566_v38  ;;  %v7627_v37 = vld [vmem:[%s9435_s1 + $0x3c0] sm:$0xff]  }
  0x27   :  { %6779 = vmatprep.subr.bf16.mxu1 %v7567_v39  ;;  %v7628_v38 = vld [vmem:[%s9435_s1 + $0x300] sm:$0xff]  }
  0x28   :  { %v7629_v39 = vld [vmem:[%s9435_s1 + $0x380] sm:$0xff]  }
  0x29   :  { %6758 = vmatpush3.bf16.msra.mxu0 %v7568_v40  ;;  %v7630_v40 = vld [vmem:[%s9435_s1 + $0x348] sm:$0xff]  }
  0x2a   :  { %6780 = vmatpush3.bf16.msra.mxu1 %v7569_v41  ;;  %6759 = vmatprep.subr.bf16.mxu0 %v7570_v42  ;;  %v7631_v41 = vld [vmem:[%s9435_s1 + $0x3c8] sm:$0xff]  }
  0x2b   :  { %6781 = vmatprep.subr.bf16.mxu1 %v7571_v43  ;;  %v7632_v42 = vld [vmem:[%s9435_s1 + $0x308] sm:$0xff]  }
  0x2c   :  { %v7633_v43 = vld [vmem:[%s9435_s1 + $0x388] sm:$0xff]  }
  0x2d   :  { %6760 = vmatpush3.bf16.msra.mxu0 %v7572_v44  ;;  %v7634_v44 = vld [vmem:[%s9435_s1 + $0x350] sm:$0xff]  }
  0x2e   :  { %6782 = vmatpush3.bf16.msra.mxu1 %v7573_v45  ;;  %6761 = vmatprep.subr.bf16.mxu0 %v7574_v46  ;;  %v7635_v45 = vld [vmem:[%s9435_s1 + $0x3d0] sm:$0xff]  }
  0x2f   :  { %6783 = vmatprep.subr.bf16.mxu1 %v7575_v47  ;;  %v7636_v46 = vld [vmem:[%s9435_s1 + $0x310] sm:$0xff]  }
  0x30   :  { %v7637_v47 = vld [vmem:[%s9435_s1 + $0x390] sm:$0xff]  }
  0x31   :  { %6762 = vmatpush3.bf16.msra.mxu0 %v7576_v48  ;;  %v7638_v48 = vld [vmem:[%s9435_s1 + $0x358] sm:$0xff]  }
  0x32   :  { %6784 = vmatpush3.bf16.msra.mxu1 %v7577_v49  ;;  %6763 = vmatprep.subr.bf16.mxu0 %v7578_v50  ;;  %v7639_v49 = vld [vmem:[%s9435_s1 + $0x3d8] sm:$0xff]  }
  0x33   :  { %6785 = vmatprep.subr.bf16.mxu1 %v7579_v51  ;;  %v7640_v50 = vld [vmem:[%s9435_s1 + $0x318] sm:$0xff]  }
  0x34   :  { %v7641_v51 = vld [vmem:[%s9435_s1 + $0x398] sm:$0xff]  }
  0x35   :  { %6764 = vmatpush3.bf16.msra.mxu0 %v7580_v52  ;;  %v7642_v52 = vld [vmem:[%s9435_s1 + $0x360] sm:$0xff]  }
  0x36   :  { %6786 = vmatpush3.bf16.msra.mxu1 %v7581_v53  ;;  %6765 = vmatprep.subr.bf16.mxu0 %v7582_v54  ;;  %v7643_v53 = vld [vmem:[%s9435_s1 + $0x3e0] sm:$0xff]  }
  0x37   :  { %6787 = vmatprep.subr.bf16.mxu1 %v7583_v55  ;;  %v7644_v54 = vld [vmem:[%s9435_s1 + $0x320] sm:$0xff]  }
  0x38   :  { %v7645_v55 = vld [vmem:[%s9435_s1 + $0x3a0] sm:$0xff]  }
  0x39   :  { %6766 = vmatpush3.bf16.msra.mxu0 %v7584_v56  ;;  %v7646_v56 = vld [vmem:[%s9435_s1 + $0x368] sm:$0xff]  }
  0x3a   :  { %6788 = vmatpush3.bf16.msra.mxu1 %v7585_v57  ;;  %6767 = vmatprep.subr.bf16.mxu0 %v7586_v58  ;;  %v7647_v57 = vld [vmem:[%s9435_s1 + $0x3e8] sm:$0xff]  }
  0x3b   :  { %6789 = vmatprep.subr.bf16.mxu1 %v7587_v59  ;;  %v7648_v58 = vld [vmem:[%s9435_s1 + $0x328] sm:$0xff]  }
  0x3c   :  { %v7649_v59 = vld [vmem:[%s9435_s1 + $0x3a8] sm:$0xff]  }
  0x3d   :  { %6768 = vmatpush3.bf16.msra.mxu0 %v7588_v60  ;;  %v7650_v60 = vld [vmem:[%s9435_s1 + $0x370] sm:$0xff]  }
  0x3e   :  { %6790 = vmatpush3.bf16.msra.mxu1 %v7589_v61  ;;  %6769 = vmatprep.subr.bf16.mxu0 %v7590_v62  ;;  %v7651_v61 = vld [vmem:[%s9435_s1 + $0x3f0] sm:$0xff]  }
  0x3f   :  { %6791 = vmatprep.subr.bf16.mxu1 %v7591_v63  ;;  %v7652_v62 = vld [vmem:[%s9435_s1 + $0x330] sm:$0xff]  }
  0x40   :  { %v7653_v63 = vld [vmem:[%s9435_s1 + $0x3b0] sm:$0xff]  }
  0x41   :  { %6770 = vmatpush3.bf16.msra.mxu0 %v7592_v0  ;;  %v7654_v0 = vld [vmem:[%s9435_s1 + $0x378] sm:$0xff]  }
  0x42   :  { %6792 = vmatpush3.bf16.msra.mxu1 %v7593_v1  ;;  %6799 = vmatprep.subr.bf16.mxu0 %v7594_v2  ;;  %v7655_v1 = vld [vmem:[%s9435_s1 + $0x3f8] sm:$0xff]  }
  0x43   :  { %6821 = vmatprep.subr.bf16.mxu1 %v7595_v3  ;;  %v7656_v2 = vld [vmem:[%s9435_s1 + $0x338] sm:$0xff]  }
  0x44   :  { %549 = vmatmul.mubr.bf16.vlgmr.msra.gmra.mrb[4].mxu0 %v8009_v33  ;;  %v7657_v3 = vld [vmem:[%s9435_s1 + $0x3b8] sm:$0xff]  }
  0x45   :  { %719 = vmatmul.mubr.bf16.vlgmr.msra.gmra.mrb[4].mxu1 %v8009_v33  ;;  %6800 = vmatpush3.bf16.msra.mxu0 %v7596_v4  ;;  %v7658_v4 = vld [vmem:[%s9435_s1 + $0x440] sm:$0xff]  }
  0x46   :  { %6822 = vmatpush3.bf16.msra.mxu1 %v7597_v5  ;;  %888 = vmatprep.mubr.bf16.mxu0 %v8004_v32  ;;  %v7659_v5 = vld [vmem:[%s9435_s1 + $0x400] sm:$0xff]  }
  0x47   :  { %6801 = vmatprep.subr.bf16.mxu0 %v7598_v6  ;;  %1058 = vmatprep.mubr.bf16.mxu1 %v8004_v32  ;;  %v7660_v6 = vld [vmem:[%s9435_s1 + $0x448] sm:$0xff]  }
  0x48   :  { %6823 = vmatprep.subr.bf16.mxu1 %v7599_v7  ;;  %v7849_v7 = vmov 0.0  }
  0x49   :  { %6802 = vmatpush3.bf16.msra.mxu0 %v7600_v8  ;;  %v7661_v8 = vld [vmem:[%s9435_s1 + $0x408] sm:$0xff]  }
  0x4a   :  { %6824 = vmatpush3.bf16.msra.mxu1 %v7601_v9  ;;  %6803 = vmatprep.subr.bf16.mxu0 %v7602_v10  ;;  %v7662_v9 = vld [vmem:[%s9435_s1 + $0x450] sm:$0xff]  }
  0x4b   :  { %6825 = vmatprep.subr.bf16.mxu1 %v7603_v11  ;;  %v7663_v10 = vld [vmem:[%s9435_s1 + $0x410] sm:$0xff]   ;;  %v7664_v11 = vld [vmem:[%s9435_s1 + $0x458] sm:$0xff]  }
  0x4d   :  { %6804 = vmatpush3.bf16.msra.mxu0 %v7604_v12  ;;  %v7665_v12 = vld [vmem:[%s9435_s1 + $0x418] sm:$0xff]  }
  0x4e   :  { %6826 = vmatpush3.bf16.msra.mxu1 %v7605_v13  ;;  %6805 = vmatprep.subr.bf16.mxu0 %v7606_v14  ;;  %v7667_v13 = vld [vmem:[%s9435_s1 + $0x420] sm:$0xff]   ;;  %v7668_v14 = vld [vmem:[%s9435_s1 + $0x468] sm:$0xff]  }
  0x4f   :  { %6827 = vmatprep.subr.bf16.mxu1 %v7607_v15  ;;  %v7669_v15 = vld [vmem:[%s9435_s1 + $0x428] sm:$0xff]  }
  0x51   :  { %6806 = vmatpush3.bf16.msra.mxu0 %v7608_v16  ;;  %v7670_v16 = vld [vmem:[%s9435_s1 + $0x470] sm:$0xff]  }
  0x52   :  { %6828 = vmatpush3.bf16.msra.mxu1 %v7609_v17  ;;  %6807 = vmatprep.subr.bf16.mxu0 %v7610_v18  ;;  %v7671_v17 = vld [vmem:[%s9435_s1 + $0x430] sm:$0xff]   ;;  %v7672_v18 = vld [vmem:[%s9435_s1 + $0x478] sm:$0xff]  }
  0x53   :  { %6829 = vmatprep.subr.bf16.mxu1 %v7611_v19  ;;  %v7673_v19 = vld [vmem:[%s9435_s1 + $0x438] sm:$0xff]  }
  0x55   :  { %6808 = vmatpush3.bf16.msra.mxu0 %v7612_v20 }
  0x56   :  { %6830 = vmatpush3.bf16.msra.mxu1 %v7613_v21  ;;  %6809 = vmatprep.subr.bf16.mxu0 %v7614_v22 }
  0x57   :  { %6831 = vmatprep.subr.bf16.mxu1 %v7615_v23 }
  0x59   :  { %6810 = vmatpush3.bf16.msra.mxu0 %v7616_v24 }
  0x5a   :  { %6832 = vmatpush3.bf16.msra.mxu1 %v7617_v25  ;;  %6811 = vmatprep.subr.bf16.mxu0 %v7618_v26 }
  0x5b   :  { %6833 = vmatprep.subr.bf16.mxu1 %v7619_v27 }
  0x5d   :  { %6812 = vmatpush3.bf16.msra.mxu0 %v7620_v28 }
  0x5e   :  { %6834 = vmatpush3.bf16.msra.mxu1 %v7621_v29  ;;  %6813 = vmatprep.subr.bf16.mxu0 %v7622_v30 }
  0x5f   :  { %6835 = vmatprep.subr.bf16.mxu1 %v7623_v31 }
  0x61   :  { %6814 = vmatpush3.bf16.msra.mxu0 %v7624_v34 }
  0x62   :  { %6836 = vmatpush3.bf16.msra.mxu1 %v7625_v35  ;;  %6843 = vmatprep.subr.bf16.mxu0 %v7626_v36  ;;  %v36_v36 = vld [vmem:[%s9438_s8] sm:$0xff] }
  0x63   :  { %6865 = vmatprep.subr.bf16.mxu1 %v7627_v37 }
  0x64   :  { %889 = vmatmul.mubr.bf16.vlgmr.msra.gmra.mrb[8].mxu0 %v8009_v33 }
  0x65   :  { %1059 = vmatmul.mubr.bf16.vlgmr.msra.gmra.mrb[8].mxu1 %v8009_v33  ;;  %6844 = vmatpush3.bf16.msra.mxu0 %v7628_v38 }
  0x66   :  { %6866 = vmatpush3.bf16.msra.mxu1 %v7629_v39  ;;  %1228 = vmatprep.mubr.bf16.mxu0 %v8004_v32 }
  0x67   :  { %6845 = vmatprep.subr.bf16.mxu0 %v7630_v40  ;;  %1398 = vmatprep.mubr.bf16.mxu1 %v8004_v32  ;;  %v37_v40 = vld [vmem:[%s9438_s8 + $0x8] sm:$0xff] }
  0x68   :  { %6867 = vmatprep.subr.bf16.mxu1 %v7631_v41 }
  0x69   :  { %6846 = vmatpush3.bf16.msra.mxu0 %v7632_v42 }
  0x6a   :  { %6868 = vmatpush3.bf16.msra.mxu1 %v7633_v43  ;;  %6847 = vmatprep.subr.bf16.mxu0 %v7634_v44 }
  0x6b   :  { %6869 = vmatprep.subr.bf16.mxu1 %v7635_v45 }
  0x6d   :  { %6848 = vmatpush3.bf16.msra.mxu0 %v7636_v46 }
  0x6e   :  { %6870 = vmatpush3.bf16.msra.mxu1 %v7637_v47  ;;  %6849 = vmatprep.subr.bf16.mxu0 %v7638_v48 }
  0x6f   :  { %6871 = vmatprep.subr.bf16.mxu1 %v7639_v49 }
  0x71   :  { %6850 = vmatpush3.bf16.msra.mxu0 %v7640_v50 }
  0x72   :  { %6872 = vmatpush3.bf16.msra.mxu1 %v7641_v51  ;;  %6851 = vmatprep.subr.bf16.mxu0 %v7642_v52  ;;  %v1696_v51 = vld [vmem:[%s9438_s8 + $0x20] sm:$0xff] }
  0x73   :  { %6873 = vmatprep.subr.bf16.mxu1 %v7643_v53  ;;  %v2506_v53 = vld [vmem:[%s9438_s8 + $0x30] sm:$0xff] }
  0x75   :  { %6852 = vmatpush3.bf16.msra.mxu0 %v7644_v54  ;;  %v2508_v54 = vld [vmem:[%s9438_s8 + $0x40] sm:$0xff] }
  0x76   :  { %6874 = vmatpush3.bf16.msra.mxu1 %v7645_v55  ;;  %6853 = vmatprep.subr.bf16.mxu0 %v7646_v56  ;;  %v2510_v55 = vld [vmem:[%s9438_s8 + $0x50] sm:$0xff]  ;;  %v2512_v56 = vld [vmem:[%s9438_s8 + $0x60] sm:$0xff] }
  0x77   :  { %6875 = vmatprep.subr.bf16.mxu1 %v7647_v57  ;;  %v3244_v57 = vld [vmem:[%s9438_s8 + $0x70] sm:$0xff] }
  0x79   :  { %6854 = vmatpush3.bf16.msra.mxu0 %v7648_v58  ;;  %v3246_v58 = vld [vmem:[%s9438_s8 + $0x80] sm:$0xff] }
  0x7a   :  { %6876 = vmatpush3.bf16.msra.mxu1 %v7649_v59  ;;  %6855 = vmatprep.subr.bf16.mxu0 %v7650_v60 }
  0x7b   :  { %6877 = vmatprep.subr.bf16.mxu1 %v7651_v61 }
  0x7d   :  { %6856 = vmatpush3.bf16.msra.mxu0 %v7652_v62  ;;  %v4147_v62 = vld [vmem:[%s9438_s8 + $0x90] sm:$0xff] }
  0x7e   :  { %6878 = vmatpush3.bf16.msra.mxu1 %v7653_v63  ;;  %6857 = vmatprep.subr.bf16.mxu0 %v7654_v0 }
  0x7f   :  { %6879 = vmatprep.subr.bf16.mxu1 %v7655_v1 }
  0x81   :  { %6858 = vmatpush3.bf16.msra.mxu0 %v7656_v2 }
  0x82   :  { %6880 = vmatpush3.bf16.msra.mxu1 %v7657_v3  ;;  %6887 = vmatprep.subr.bf16.mxu0 %v7658_v4 }
  0x83   :  { %7127 = vmatprep.subr.bf16.mxu1 %v7849_v7 }
  0x84   :  { %1229 = vmatmul.mubr.bf16.vlgmr.msra.gmra.mrb[12].mxu0 %v8009_v33 }
  0x85   :  { %1399 = vmatmul.mubr.bf16.vlgmr.msra.gmra.mrb[12].mxu1 %v8009_v33  ;;  %6888 = vmatpush3.bf16.msra.mxu0 %v7659_v5 }
  0x86   :  { %6889 = vmatprep.subr.bf16.mxu0 %v7660_v6  ;;  %1568 = vmatprep.mubr.bf16.mxu0 %v8004_v32  ;;  %v7666_v32 = vld [vmem:[%s9435_s1 + $0x460] sm:$0xff]  }
  0x87   :  { %7137 = vmatprep.mubr.msk.bf16.mxu1 %vm7850_vm0, %v7849_v7 }
  0x89   :  { %6890 = vmatpush3.bf16.msra.mxu0 %v7661_v8 }
  0x8a   :  { %6891 = vmatprep.subr.bf16.mxu0 %v7662_v9 }
  0x8d   :  { %6892 = vmatpush3.bf16.msra.mxu0 %v7663_v10  ;;  %v4802_v10 = vld [vmem:[%s9438_s8 + $0xa0] sm:$0xff] }
  0x8e   :  { %6893 = vmatprep.subr.bf16.mxu0 %v7664_v11  ;;  %v5770_v11 = vld [vmem:[%s9437_s7 + $0xa8] sm:$0x1] }
  0x91   :  { %6894 = vmatpush3.bf16.msra.mxu0 %v7665_v12 }
  0x92   :  { %6895 = vmatprep.subr.bf16.mxu0 %v7666_v32  ;;  %v8424_v32 = vunpack.c.l.bf16 %v5770_v11  ;;  %v7693_v11 = vld [vmem:[%s9439_s2 + $0xa8] sm:$0xff]  }
  0x95   :  { %6896 = vmatpush3.bf16.msra.mxu0 %v7667_v13 }
  0x96   :  { %6897 = vmatprep.subr.bf16.mxu0 %v7668_v14 }
  0x99   :  { %6898 = vmatpush3.bf16.msra.mxu0 %v7669_v15 }
  0x9a   :  { %6899 = vmatprep.subr.bf16.mxu0 %v7670_v16 }
  0x9d   :  { %6900 = vmatpush3.bf16.msra.mxu0 %v7671_v17 }
  0x9e   :  { %6901 = vmatprep.subr.bf16.mxu0 %v7672_v18 }
  0xa1   :  { %6902 = vmatpush3.bf16.msra.mxu0 %v7673_v19 }
  0xa2   :  { %7155 = vmatprep.subr.bf16.mxu0 %v7849_v7 }
  0xa4   :  { %1569 = vmatmul.mubr.bf16.vlgmr.msra.gmra.mrb[16].mxu0 %v8009_v33  ;;  %v9447_v33 = vmov 0  }
  0xa5   :  { %7163 = vmatprep.mubr.msk.bf16.mxu0 %vm7850_vm0, %v7849_v7  ;;  %7520 = vset.pattern.permute.xlu0 %v9447_v33 }
  0xa6   :  { %7521 = vset.pattern.permute.xlu1 %v9447_v33  ;;  %1680 = vperm.xlu0 %7520, %v36_v36  }
  0xaa   :  { %1685 = vperm.xlu0 %7520, %v37_v40   ;;  %v35_v40 = vld [vmem:[%s9437_s7] sm:$0xf] }
  0xae   :  { %2486 = vperm.xlu0 %7520, %v1696_v51  }
  0xb2   :  { %3186 = vperm.xlu0 %7520, %v2506_v53  }
  0xb6   :  { %3196 = vperm.xlu0 %7520, %v2508_v54  }
  0xba   :  { %3206 = vperm.xlu0 %7520, %v2510_v55  }
  0xbe   :  { %3216 = vperm.xlu0 %7520, %v2512_v56  }
  0xc2   :  { %4116 = vperm.xlu0 %7520, %v3244_v57  }
  0xc6   :  { %4126 = vperm.xlu0 %7520, %v3246_v58  }
  0xca   :  { %4787 = vperm.xlu0 %7520, %v4147_v62   ;;  %v7682_v62 = vld [vmem:[%s9439_s2 + $0x40] sm:$0xff]  }
  0xce   :  { %5754 = vperm.xlu0 %7520, %v4802_v10   ;;  %v7692_v10 = vld [vmem:[%s9439_s2 + $0x88] sm:$0xff]  }
  0xd2   :  { %5775 = vperm.xlu0 %7520, %v8424_v32  }
  0xf6   :  { %v6727_v20 = vpop.f32.mrb[0].mxu0 }
  0xf7   :  { %v6749_v21 = vpop.f32.mrb[0].mxu1  ;;  %v6728_v22 = vpop.f32.mrb[1].mxu0 }
  0xf8   :  { %v6729_v23 = vadd.f32 %v6728_v22, %v6727_v20  ;;  %v6750_v24 = vpop.f32.mrb[1].mxu1  ;;  %v6730_v25 = vpop.f32.mrb[2].mxu0 }
  0xf9   :  { %v6751_v26 = vadd.f32 %v6750_v24, %v6749_v21  ;;  %v6752_v27 = vpop.f32.mrb[2].mxu1  ;;  %v6731_v28 = vpop.f32.mrb[3].mxu0 }
  0xfa   :  { %v8367_v29 = vadd.f32 %v6731_v28, %v6730_v25  ;;  %v6753_v30 = vpop.f32.mrb[3].mxu1 }
  0xfb   :  { %v1577_v31 = vpack.c.bf16 %v6751_v26, %v6729_v23  ;;  %v8369_v34 = vadd.f32 %v6753_v30, %v6752_v27 }
  0xfd   :  { %v1630_v35 = vpack.c.bf16 %v8369_v34, %v8367_v29  ;;  %7128 = vmatpush3.bf16.msra.mxu1 %v1577_v31  ;;  %v7674_v34 = vld [vmem:[%s9439_s2] sm:$0xff]  }
  0xfe   :  { %7129 = vmatprep.subr.bf16.mxu1 %v7849_v7  ;;  %7156 = vmatpush3.bf16.msra.mxu0 %v7674_v34  ;;  %v4803_v34 = vld [vmem:[%s9438_s8 + $0xa8] sm:$0xff] }
  0xff   :  { %7157 = vmatprep.subr.bf16.mxu0 %v7849_v7 }
 0x117   :  { %v6771_v37 = vpop.f32.mrb[4].mxu0 }
 0x118   :  { %v6793_v38 = vpop.f32.mrb[4].mxu1  ;;  %v6772_v39 = vpop.f32.mrb[5].mxu0 }
 0x119   :  { %v6773_v41 = vadd.f32 %v6772_v39, %v6771_v37  ;;  %v6794_v42 = vpop.f32.mrb[5].mxu1  ;;  %v6774_v43 = vpop.f32.mrb[6].mxu0 }
 0x11a   :  { %v6795_v44 = vadd.f32 %v6794_v42, %v6793_v38  ;;  %v6796_v45 = vpop.f32.mrb[6].mxu1  ;;  %v6775_v46 = vpop.f32.mrb[7].mxu0  ;;  %v7676_v42 = vld [vmem:[%s9439_s2 + $0x8] sm:$0xff]  }
 0x11b   :  { %v8386_v47 = vadd.f32 %v6775_v46, %v6774_v43  ;;  %v6797_v48 = vpop.f32.mrb[7].mxu1  ;;  %v7677_v43 = vld [vmem:[%s9439_s2 + $0x28] sm:$0xff]   ;;  %7158 = vmatpush3.bf16.msra.mxu0 %v7676_v42  ;;  %v7680_v46 = vld [vmem:[%s9439_s2 + $0x18] sm:$0xff]  }
 0x11c   :  { %v1578_v49 = vpack.c.bf16 %v6795_v44, %v6773_v41  ;;  %v8388_v50 = vadd.f32 %v6797_v48, %v6796_v45  ;;  %v7678_v44 = vld [vmem:[%s9439_s2 + $0x10] sm:$0xff]   ;;  %7159 = vmatprep.subr.bf16.mxu0 %v7849_v7 }
 0x11d   :  { %v7679_v45 = vld [vmem:[%s9439_s2 + $0x30] sm:$0xff]  }
 0x11e   :  { %v1631_v52 = vpack.c.bf16 %v8388_v50, %v8386_v47  ;;  %7130 = vmatpush3.bf16.msra.mxu1 %v1578_v49  ;;  %v7681_v47 = vld [vmem:[%s9439_s2 + $0x38] sm:$0xff]  }
 0x11f   :  { %7131 = vmatprep.subr.bf16.mxu1 %v7849_v7  ;;  %7160 = vmatpush3.bf16.msra.mxu0 %v7678_v44 }
 0x120   :  { %7161 = vmatprep.subr.bf16.mxu0 %v7849_v7 }
 0x123   :  { %7162 = vmatpush3.bf16.msra.mxu0 %v7680_v46 }
 0x124   :  { %7179 = vmatprep.subr.bf16.mxu0 %v7849_v7 }
 0x137   :  { %v6815_v59 = vpop.f32.mrb[8].mxu0 }
 0x138   :  { %v6837_v60 = vpop.f32.mrb[8].mxu1  ;;  %v6816_v61 = vpop.f32.mrb[9].mxu0 }
 0x139   :  { %v6817_v63 = vadd.f32 %v6816_v61, %v6815_v59  ;;  %v6838_v0 = vpop.f32.mrb[9].mxu1  ;;  %v6818_v1 = vpop.f32.mrb[10].mxu0 }
 0x13a   :  { %v6839_v2 = vadd.f32 %v6838_v0, %v6837_v60  ;;  %v6840_v3 = vpop.f32.mrb[10].mxu1  ;;  %v6819_v4 = vpop.f32.mrb[11].mxu0 }
 0x13b   :  { %v6820_v5 = vadd.f32 %v6819_v4, %v6818_v1  ;;  %v6841_v6 = vpop.f32.mrb[11].mxu1  ;;  %v7684_v1 = vld [vmem:[%s9439_s2 + $0x48] sm:$0xff]   ;;  %v7687_v4 = vld [vmem:[%s9439_s2 + $0x70] sm:$0xff]  }
 0x13c   :  { %v1579_v8 = vpack.c.bf16 %v6839_v2, %v6817_v63  ;;  %v6842_v9 = vadd.f32 %v6841_v6, %v6840_v3  ;;  %v7683_v63 = vld [vmem:[%s9439_s2 + $0x60] sm:$0xff]   ;;  %v7685_v2 = vld [vmem:[%s9439_s2 + $0x68] sm:$0xff]   ;;  %v7686_v3 = vld [vmem:[%s9439_s2 + $0x50] sm:$0xff]  }
 0x13d   :  { %v7689_v6 = vld [vmem:[%s9439_s2 + $0x78] sm:$0xff]  }
 0x13e   :  { %v1632_v12 = vpack.c.bf16 %v6842_v9, %v6820_v5  ;;  %7132 = vmatpush3.bf16.msra.mxu1 %v1579_v8  ;;  %v7688_v5 = vld [vmem:[%s9439_s2 + $0x58] sm:$0xff]   ;;  %v7690_v8 = vld [vmem:[%s9439_s2 + $0x80] sm:$0xff]  }
 0x13f   :  { %7133 = vmatprep.subr.bf16.mxu1 %v7849_v7  ;;  %v7691_v9 = vld [vmem:[%s9439_s2 + $0xa0] sm:$0xff]  }
 0x157   :  { %v6859_v13 = vpop.f32.mrb[12].mxu0 }
 0x158   :  { %v6881_v14 = vpop.f32.mrb[12].mxu1  ;;  %v6860_v15 = vpop.f32.mrb[13].mxu0 }
 0x159   :  { %v6861_v16 = vadd.f32 %v6860_v15, %v6859_v13  ;;  %v6882_v17 = vpop.f32.mrb[13].mxu1  ;;  %v6862_v18 = vpop.f32.mrb[14].mxu0  ;;  %v7695_v13 = vld [vmem:[%s9439_s2 + $0xb0] sm:$0xff]   ;;  %v7697_v15 = vld [vmem:[%s9439_s2 + $0xb8] sm:$0xff]  }
 0x15a   :  { %v6883_v19 = vadd.f32 %v6882_v17, %v6881_v14  ;;  %v6884_v20 = vpop.f32.mrb[14].mxu1  ;;  %v6863_v21 = vpop.f32.mrb[15].mxu0  ;;  %v7696_v14 = vld [vmem:[%s9439_s2 + $0x98] sm:$0xff]   ;;  %v7699_v17 = vld [vmem:[%s9439_s2 + $0xe0] sm:$0xff]  }
 0x15b   :  { %v6864_v22 = vadd.f32 %v6863_v21, %v6862_v18  ;;  %v6885_v23 = vpop.f32.mrb[15].mxu1  ;;  %v7700_v18 = vld [vmem:[%s9439_s2 + $0xc8] sm:$0xff]   ;;  %v7703_v21 = vld [vmem:[%s9439_s2 + $0xf0] sm:$0xff]  }
 0x15c   :  { %v1580_v24 = vpack.c.bf16 %v6883_v19, %v6861_v16  ;;  %v6886_v25 = vadd.f32 %v6885_v23, %v6884_v20  ;;  %v7698_v16 = vld [vmem:[%s9439_s2 + $0xc0] sm:$0xff]   ;;  %v7701_v19 = vld [vmem:[%s9439_s2 + $0xe8] sm:$0xff]   ;;  %v7702_v20 = vld [vmem:[%s9439_s2 + $0xd0] sm:$0xff]  }
 0x15d   :  { %v7705_v23 = vld [vmem:[%s9439_s2 + $0xf8] sm:$0xff]  }
 0x15e   :  { %v1633_v26 = vpack.c.bf16 %v6886_v25, %v6864_v22  ;;  %7134 = vmatpush3.bf16.msra.mxu1 %v1580_v24  ;;  %v7704_v22 = vld [vmem:[%s9439_s2 + $0xd8] sm:$0xff]   ;;  %v7706_v24 = vld [vmem:[%s9439_s2 + $0x100] sm:$0xff]   ;;  %v7707_v25 = vld [vmem:[%s9439_s2 + $0x108] sm:$0xff]  }
 0x15f   :  { %7135 = vmatprep.subr.bf16.mxu1 %v7849_v7 }
 0x177   :  { %v6903_v27 = vpop.f32.mrb[16].mxu0 }
 0x178   :  { %v6904_v28 = vpop.f32.mrb[17].mxu0 }
 0x179   :  { %v6905_v30 = vadd.f32 %v6904_v28, %v6903_v27  ;;  %v6906_v31 = vpop.f32.mrb[18].mxu0  ;;  %v7709_v27 = vld [vmem:[%s9439_s2 + $0x118] sm:$0xff]   ;;  %v1694_v28 = vld [vmem:[%s9438_s8 + $0x10] sm:$0xff] }
 0x17a   :  { %v6907_v36 = vpop.f32.mrb[19].mxu0  ;;  %2476 = vperm.xlu1 %7521, %v1694_v28  }
 0x17b   :  { %v1581_v37 = vpack.c.bf16 %v6905_v30, %v6905_v30  ;;  %v6908_v38 = vadd.f32 %v6907_v36, %v6906_v31  ;;  %v1695_v30 = vld [vmem:[%s9438_s8 + $0x18] sm:$0xff]  ;;  %v1697_v31 = vld [vmem:[%s9438_s8 + $0x28] sm:$0xff] }
 0x17c   :  { %v2507_v36 = vld [vmem:[%s9438_s8 + $0x38] sm:$0xff] }
 0x17d   :  { %v1588_v39 = vsel %vm1586_vm1, %v1581_v37, 0  ;;  %v1634_v41 = vpack.c.bf16 %v6908_v38, %v6908_v38  ;;  %v2509_v37 = vld [vmem:[%s9438_s8 + $0x48] sm:$0xff]  ;;  %v2511_v38 = vld [vmem:[%s9438_s8 + $0x58] sm:$0xff] }
 0x17e   :  { %7136 = vmatpush3.bf16.msra.mxu1 %v1588_v39  ;;  %2481 = vperm.xlu1 %7521, %v1695_v30   ;;  %v2513_v39 = vld [vmem:[%s9438_s8 + $0x68] sm:$0xff]  ;;  %v7710_v30 = vld [vmem:[%s9437_s7 + $0x18] ss:$12 sps:$4 sm:$0xff]  }
 0x17f   :  { %7141 = vmatprep.subr.bf16.mxu1 %v7849_v7  ;;  %v1636_v29 = vsel %vm1586_vm1, %v1634_v41, 0  ;;  %v3247_v41 = vld [vmem:[%s9438_s8 + $0x88] sm:$0xff] }
 0x181   :  { %7138 = vmatmul.mubr.msk.bf16.vlgmr.msra.gmra.mrb[16].mxu1 %vm1582_vm2, %v35_v40 }
 0x182   :  { %7142 = vmatpush3.bf16.msra.mxu1 %v1630_v35  ;;  %7151 = vmatprep.mubr.msk.bf16.mxu1 %vm7850_vm0, %v7849_v7  ;;  %v7675_v35 = vld [vmem:[%s9439_s2 + $0x20] sm:$0xff]  }
 0x183   :  { %7143 = vmatprep.subr.bf16.mxu1 %v7849_v7  ;;  %2491 = vperm.xlu1 %7521, %v1697_v31  }
 0x186   :  { %7144 = vmatpush3.bf16.msra.mxu1 %v1631_v52  ;;  %v1681_v52 = vpop.permute.xlu0 %1680 }
 0x187   :  { %7145 = vmatprep.subr.bf16.mxu1 %v7849_v7  ;;  %3191 = vperm.xlu1 %7521, %v2507_v36   ;;  %v7711_v36 = vld [vmem:[%s9440_s3] sm:$0xff]  }
 0x18a   :  { %7146 = vmatpush3.bf16.msra.mxu1 %v1632_v12  ;;  %v1686_v54 = vpop.permute.xlu0 %1685  ;;  %v7694_v12 = vld [vmem:[%s9439_s2 + $0x90] sm:$0xff]  }
 0x18b   :  { %7147 = vmatprep.subr.bf16.mxu1 %v7849_v7  ;;  %3201 = vperm.xlu1 %7521, %v2509_v37   ;;  %v7712_v37 = vld [vmem:[%s9440_s3 + $0x18] sm:$0xff]  }
 0x18e   :  { %7148 = vmatpush3.bf16.msra.mxu1 %v1633_v26  ;;  %v7708_v26 = vld [vmem:[%s9439_s2 + $0x110] sm:$0xff]  }
 0x18f   :  { %7149 = vmatprep.subr.bf16.mxu1 %v7849_v7  ;;  %3211 = vperm.xlu1 %7521, %v2511_v38   ;;  %v7713_v38 = vld [vmem:[%s9440_s3 + $0x8] sm:$0xff]  }
 0x192   :  { %7150 = vmatpush3.bf16.msra.mxu1 %v1636_v29  ;;  %v4148_v29 = vld [vmem:[%s9438_s8 + $0x98] sm:$0xff] }
 0x193   :  { %7167 = vmatprep.subr.bf16.mxu1 %v7849_v7  ;;  %3221 = vperm.xlu1 %7521, %v2513_v39   ;;  %v7714_v39 = vld [vmem:[%s9440_s3 + $0x28] sm:$0xff]  }
 0x195   :  { %7152 = vmatmul.mubr.msk.bf16.vlgmr.msra.gmra.mrb[20].mxu1 %vm1582_vm2, %v35_v40  ;;  %v3245_v40 = vld [vmem:[%s9438_s8 + $0x78] sm:$0xff] }
 0x196   :  { %7175 = vmatprep.mubr.msk.bf16.mxu1 %vm7850_vm0, %v7849_v7  ;;  %7168 = vmatpush3.bf16.msra.mxu1 %v7675_v35 }
 0x197   :  { %7169 = vmatprep.subr.bf16.mxu1 %v7849_v7  ;;  %4121 = vperm.xlu1 %7521, %v3245_v40  }
 0x19a   :  { %7170 = vmatpush3.bf16.msra.mxu1 %v7677_v43 }
 0x19b   :  { %7171 = vmatprep.subr.bf16.mxu1 %v7849_v7  ;;  %4131 = vperm.xlu1 %7521, %v3247_v41  }
 0x19e   :  { %7172 = vmatpush3.bf16.msra.mxu1 %v7679_v45 }
 0x19f   :  { %7173 = vmatprep.subr.bf16.mxu1 %v7849_v7  ;;  %4792 = vperm.xlu1 %7521, %v4148_v29  }
 0x1a2   :  { %7174 = vmatpush3.bf16.msra.mxu1 %v7681_v47 }
 0x1a3   :  { %7191 = vmatprep.subr.bf16.mxu1 %v7849_v7  ;;  %5759 = vperm.xlu1 %7521, %v4803_v34   ;;  %v2487_v34 = vpop.permute.xlu0 %2486 }
 0x1f9   :  { %v2477_v40 = vpop.permute.xlu1 %2476 }
 0x1fd   :  { %v2482_v41 = vpop.permute.xlu1 %2481 }
 0x254   :  { %v1624_v48 = vpop.f32.mrb[16].mxu1 }
 0x255   :  { %v7139_v49 = vpop.f32.mrb[17].mxu1  ;;  %v8483_v53 = vadd.f32 %v1681_v52, %v1624_v48 }
 0x256   :  { %v1627_v50 = vpop.f32.mrb[18].mxu1 }
 0x257   :  { %v7140_v51 = vpop.f32.mrb[19].mxu1  ;;  %v9445_v59 = vmax.f32 %v8483_v53, 0.0 }
 0x268   :  { %v1672_v55 = vpop.f32.mrb[20].mxu1 }
 0x269   :  { %v8485_v56 = vadd.f32 %v1686_v54, %v1672_v55  ;;  %v7153_v57 = vpop.f32.mrb[21].mxu1 }
 0x26a   :  { %v1675_v58 = vpop.f32.mrb[22].mxu1 }
 0x26b   :  { %v9446_v60 = vmax.f32 %v8485_v56, 0.0  ;;  %v7154_v61 = vpop.f32.mrb[23].mxu1 }
 0x26d   :  { %v8499_v0 = vpack.c.bf16 %v9446_v60, %v9445_v59 }
 0x26f   :  { %7164 = vmatmul.mubr.msk.bf16.vlgmr.msra.gmra.mrb[20].mxu0 %vm1731_vm3, %v8499_v0  ;;  %7176 = vmatmul.mubr.msk.bf16.vlgmr.msra.gmra.mrb[24].mxu1 %vm1731_vm3, %v8499_v0 }
 0x270   :  { %7180 = vmatpush3.bf16.msra.mxu0 %v7682_v62  ;;  %7192 = vmatpush3.bf16.msra.mxu1 %v7683_v63 }
 0x271   :  { %7181 = vmatprep.subr.bf16.mxu0 %v7849_v7  ;;  %7193 = vmatprep.subr.bf16.mxu1 %v7849_v7 }
 0x272   :  { %7187 = vmatprep.mubr.msk.bf16.mxu0 %vm7850_vm0, %v7849_v7  ;;  %7199 = vmatprep.mubr.msk.bf16.mxu1 %vm7850_vm0, %v7849_v7 }
 0x274   :  { %7182 = vmatpush3.bf16.msra.mxu0 %v7684_v1  ;;  %7194 = vmatpush3.bf16.msra.mxu1 %v7685_v2 }
 0x275   :  { %7183 = vmatprep.subr.bf16.mxu0 %v7849_v7  ;;  %7195 = vmatprep.subr.bf16.mxu1 %v7849_v7 }
 0x278   :  { %7184 = vmatpush3.bf16.msra.mxu0 %v7686_v3  ;;  %7196 = vmatpush3.bf16.msra.mxu1 %v7687_v4 }
 0x279   :  { %7185 = vmatprep.subr.bf16.mxu0 %v7849_v7  ;;  %7197 = vmatprep.subr.bf16.mxu1 %v7849_v7 }
 0x27c   :  { %7186 = vmatpush3.bf16.msra.mxu0 %v7688_v5  ;;  %7198 = vmatpush3.bf16.msra.mxu1 %v7689_v6 }
 0x27d   :  { %7203 = vmatprep.subr.bf16.mxu0 %v7849_v7  ;;  %7215 = vmatprep.subr.bf16.mxu1 %v7849_v7 }
 0x27f   :  { %7188 = vmatmul.mubr.msk.bf16.vlgmr.msra.gmra.mrb[24].mxu0 %vm1731_vm3, %v8499_v0  ;;  %7200 = vmatmul.mubr.msk.bf16.vlgmr.msra.gmra.mrb[28].mxu1 %vm1731_vm3, %v8499_v0 }
 0x280   :  { %7204 = vmatpush3.bf16.msra.mxu0 %v7690_v8  ;;  %7216 = vmatpush3.bf16.msra.mxu1 %v7691_v9 }
 0x281   :  { %7205 = vmatprep.subr.bf16.mxu0 %v7849_v7  ;;  %7217 = vmatprep.subr.bf16.mxu1 %v7849_v7 }
 0x282   :  { %7211 = vmatprep.mubr.msk.bf16.mxu0 %vm7850_vm0, %v7849_v7  ;;  %7223 = vmatprep.mubr.msk.bf16.mxu1 %vm7850_vm0, %v7849_v7 }
 0x284   :  { %7206 = vmatpush3.bf16.msra.mxu0 %v7692_v10  ;;  %7218 = vmatpush3.bf16.msra.mxu1 %v7693_v11 }
 0x285   :  { %7207 = vmatprep.subr.bf16.mxu0 %v7849_v7  ;;  %7219 = vmatprep.subr.bf16.mxu1 %v7849_v7 }
 0x288   :  { %7208 = vmatpush3.bf16.msra.mxu0 %v7694_v12  ;;  %7220 = vmatpush3.bf16.msra.mxu1 %v7695_v13 }
 0x289   :  { %7209 = vmatprep.subr.bf16.mxu0 %v7849_v7  ;;  %7221 = vmatprep.subr.bf16.mxu1 %v7849_v7 }
 0x28c   :  { %7210 = vmatpush3.bf16.msra.mxu0 %v7696_v14  ;;  %7222 = vmatpush3.bf16.msra.mxu1 %v7697_v15 }
 0x28d   :  { %7227 = vmatprep.subr.bf16.mxu0 %v7849_v7  ;;  %7239 = vmatprep.subr.bf16.mxu1 %v7849_v7 }
 0x28f   :  { %7212 = vmatmul.mubr.msk.bf16.vlgmr.msra.gmra.mrb[28].mxu0 %vm1731_vm3, %v8499_v0  ;;  %7224 = vmatmul.mubr.msk.bf16.vlgmr.msra.gmra.mrb[32].mxu1 %vm1731_vm3, %v8499_v0 }
 0x290   :  { %7228 = vmatpush3.bf16.msra.mxu0 %v7698_v16  ;;  %7240 = vmatpush3.bf16.msra.mxu1 %v7699_v17 }
 0x291   :  { %7229 = vmatprep.subr.bf16.mxu0 %v7849_v7  ;;  %7241 = vmatprep.subr.bf16.mxu1 %v7849_v7 }
 0x292   :  { %7235 = vmatprep.mubr.msk.bf16.mxu0 %vm7850_vm0, %v7849_v7  ;;  %7247 = vmatprep.mubr.msk.bf16.mxu1 %vm7850_vm0, %v7849_v7 }
 0x294   :  { %7230 = vmatpush3.bf16.msra.mxu0 %v7700_v18  ;;  %7242 = vmatpush3.bf16.msra.mxu1 %v7701_v19 }
 0x295   :  { %7231 = vmatprep.subr.bf16.mxu0 %v7849_v7  ;;  %7243 = vmatprep.subr.bf16.mxu1 %v7849_v7 }
 0x298   :  { %7232 = vmatpush3.bf16.msra.mxu0 %v7702_v20  ;;  %7244 = vmatpush3.bf16.msra.mxu1 %v7703_v21 }
 0x299   :  { %7233 = vmatprep.subr.bf16.mxu0 %v7849_v7  ;;  %7245 = vmatprep.subr.bf16.mxu1 %v7849_v7 }
 0x29c   :  { %7234 = vmatpush3.bf16.msra.mxu0 %v7704_v22  ;;  %7246 = vmatpush3.bf16.msra.mxu1 %v7705_v23 }
 0x29d   :  { %7251 = vmatprep.subr.bf16.mxu0 %v7849_v7  ;;  %7263 = vmatprep.subr.bf16.mxu1 %v7849_v7 }
 0x29f   :  { %7236 = vmatmul.mubr.msk.bf16.vlgmr.msra.gmra.mrb[32].mxu0 %vm1731_vm3, %v8499_v0  ;;  %7248 = vmatmul.mubr.msk.bf16.vlgmr.msra.gmra.mrb[36].mxu1 %vm1731_vm3, %v8499_v0 }
 0x2a0   :  { %7252 = vmatpush3.bf16.msra.mxu0 %v7706_v24  ;;  %7259 = vmatprep.mubr.msk.bf16.mxu0 %vm7850_vm0, %v7849_v7 }
 0x2a1   :  { %7253 = vmatprep.subr.bf16.mxu0 %v7849_v7  ;;  %7273 = vmatprep.mubr.msk.bf16.mxu1 %vm7850_vm0, %v7849_v7 }
 0x2a4   :  { %7254 = vmatpush3.bf16.msra.mxu0 %v7707_v25 }
 0x2a5   :  { %7255 = vmatprep.subr.bf16.mxu0 %v7849_v7 }
 0x2a8   :  { %7256 = vmatpush3.bf16.msra.mxu0 %v7708_v26 }
 0x2a9   :  { %7257 = vmatprep.subr.bf16.mxu0 %v7849_v7 }
 0x2ac   :  { %7258 = vmatpush3.bf16.msra.mxu0 %v7709_v27 }
 0x2ad   :  { %7277 = vmatprep.subr.bf16.mxu0 %v7849_v7 }
 0x2af   :  { %7260 = vmatmul.mubr.msk.bf16.vlgmr.msra.gmra.mrb[36].mxu0 %vm1731_vm3, %v8499_v0 }
 0x2b0   :  { %7287 = vmatprep.mubr.msk.bf16.mxu0 %vm7850_vm0, %v7849_v7 }
 0x342   :  { %v1769_v35 = vpop.f32.mrb[20].mxu0  ;;  %v1843_v42 = vpop.f32.mrb[24].mxu1 }
 0x343   :  { %v2368_v43 = vpack.c.bf16 %v1843_v42, %v1769_v35  ;;  %v7165_v44 = vpop.f32.mrb[21].mxu0  ;;  %v7177_v45 = vpop.f32.mrb[25].mxu1 }
 0x344   :  { %v1772_v46 = vpop.f32.mrb[22].mxu0  ;;  %v1846_v47 = vpop.f32.mrb[26].mxu1 }
 0x345   :  { %v2425_v48 = vpack.c.bf16 %v1846_v47, %v1772_v46  ;;  %v7166_v49 = vpop.f32.mrb[23].mxu0  ;;  %v7178_v50 = vpop.f32.mrb[27].mxu1  ;;  %7264 = vmatpush3.bf16.msra.mxu1 %v2368_v43 }
 0x346   :  { %7265 = vmatprep.subr.bf16.mxu1 %v7849_v7  ;;  %v2492_v49 = vpop.permute.xlu1 %2491 }
 0x347   :  { %7278 = vmatpush3.bf16.msra.mxu0 %v2425_v48 }
 0x348   :  { %7279 = vmatprep.subr.bf16.mxu0 %v7849_v7 }
 0x352   :  { %v1917_v51 = vpop.f32.mrb[24].mxu0  ;;  %v1991_v52 = vpop.f32.mrb[28].mxu1 }
 0x353   :  { %v2369_v54 = vpack.c.bf16 %v1991_v52, %v1917_v51  ;;  %v7189_v55 = vpop.f32.mrb[25].mxu0  ;;  %v7201_v57 = vpop.f32.mrb[29].mxu1 }
 0x354   :  { %v1920_v58 = vpop.f32.mrb[26].mxu0  ;;  %v1994_v61 = vpop.f32.mrb[30].mxu1 }
 0x355   :  { %v2426_v62 = vpack.c.bf16 %v1994_v61, %v1920_v58  ;;  %v7190_v63 = vpop.f32.mrb[27].mxu0  ;;  %v7202_v0 = vpop.f32.mrb[31].mxu1  ;;  %7266 = vmatpush3.bf16.msra.mxu1 %v2369_v54 }
 0x356   :  { %7267 = vmatprep.subr.bf16.mxu1 %v7849_v7  ;;  %v7715_v63 = vld [vmem:[%s9440_s3 + $0x10] sm:$0xff]   ;;  %v7716_v0 = vld [vmem:[%s9440_s3 + $0x38] sm:$0xff]  }
 0x357   :  { %7280 = vmatpush3.bf16.msra.mxu0 %v2426_v62 }
 0x358   :  { %7281 = vmatprep.subr.bf16.mxu0 %v7849_v7 }
 0x362   :  { %v2065_v1 = vpop.f32.mrb[28].mxu0  ;;  %v2139_v2 = vpop.f32.mrb[32].mxu1 }
 0x363   :  { %v2370_v3 = vpack.c.bf16 %v2139_v2, %v2065_v1  ;;  %v7213_v4 = vpop.f32.mrb[29].mxu0  ;;  %v7225_v5 = vpop.f32.mrb[33].mxu1  ;;  %v7717_v1 = vld [vmem:[%s9440_s3 + $0x20] sm:$0xff]   ;;  %v7718_v2 = vld [vmem:[%s9440_s3 + $0x30] sm:$0xff]  }
 0x364   :  { %v2068_v6 = vpop.f32.mrb[30].mxu0  ;;  %v2142_v8 = vpop.f32.mrb[34].mxu1  ;;  %v7720_v4 = vld [vmem:[%s9437_s7 + $0x34] ss:$12 sps:$4 sm:$0xff]  }
 0x365   :  { %v2427_v9 = vpack.c.bf16 %v2142_v8, %v2068_v6  ;;  %v7214_v10 = vpop.f32.mrb[31].mxu0  ;;  %v7226_v11 = vpop.f32.mrb[35].mxu1  ;;  %7268 = vmatpush3.bf16.msra.mxu1 %v2370_v3  ;;  %v7719_v3 = vld [vmem:[%s9440_s3 + $0x40] sm:$0xff]  }
 0x366   :  { %7269 = vmatprep.subr.bf16.mxu1 %v7849_v7 }
 0x367   :  { %7282 = vmatpush3.bf16.msra.mxu0 %v2427_v9 }
 0x368   :  { %7283 = vmatprep.subr.bf16.mxu0 %v7849_v7 }
 0x372   :  { %v2213_v12 = vpop.f32.mrb[32].mxu0  ;;  %v2287_v13 = vpop.f32.mrb[36].mxu1 }
 0x373   :  { %v2371_v14 = vpack.c.bf16 %v2287_v13, %v2213_v12  ;;  %v7237_v15 = vpop.f32.mrb[33].mxu0  ;;  %v7249_v16 = vpop.f32.mrb[37].mxu1 }
 0x374   :  { %v2216_v17 = vpop.f32.mrb[34].mxu0  ;;  %v2290_v18 = vpop.f32.mrb[38].mxu1 }
 0x375   :  { %v2428_v19 = vpack.c.bf16 %v2290_v18, %v2216_v17  ;;  %v7238_v20 = vpop.f32.mrb[35].mxu0  ;;  %v7250_v21 = vpop.f32.mrb[39].mxu1  ;;  %7270 = vmatpush3.bf16.msra.mxu1 %v2371_v14 }
 0x376   :  { %7271 = vmatprep.subr.bf16.mxu1 %v7849_v7 }
 0x377   :  { %7284 = vmatpush3.bf16.msra.mxu0 %v2428_v19 }
 0x378   :  { %7285 = vmatprep.subr.bf16.mxu0 %v7849_v7 }
 0x382   :  { %v2361_v22 = vpop.f32.mrb[36].mxu0 }
 0x383   :  { %v2372_v23 = vpack.c.bf16 %v2361_v22, %v2361_v22  ;;  %v7261_v24 = vpop.f32.mrb[37].mxu0 }
 0x384   :  { %v2364_v25 = vpop.f32.mrb[38].mxu0 }
 0x385   :  { %v2382_v26 = vsel %vm1586_vm1, %v2372_v23, 0  ;;  %v2429_v27 = vpack.c.bf16 %v2364_v25, %v2364_v25  ;;  %v7262_v28 = vpop.f32.mrb[39].mxu0 }
 0x386   :  { %7272 = vmatpush3.bf16.msra.mxu1 %v2382_v26 }
 0x387   :  { %v2431_v31 = vsel %vm1586_vm1, %v2429_v27, 0  ;;  %7291 = vmatprep.subr.bf16.mxu1 %v7711_v36 }
 0x388   :  { %7286 = vmatpush3.bf16.msra.mxu0 %v2431_v31 }
 0x389   :  { %7274 = vmatmul.mubr.msk.bf16.vlgmr.msra.gmra.mrb[40].mxu1 %vm1582_vm2, %v7710_v30  ;;  %7309 = vmatprep.subr.bf16.mxu0 %v7712_v37 }
 0x38a   :  { %7292 = vmatpush3.bf16.msra.mxu1 %v7711_v36 }
 0x38b   :  { %7288 = vmatmul.mubr.msk.bf16.vlgmr.msra.gmra.mrb[40].mxu0 %vm1582_vm2, %v7710_v30  ;;  %7297 = vmatprep.subr.bf16.mxu1 %v7713_v38 }
 0x38c   :  { %7310 = vmatpush3.bf16.msra.mxu0 %v7712_v37 }
 0x38d   :  { %7321 = vmatprep.subr.bf16.mxu0 %v7714_v39 }
 0x45c   :  { %v2418_v29 = vpop.f32.mrb[40].mxu1 }
 0x45d   :  { %v8703_v35 = vadd.f32 %v2477_v40, %v2418_v29  ;;  %v7275_v42 = vpop.f32.mrb[41].mxu1 }
 0x45e   :  { %v2421_v43 = vpop.f32.mrb[42].mxu1  ;;  %v2467_v44 = vpop.f32.mrb[40].mxu0 }
 0x45f   :  { %v8705_v45 = vadd.f32 %v2482_v41, %v2421_v43  ;;  %v8707_v46 = vadd.f32 %v2487_v34, %v2467_v44  ;;  %v7276_v47 = vpop.f32.mrb[43].mxu1  ;;  %v7289_v48 = vpop.f32.mrb[41].mxu0  ;;  %v9452_v51 = vmax.f32 %v8703_v35, 0.0 }
 0x460   :  { %v2470_v50 = vpop.f32.mrb[42].mxu0 }
 0x461   :  { %v9451_v52 = vmax.f32 %v8705_v45, 0.0  ;;  %v8711_v54 = vadd.f32 %v2492_v49, %v2470_v50  ;;  %v7290_v55 = vpop.f32.mrb[43].mxu0  ;;  %v9450_v58 = vmax.f32 %v8707_v46, 0.0 }
 0x463   :  { %v2514_v57 = vpack.c.bf16 %v9451_v52, %v9452_v51  ;;  %v9449_v61 = vmax.f32 %v8711_v54, 0.0 }
 0x465   :  { %v2515_v62 = vpack.c.bf16 %v9449_v61, %v9450_v58  ;;  %7293 = vmatprep.mubr.msk.bf16.mxu1 %vm2524_vm4, %v2514_v57  ;;  %7311 = vmatprep.mubr.msk.bf16.mxu0 %vm2524_vm4, %v2514_v57 }
 0x467   :  { %7294 = vmatmul.mubr.msk.bf16.vlgmr.msra.gmra.mrb[44].mxu1 %vm2524_vm4, %v2515_v62  ;;  %7312 = vmatmul.mubr.msk.bf16.vlgmr.msra.gmra.mrb[44].mxu0 %vm2524_vm4, %v2515_v62 }
 0x468   :  { %7299 = vmatprep.mubr.msk.bf16.mxu1 %vm2524_vm4, %v2514_v57  ;;  %7323 = vmatprep.mubr.msk.bf16.mxu0 %vm2524_vm4, %v2514_v57 }
 0x469   :  { %7298 = vmatpush3.bf16.msra.mxu1 %v7713_v38  ;;  %7322 = vmatpush3.bf16.msra.mxu0 %v7714_v39 }
 0x46a   :  { %7303 = vmatprep.subr.bf16.mxu1 %v7715_v63  ;;  %7333 = vmatprep.subr.bf16.mxu0 %v7716_v0 }
 0x46f   :  { %7300 = vmatmul.mubr.msk.bf16.vlgmr.msra.gmra.mrb[48].mxu1 %vm2524_vm4, %v2515_v62  ;;  %7324 = vmatmul.mubr.msk.bf16.vlgmr.msra.gmra.mrb[48].mxu0 %vm2524_vm4, %v2515_v62 }
 0x470   :  { %7305 = vmatprep.mubr.msk.bf16.mxu1 %vm2524_vm4, %v2514_v57  ;;  %7335 = vmatprep.mubr.msk.bf16.mxu0 %vm2524_vm4, %v2514_v57 }
 0x471   :  { %7304 = vmatpush3.bf16.msra.mxu1 %v7715_v63  ;;  %7334 = vmatpush3.bf16.msra.mxu0 %v7716_v0 }
 0x472   :  { %7315 = vmatprep.subr.bf16.mxu1 %v7717_v1  ;;  %3077 = vmatprep.subr.bf16.mxu0 %v9447_v33 }
 0x477   :  { %7306 = vmatmul.mubr.msk.bf16.vlgmr.msra.gmra.mrb[52].mxu1 %vm2524_vm4, %v2515_v62  ;;  %7336 = vmatmul.mubr.msk.bf16.vlgmr.msra.gmra.mrb[52].mxu0 %vm2524_vm4, %v2515_v62 }
 0x478   :  { %7317 = vmatprep.mubr.msk.bf16.mxu1 %vm2524_vm4, %v2514_v57  ;;  %7316 = vmatpush3.bf16.msra.mxu1 %v7717_v1 }
 0x479   :  { %7327 = vmatprep.subr.bf16.mxu1 %v7718_v2  ;;  %6462 = vmatprep.mubr.msk.bf16.mxu0 %vm2524_vm4, %v7720_v4 }
 0x47f   :  { %7318 = vmatmul.mubr.msk.bf16.vlgmr.msra.gmra.mrb[56].mxu1 %vm2524_vm4, %v2515_v62 }
 0x480   :  { %7329 = vmatprep.mubr.msk.bf16.mxu1 %vm2524_vm4, %v2514_v57  ;;  %7328 = vmatpush3.bf16.msra.mxu1 %v7718_v2 }
 0x481   :  { %7339 = vmatprep.subr.bf16.mxu1 %v7719_v3 }
 0x487   :  { %7330 = vmatmul.mubr.msk.bf16.vlgmr.msra.gmra.mrb[60].mxu1 %vm2524_vm4, %v2515_v62 }
 0x488   :  { %7341 = vmatprep.mubr.msk.bf16.mxu1 %vm2524_vm4, %v2514_v57  ;;  %7340 = vmatpush3.bf16.msra.mxu1 %v7719_v3 }
 0x489   :  { %3135 = vmatprep.subr.bf16.mxu1 %v9447_v33 }
 0x48f   :  { %7342 = vmatmul.mubr.msk.bf16.vlgmr.msra.gmra.mrb[64].mxu1 %vm2524_vm4, %v2515_v62 }
 0x490   :  { %6464 = vmatprep.mubr.msk.bf16.mxu1 %vm2524_vm4, %v7720_v4 }
 0x53a   :  { %v7295_v5 = vpop.f32.mrb[44].mxu1  ;;  %v7313_v6 = vpop.f32.mrb[44].mxu0 }
 0x53b   :  { %v2565_v8 = vpop.f32.mrb[45].mxu1  ;;  %v2739_v9 = vpop.f32.mrb[45].mxu0 }
 0x53c   :  { %v7296_v10 = vpop.f32.mrb[46].mxu1  ;;  %v7314_v11 = vpop.f32.mrb[46].mxu0 }
 0x53d   :  { %v3126_v12 = vpack.c.bf16 %v7296_v10, %v7295_v5  ;;  %v3129_v13 = vpack.c.bf16 %v7314_v11, %v7313_v6  ;;  %v2568_v14 = vpop.f32.mrb[47].mxu1  ;;  %v2742_v15 = vpop.f32.mrb[47].mxu0  ;;  %v7722_v11 = vld [vmem:[%s9437_s7 + $0x30] ss:$12 sps:$4 sm:$0xff]  }
 0x53e   :  { %v3044_v16 = vpack.c.bf16 %v2568_v14, %v2565_v8  ;;  %v3047_v17 = vpack.c.bf16 %v2742_v15, %v2739_v9  ;;  %v3252_v14 = vld [vmem:[%s9441_s4] sm:$0x3]  ;;  %v6470_v15 = vld [vmem:[%s9441_s4 + $0x2] sm:$0x3] }
 0x53f   :  { %3136 = vmatpush1.bf16.msra.mxu1 %v3126_v12  ;;  %v7723_v12 = vld [vmem:[%s9437_s7 + $0x4c] ss:$12 sps:$4 sm:$0xff]  }
 0x540   :  { %3078 = vmatpush1.bf16.msra.mxu0 %v3044_v16  ;;  %3137 = vmatprep.subr.bf16.mxu1 %v9447_v33  ;;  %v3268_v16 = vsel %vm3266_vm5, %v3252_v14, 0 }
 0x541   :  { %3079 = vmatprep.subr.bf16.mxu0 %v9447_v33 }
 0x542   :  { %v7301_v18 = vpop.f32.mrb[48].mxu1  ;;  %v7325_v19 = vpop.f32.mrb[48].mxu0 }
 0x543   :  { %v2623_v20 = vpop.f32.mrb[49].mxu1  ;;  %v2855_v21 = vpop.f32.mrb[49].mxu0 }
 0x544   :  { %v7302_v22 = vpop.f32.mrb[50].mxu1  ;;  %v7326_v23 = vpop.f32.mrb[50].mxu0 }
 0x545   :  { %v3127_v24 = vpack.c.bf16 %v7302_v22, %v7301_v18  ;;  %v3131_v25 = vpack.c.bf16 %v7326_v23, %v7325_v19  ;;  %v2626_v26 = vpop.f32.mrb[51].mxu1  ;;  %v2858_v27 = vpop.f32.mrb[51].mxu0  ;;  %v6475_v18 = vld [vmem:[%s9441_s4 + $0x4] sm:$0x3]  ;;  %v6480_v19 = vld [vmem:[%s9441_s4 + $0x6] sm:$0x3] }
 0x546   :  { %v3045_v28 = vpack.c.bf16 %v2626_v26, %v2623_v20  ;;  %v3049_v30 = vpack.c.bf16 %v2858_v27, %v2855_v21  ;;  %v3187_v20 = vpop.permute.xlu0 %3186  ;;  %v3192_v21 = vpop.permute.xlu1 %3191 }
 0x547   :  { %3138 = vmatpush1.bf16.msra.mxu1 %v3127_v24 }
 0x548   :  { %3080 = vmatpush1.bf16.msra.mxu0 %v3045_v28  ;;  %3139 = vmatprep.subr.bf16.mxu1 %v9447_v33 }
 0x549   :  { %3081 = vmatprep.subr.bf16.mxu0 %v9447_v33 }
 0x54a   :  { %v7307_v31 = vpop.f32.mrb[52].mxu1  ;;  %v7337_v36 = vpop.f32.mrb[52].mxu0 }
 0x54b   :  { %v2681_v37 = vpop.f32.mrb[53].mxu1  ;;  %v2971_v38 = vpop.f32.mrb[53].mxu0 }
 0x54c   :  { %v7308_v39 = vpop.f32.mrb[54].mxu1  ;;  %v7338_v40 = vpop.f32.mrb[54].mxu0 }
 0x54d   :  { %v3128_v41 = vpack.c.bf16 %v7308_v39, %v7307_v31  ;;  %v3133_v29 = vpack.c.bf16 %v7338_v40, %v7337_v36  ;;  %v2684_v34 = vpop.f32.mrb[55].mxu1  ;;  %v2974_v42 = vpop.f32.mrb[55].mxu0 }
 0x54e   :  { %v3046_v43 = vpack.c.bf16 %v2684_v34, %v2681_v37  ;;  %v3051_v44 = vpack.c.bf16 %v2974_v42, %v2971_v38  ;;  %v3197_v22 = vpop.permute.xlu0 %3196  ;;  %v3202_v23 = vpop.permute.xlu1 %3201 }
 0x54f   :  { %3140 = vmatpush1.bf16.msra.mxu1 %v3128_v41 }
 0x550   :  { %3082 = vmatpush1.bf16.msra.mxu0 %v3046_v43  ;;  %3141 = vmatprep.subr.bf16.mxu1 %v9447_v33 }
 0x551   :  { %3083 = vmatprep.subr.bf16.mxu0 %v9447_v33 }
 0x552   :  { %v7319_v47 = vpop.f32.mrb[56].mxu1  ;;  %v3207_v24 = vpop.permute.xlu0 %3206 }
 0x553   :  { %v2797_v48 = vpop.f32.mrb[57].mxu1  ;;  %3142 = vmatpush1.bf16.msra.mxu1 %v3129_v13  ;;  %v7725_v13 = vld [vmem:[%s9437_s7 + $0x48] ss:$12 sps:$4 sm:$0xff]  }
 0x554   :  { %v7320_v49 = vpop.f32.mrb[58].mxu1  ;;  %3084 = vmatpush1.bf16.msra.mxu0 %v3047_v17  ;;  %3143 = vmatprep.subr.bf16.mxu1 %v9447_v33  ;;  %v3338_v17 = vsel %vm3266_vm5, %v6470_v15, 0 }
 0x555   :  { %v3130_v50 = vpack.c.bf16 %v7320_v49, %v7319_v47  ;;  %v2800_v55 = vpop.f32.mrb[59].mxu1  ;;  %3085 = vmatprep.subr.bf16.mxu0 %v9447_v33 }
 0x556   :  { %v3048_v57 = vpack.c.bf16 %v2800_v55, %v2797_v48  ;;  %v3217_v47 = vpop.permute.xlu0 %3216 }
 0x557   :  { %3144 = vmatpush1.bf16.msra.mxu1 %v3130_v50 }
 0x558   :  { %3086 = vmatpush1.bf16.msra.mxu0 %v3048_v57  ;;  %3145 = vmatprep.subr.bf16.mxu1 %v9447_v33 }
 0x559   :  { %3087 = vmatprep.subr.bf16.mxu0 %v9447_v33 }
 0x55a   :  { %v7331_v62 = vpop.f32.mrb[60].mxu1 }
 0x55b   :  { %v2913_v63 = vpop.f32.mrb[61].mxu1  ;;  %3146 = vmatpush1.bf16.msra.mxu1 %v3131_v25  ;;  %v3212_v25 = vpop.permute.xlu1 %3211 }
 0x55c   :  { %v7332_v0 = vpop.f32.mrb[62].mxu1  ;;  %3088 = vmatpush1.bf16.msra.mxu0 %v3049_v30  ;;  %3147 = vmatprep.subr.bf16.mxu1 %v9447_v33 }
 0x55d   :  { %v3132_v1 = vpack.c.bf16 %v7332_v0, %v7331_v62  ;;  %v2916_v2 = vpop.f32.mrb[63].mxu1  ;;  %3089 = vmatprep.subr.bf16.mxu0 %v9447_v33 }
 0x55e   :  { %v3050_v3 = vpack.c.bf16 %v2916_v2, %v2913_v63 }
 0x55f   :  { %3148 = vmatpush1.bf16.msra.mxu1 %v3132_v1  ;;  %v3222_v49 = vpop.permute.xlu1 %3221 }
 0x560   :  { %3090 = vmatpush1.bf16.msra.mxu0 %v3050_v3  ;;  %3149 = vmatprep.subr.bf16.mxu1 %v9447_v33 }
 0x561   :  { %3091 = vmatprep.subr.bf16.mxu0 %v9447_v33 }
 0x562   :  { %v7343_v4 = vpop.f32.mrb[64].mxu1 }
 0x563   :  { %v3029_v5 = vpop.f32.mrb[65].mxu1  ;;  %3150 = vmatpush1.bf16.msra.mxu1 %v3133_v29 }
 0x564   :  { %v7344_v6 = vpop.f32.mrb[66].mxu1  ;;  %3092 = vmatpush1.bf16.msra.mxu0 %v3051_v44  ;;  %3151 = vmatprep.subr.bf16.mxu1 %v9447_v33 }
 0x565   :  { %v3134_v8 = vpack.c.bf16 %v7344_v6, %v7343_v4  ;;  %v3032_v9 = vpop.f32.mrb[67].mxu1  ;;  %3093 = vmatprep.subr.bf16.mxu0 %v9447_v33 }
 0x566   :  { %v3052_v10 = vpack.c.bf16 %v3032_v9, %v3029_v5 }
 0x567   :  { %3152 = vmatpush1.bf16.msra.mxu1 %v3134_v8 }
 0x568   :  { %3094 = vmatpush1.bf16.msra.mxu0 %v3052_v10  ;;  %7506 = vmatprep.subr.msk.bf16.mxu1 %vm3266_vm5, %v6470_v15  ;;  %v3408_v15 = vsel %vm3266_vm5, %v6475_v18, 0 }
 0x569   :  { %7505 = vmatprep.subr.msk.bf16.mxu0 %vm3266_vm5, %v3252_v14 }
 0x56a   :  { %3168 = vmatmul.mubr.bf16.vlgmr.msra.gmra.mrb[68].mxu1 %v7722_v11 }
 0x56b   :  { %3110 = vmatmul.mubr.bf16.vlgmr.msra.gmra.mrb[56].mxu0 %v7722_v11  ;;  %6465 = vmatprep.mubr.msk.bf16.mxu1 %vm2524_vm4, %v7723_v12 }
 0x56c   :  { %6463 = vmatprep.mubr.msk.bf16.mxu0 %vm2524_vm4, %v7723_v12  ;;  %7346 = vmatpush3.bf16.msra.mxu0 %v3268_v16  ;;  %v3478_v16 = vsel %vm3266_vm5, %v6480_v19, 0 }
 0x56d   :  { %7356 = vmatpush3.bf16.msra.mxu1 %v3338_v17  ;;  %7507 = vmatprep.subr.msk.bf16.mxu0 %vm3266_vm5, %v6475_v18  ;;  %v6485_v17 = vld [vmem:[%s9441_s4 + $0x8] sm:$0x3] }
 0x56e   :  { %7508 = vmatprep.subr.msk.bf16.mxu1 %vm3266_vm5, %v6480_v19  ;;  %v3548_v18 = vsel %vm3266_vm5, %v6485_v17, 0 }
 0x572   :  { %3176 = vmatmul.mubr.bf16.gmra.mrb[72].mxu1 %v7725_v13 }
 0x573   :  { %3118 = vmatmul.mubr.bf16.gmra.mrb[60].mxu0 %v7725_v13 }
 0x63d   :  { %v3169_v26 = vpop.f32.mrb[68].mxu1 }
 0x63e   :  { %v3228_v27 = vadd.f32 %v3207_v24, %v3169_v26  ;;  %v3111_v28 = vpop.f32.mrb[56].mxu0  ;;  %v3171_v30 = vpop.f32.mrb[69].mxu1 }
 0x63f   :  { %v3224_v31 = vadd.f32 %v3187_v20, %v3111_v28  ;;  %v3113_v36 = vpop.f32.mrb[57].mxu0  ;;  %v3172_v37 = vpop.f32.mrb[70].mxu1  ;;  %v6490_v20 = vld [vmem:[%s9441_s4 + $0xa] sm:$0x3] }
 0x640   :  { %v3229_v38 = vadd.f32 %v3212_v25, %v3172_v37  ;;  %v3114_v39 = vpop.f32.mrb[58].mxu0  ;;  %v3174_v40 = vpop.f32.mrb[71].mxu1  ;;  %v3236_v34 = vmax.f32 %v3228_v27, 0.0  ;;  %v3618_v19 = vsel %vm3266_vm5, %v6490_v20, 0  ;;  %v6505_v25 = vld [vmem:[%s9441_s4 + $0x10] sm:$0x3] }
 0x641   :  { %v3225_v41 = vadd.f32 %v3192_v21, %v3114_v39  ;;  %v3116_v29 = vpop.f32.mrb[59].mxu0  ;;  %v3232_v43 = vmax.f32 %v3224_v31, 0.0  ;;  %v6495_v21 = vld [vmem:[%s9441_s4 + $0xc] sm:$0x3]  ;;  %v3828_v26 = vsel %vm3266_vm5, %v6505_v25, 0 }
 0x642   :  { %v3237_v42 = vmax.f32 %v3229_v38, 0.0  ;;  %v8899_v27 = vld [vmem:[%s9437_s7 + $0x64] ss:$12 sps:$4 sm:$0xff]  }
 0x643   :  { %v3233_v44 = vmax.f32 %v3225_v41, 0.0 }
 0x644   :  { %v8808_v48 = vpack.c.bf16 %v3237_v42, %v3236_v34 }
 0x645   :  { %v8810_v50 = vpack.c.bf16 %v3233_v44, %v3232_v43  ;;  %v3177_v55 = vpop.f32.mrb[72].mxu1 }
 0x646   :  { %v3230_v57 = vadd.f32 %v3217_v47, %v3177_v55  ;;  %v3119_v62 = vpop.f32.mrb[60].mxu0  ;;  %v3179_v63 = vpop.f32.mrb[73].mxu1 }
 0x647   :  { %v3226_v0 = vadd.f32 %v3197_v22, %v3119_v62  ;;  %v3121_v1 = vpop.f32.mrb[61].mxu0  ;;  %v3180_v2 = vpop.f32.mrb[74].mxu1  ;;  %7347 = vmatprep.mubr.msk.bf16.mxu0 %vm3253_vm6, %v8810_v50  ;;  %7357 = vmatprep.mubr.msk.bf16.mxu1 %vm3253_vm6, %v8810_v50  ;;  %v6500_v22 = vld [vmem:[%s9441_s4 + $0xe] sm:$0x3] }
 0x648   :  { %v3231_v3 = vadd.f32 %v3222_v49, %v3180_v2  ;;  %v3122_v4 = vpop.f32.mrb[62].mxu0  ;;  %v3182_v5 = vpop.f32.mrb[75].mxu1  ;;  %v3238_v9 = vmax.f32 %v3230_v57, 0.0  ;;  %v3758_v24 = vsel %vm3266_vm5, %v6500_v22, 0 }
 0x649   :  { %v3227_v6 = vadd.f32 %v3202_v23, %v3122_v4  ;;  %v3124_v8 = vpop.f32.mrb[63].mxu0  ;;  %v3234_v11 = vmax.f32 %v3226_v0, 0.0  ;;  %v3688_v23 = vsel %vm3266_vm5, %v6495_v21, 0 }
 0x64a   :  { %v3239_v10 = vmax.f32 %v3231_v3, 0.0 }
 0x64b   :  { %v3235_v12 = vmax.f32 %v3227_v6, 0.0 }
 0x64c   :  { %v3251_v13 = vpack.c.bf16 %v3239_v10, %v3238_v9 }
 0x64d   :  { %v3249_v14 = vpack.c.bf16 %v3235_v12, %v3234_v11 }
 0x64f   :  { %7348 = vmatmul.mubr.msk.bf16.vlgmr.msra.gmra.mrb[64].mxu0 %vm3253_vm6, %v3249_v14  ;;  %7358 = vmatmul.mubr.msk.bf16.vlgmr.msra.gmra.mrb[76].mxu1 %vm3253_vm6, %v3249_v14 }
 0x650   :  { %7351 = vmatprep.mubr.msk.bf16.mxu0 %vm3253_vm6, %v8808_v48  ;;  %7361 = vmatprep.mubr.msk.bf16.mxu1 %vm3253_vm6, %v8808_v48 }
 0x651   :  { %7366 = vmatpush3.bf16.msra.mxu0 %v3408_v15  ;;  %7376 = vmatpush3.bf16.msra.mxu1 %v3478_v16 }
 0x652   :  { %7509 = vmatprep.subr.msk.bf16.mxu0 %vm3266_vm5, %v6485_v17  ;;  %7510 = vmatprep.subr.msk.bf16.mxu1 %vm3266_vm5, %v6490_v20 }
 0x657   :  { %7352 = vmatmul.mubr.msk.bf16.gmra.mrb[68].mxu0 %vm3253_vm6, %v3251_v13  ;;  %7362 = vmatmul.mubr.msk.bf16.gmra.mrb[80].mxu1 %vm3253_vm6, %v3251_v13 }
 0x658   :  { %7367 = vmatprep.mubr.msk.bf16.mxu0 %vm3253_vm6, %v8810_v50  ;;  %7377 = vmatprep.mubr.msk.bf16.mxu1 %vm3253_vm6, %v8810_v50 }
 0x65f   :  { %7368 = vmatmul.mubr.msk.bf16.vlgmr.msra.gmra.mrb[72].mxu0 %vm3253_vm6, %v3249_v14  ;;  %7378 = vmatmul.mubr.msk.bf16.vlgmr.msra.gmra.mrb[84].mxu1 %vm3253_vm6, %v3249_v14 }
 0x660   :  { %7371 = vmatprep.mubr.msk.bf16.mxu0 %vm3253_vm6, %v8808_v48  ;;  %7381 = vmatprep.mubr.msk.bf16.mxu1 %vm3253_vm6, %v8808_v48 }
 0x661   :  { %7386 = vmatpush3.bf16.msra.mxu0 %v3548_v18  ;;  %7396 = vmatpush3.bf16.msra.mxu1 %v3618_v19 }
 0x662   :  { %7511 = vmatprep.subr.msk.bf16.mxu0 %vm3266_vm5, %v6495_v21  ;;  %7512 = vmatprep.subr.msk.bf16.mxu1 %vm3266_vm5, %v6500_v22 }
 0x667   :  { %7372 = vmatmul.mubr.msk.bf16.gmra.mrb[76].mxu0 %vm3253_vm6, %v3251_v13  ;;  %7382 = vmatmul.mubr.msk.bf16.gmra.mrb[88].mxu1 %vm3253_vm6, %v3251_v13 }
 0x668   :  { %7387 = vmatprep.mubr.msk.bf16.mxu0 %vm3253_vm6, %v8810_v50  ;;  %7397 = vmatprep.mubr.msk.bf16.mxu1 %vm3253_vm6, %v8810_v50 }
 0x66f   :  { %7388 = vmatmul.mubr.msk.bf16.vlgmr.msra.gmra.mrb[80].mxu0 %vm3253_vm6, %v3249_v14  ;;  %7398 = vmatmul.mubr.msk.bf16.vlgmr.msra.gmra.mrb[92].mxu1 %vm3253_vm6, %v3249_v14 }
 0x670   :  { %7391 = vmatprep.mubr.msk.bf16.mxu0 %vm3253_vm6, %v8808_v48  ;;  %7401 = vmatprep.mubr.msk.bf16.mxu1 %vm3253_vm6, %v8808_v48 }
 0x671   :  { %7406 = vmatpush3.bf16.msra.mxu0 %v3688_v23  ;;  %7416 = vmatpush3.bf16.msra.mxu1 %v3758_v24 }
 0x672   :  { %7513 = vmatprep.subr.msk.bf16.mxu0 %vm3266_vm5, %v6505_v25 }
 0x677   :  { %7392 = vmatmul.mubr.msk.bf16.gmra.mrb[84].mxu0 %vm3253_vm6, %v3251_v13  ;;  %7402 = vmatmul.mubr.msk.bf16.gmra.mrb[96].mxu1 %vm3253_vm6, %v3251_v13 }
 0x678   :  { %7407 = vmatprep.mubr.msk.bf16.mxu0 %vm3253_vm6, %v8810_v50  ;;  %7417 = vmatprep.mubr.msk.bf16.mxu1 %vm3253_vm6, %v8810_v50 }
 0x67f   :  { %7408 = vmatmul.mubr.msk.bf16.vlgmr.msra.gmra.mrb[88].mxu0 %vm3253_vm6, %v3249_v14  ;;  %7418 = vmatmul.mubr.msk.bf16.vlgmr.msra.gmra.mrb[100].mxu1 %vm3253_vm6, %v3249_v14 }
 0x680   :  { %7411 = vmatprep.mubr.msk.bf16.mxu0 %vm3253_vm6, %v8808_v48  ;;  %7421 = vmatprep.mubr.msk.bf16.mxu1 %vm3253_vm6, %v8808_v48 }
 0x681   :  { %7426 = vmatpush3.bf16.msra.mxu0 %v3828_v26 }
 0x682   :  { %7435 = vmatprep.subr.bf16.mxu0 %v7849_v7 }
 0x687   :  { %7412 = vmatmul.mubr.msk.bf16.gmra.mrb[92].mxu0 %vm3253_vm6, %v3251_v13  ;;  %7422 = vmatmul.mubr.msk.bf16.gmra.mrb[104].mxu1 %vm3253_vm6, %v3251_v13 }
 0x688   :  { %7427 = vmatprep.mubr.msk.bf16.mxu0 %vm3253_vm6, %v8810_v50  ;;  %3964 = vmatprep.mubr.bf16.mxu1 %v8899_v27 }
 0x68f   :  { %7428 = vmatmul.mubr.msk.bf16.vlgmr.msra.gmra.mrb[96].mxu0 %vm3253_vm6, %v3249_v14 }
 0x690   :  { %7431 = vmatprep.mubr.msk.bf16.mxu0 %vm3253_vm6, %v8808_v48 }
 0x697   :  { %7432 = vmatmul.mubr.msk.bf16.gmra.mrb[100].mxu0 %vm3253_vm6, %v3251_v13 }
 0x698   :  { %7439 = vmatprep.mubr.msk.bf16.mxu0 %vm7850_vm0, %v7849_v7 }
 0x722   :  { %v8902_v28 = vpop.f32.mrb[64].mxu0  ;;  %v8904_v30 = vpop.f32.mrb[76].mxu1 }
 0x723   :  { %v3304_v31 = vpop.f32.mrb[65].mxu0  ;;  %v8906_v36 = vpop.f32.mrb[77].mxu1 }
 0x724   :  { %v8908_v37 = vpop.f32.mrb[66].mxu0  ;;  %v8910_v38 = vpop.f32.mrb[78].mxu1 }
 0x725   :  { %v3896_v39 = vpack.c.bf16 %v8908_v37, %v8902_v28  ;;  %v3898_v40 = vpack.c.bf16 %v8910_v38, %v8904_v30  ;;  %v3307_v41 = vpop.f32.mrb[67].mxu0  ;;  %v8916_v29 = vpop.f32.mrb[79].mxu1 }
 0x726   :  { %v3895_v34 = vpack.c.bf16 %v3307_v41, %v3304_v31  ;;  %v3897_v42 = vpack.c.bf16 %v8916_v29, %v8906_v36 }
 0x72a   :  { %v8920_v43 = vpop.f32.mrb[68].mxu0  ;;  %v8922_v44 = vpop.f32.mrb[80].mxu1 }
 0x72b   :  { %v8924_v47 = vpop.f32.mrb[69].mxu0  ;;  %v8926_v48 = vpop.f32.mrb[81].mxu1 }
 0x72c   :  { %v8928_v49 = vpop.f32.mrb[70].mxu0  ;;  %v8930_v50 = vpop.f32.mrb[82].mxu1 }
 0x72d   :  { %v8936_v62 = vpop.f32.mrb[71].mxu0  ;;  %v8938_v63 = vpop.f32.mrb[83].mxu1 }
 0x732   :  { %v8944_v2 = vpop.f32.mrb[72].mxu0  ;;  %v8946_v3 = vpop.f32.mrb[84].mxu1 }
 0x733   :  { %v8948_v4 = vpop.f32.mrb[73].mxu0  ;;  %v8950_v5 = vpop.f32.mrb[85].mxu1 }
 0x734   :  { %v8952_v6 = vpop.f32.mrb[74].mxu0  ;;  %v8954_v8 = vpop.f32.mrb[86].mxu1 }
 0x735   :  { %v3900_v9 = vpack.c.bf16 %v8952_v6, %v8944_v2  ;;  %v3902_v10 = vpack.c.bf16 %v8954_v8, %v8946_v3  ;;  %v3447_v11 = vpop.f32.mrb[75].mxu0  ;;  %v8960_v12 = vpop.f32.mrb[87].mxu1 }
 0x736   :  { %v3899_v13 = vpack.c.bf16 %v3447_v11, %v8948_v4  ;;  %v3901_v14 = vpack.c.bf16 %v8960_v12, %v8950_v5 }
 0x73a   :  { %v8965_v15 = vpop.f32.mrb[76].mxu0  ;;  %v8967_v16 = vpop.f32.mrb[88].mxu1 }
 0x73b   :  { %v8969_v17 = vpop.f32.mrb[77].mxu0  ;;  %v8971_v20 = vpop.f32.mrb[89].mxu1 }
 0x73c   :  { %v8973_v18 = vpop.f32.mrb[78].mxu0  ;;  %v8975_v19 = vpop.f32.mrb[90].mxu1 }
 0x73d   :  { %v8981_v23 = vpop.f32.mrb[79].mxu0  ;;  %v8983_v24 = vpop.f32.mrb[91].mxu1 }
 0x742   :  { %v7389_v31 = vpop.f32.mrb[80].mxu0  ;;  %v7399_v41 = vpop.f32.mrb[92].mxu1 }
 0x743   :  { %v3584_v4 = vpop.f32.mrb[81].mxu0  ;;  %v3654_v11 = vpop.f32.mrb[93].mxu1 }
 0x744   :  { %v7390_v59 = vpop.f32.mrb[82].mxu0  ;;  %v7400_v60 = vpop.f32.mrb[94].mxu1 }
 0x745   :  { %v3904_v33 = vpack.c.bf16 %v7390_v59, %v7389_v31  ;;  %v3906_v61 = vpack.c.bf16 %v7400_v60, %v7399_v41  ;;  %v3587_v58 = vpop.f32.mrb[83].mxu0  ;;  %v3657_v52 = vpop.f32.mrb[95].mxu1 }
 0x746   :  { %v3903_v51 = vpack.c.bf16 %v3587_v58, %v3584_v4  ;;  %v3905_v22 = vpack.c.bf16 %v3657_v52, %v3654_v11 }
 0x748   :  { %7050 = vmatprep.subr.bf16.mxu1 %v3903_v51 }
 0x749   :  { %7051 = vmatpush3.bf16.msra.mxu1 %v3895_v34 }
 0x74a   :  { %v8989_v21 = vpop.f32.mrb[84].mxu0  ;;  %v8991_v25 = vpop.f32.mrb[96].mxu1  ;;  %7052 = vmatprep.subr.bf16.mxu1 %v3904_v33 }
 0x74b   :  { %v8993_v26 = vpop.f32.mrb[85].mxu0  ;;  %v8995_v57 = vpop.f32.mrb[97].mxu1 }
 0x74c   :  { %v8997_v1 = vpop.f32.mrb[86].mxu0  ;;  %v8999_v55 = vpop.f32.mrb[98].mxu1 }
 0x74d   :  { %v3603_v51 = vpop.f32.mrb[87].mxu0  ;;  %v9005_v52 = vpop.f32.mrb[99].mxu1  ;;  %7053 = vmatpush3.bf16.msra.mxu1 %v3896_v39 }
 0x74e   :  { %v4022_v33 = vpack.c.bf16 %v3603_v51, %v8993_v26  ;;  %7054 = vmatprep.subr.bf16.mxu1 %v3905_v22 }
 0x751   :  { %7055 = vmatpush3.bf16.msra.mxu1 %v3897_v42 }
 0x752   :  { %v7409_v34 = vpop.f32.mrb[88].mxu0  ;;  %v7419_v31 = vpop.f32.mrb[100].mxu1  ;;  %7056 = vmatprep.subr.bf16.mxu1 %v3906_v61 }
 0x753   :  { %v3724_v41 = vpop.f32.mrb[89].mxu0  ;;  %v3794_v4 = vpop.f32.mrb[101].mxu1 }
 0x754   :  { %v7410_v11 = vpop.f32.mrb[90].mxu0  ;;  %v7420_v60 = vpop.f32.mrb[102].mxu1 }
 0x755   :  { %v3908_v59 = vpack.c.bf16 %v7410_v11, %v7409_v34  ;;  %v3910_v28 = vpack.c.bf16 %v7420_v60, %v7419_v31  ;;  %v3727_v37 = vpop.f32.mrb[91].mxu0  ;;  %v3797_v39 = vpop.f32.mrb[103].mxu1  ;;  %7057 = vmatpush3.bf16.msra.mxu1 %v3898_v40  ;;  %v9454_v11 = vpack.c.bf16 %v8997_v1, %v8989_v21 }
 0x756   :  { %v3907_v22 = vpack.c.bf16 %v3727_v37, %v3724_v41  ;;  %v3909_v26 = vpack.c.bf16 %v3797_v39, %v3794_v4  ;;  %v4117_v21 = vpop.permute.xlu0 %4116  ;;  %v4122_v37 = vpop.permute.xlu1 %4121 }
 0x758   :  { %7058 = vmatprep.subr.bf16.mxu1 %v3907_v22 }
 0x759   :  { %7059 = vmatpush3.bf16.msra.mxu1 %v3899_v13 }
 0x75a   :  { %v7413_v36 = vpop.f32.mrb[92].mxu0  ;;  %v7423_v29 = vpop.f32.mrb[104].mxu1  ;;  %7060 = vmatprep.subr.bf16.mxu1 %v3908_v59 }
 0x75b   :  { %v3740_v61 = vpop.f32.mrb[93].mxu0  ;;  %v3810_v42 = vpop.f32.mrb[105].mxu1 }
 0x75c   :  { %v7414_v51 = vpop.f32.mrb[94].mxu0  ;;  %v7424_v58 = vpop.f32.mrb[106].mxu1 }
 0x75d   :  { %v4027_v0 = vpack.c.bf16 %v7414_v51, %v7413_v36  ;;  %v4029_v34 = vpack.c.bf16 %v7424_v58, %v7423_v29  ;;  %v3743_v60 = vpop.f32.mrb[95].mxu0  ;;  %v3813_v31 = vpop.f32.mrb[107].mxu1  ;;  %7061 = vmatpush3.bf16.msra.mxu1 %v3900_v9  ;;  %v7726_v58 = vld [vmem:[%s9437_s7 + $0x60] ss:$12 sps:$4 sm:$0xff]   ;;  %v7729_v9 = vld [vmem:[%s9437_s7 + $0x68] ss:$12 sps:$4 sm:$0xff]  }
 0x75e   :  { %v4026_v30 = vpack.c.bf16 %v3743_v60, %v3740_v61  ;;  %v4028_v38 = vpack.c.bf16 %v3813_v31, %v3810_v42  ;;  %7062 = vmatprep.subr.bf16.mxu1 %v3909_v26  ;;  %v9464_v29 = vmax.f32 %v8703_v35, 0.0  ;;  %v9465_v42 = vmax.f32 %v8705_v45, 0.0  ;;  %v4127_v35 = vpop.permute.xlu0 %4126  ;;  %v4132_v45 = vpop.permute.xlu1 %4131 }
 0x761   :  { %7063 = vmatpush3.bf16.msra.mxu1 %v3901_v14  ;;  %v9453_v14 = vpack.c.bf16 %v8936_v62, %v8924_v47  ;;  %v9457_v47 = vpack.c.bf16 %v8938_v63, %v8926_v48  ;;  %v9458_v62 = vpack.c.bf16 %v8999_v55, %v8991_v25  ;;  %v9462_v48 = vpack.c.bf16 %v8983_v24, %v8971_v20  ;;  %v7732_v55 = vld [vmem:[%s9442_s5 + $0x8] sm:$0xff]  }
 0x762   :  { %v7429_v40 = vpop.f32.mrb[96].mxu0  ;;  %7064 = vmatprep.subr.bf16.mxu1 %v3910_v28  ;;  %v9455_v28 = vpack.c.bf16 %v8928_v49, %v8920_v43  ;;  %v9461_v43 = vpack.c.bf16 %v8973_v18, %v8965_v15  ;;  %v7730_v49 = vld [vmem:[%s9442_s5] sm:$0xff]  }
 0x763   :  { %v3864_v13 = vpop.f32.mrb[97].mxu0 }
 0x764   :  { %v7430_v59 = vpop.f32.mrb[98].mxu0 }
 0x765   :  { %v3912_v41 = vpack.c.bf16 %v7430_v59, %v7429_v40  ;;  %v3867_v4 = vpop.f32.mrb[99].mxu0  ;;  %7065 = vmatpush3.bf16.msra.mxu1 %v3902_v10 }
 0x766   :  { %v3911_v2 = vpack.c.bf16 %v3867_v4, %v3864_v13  ;;  %7443 = vmatprep.subr.bf16.mxu1 %v7849_v7 }
 0x768   :  { %7436 = vmatpush3.bf16.msra.mxu0 %v3911_v2  ;;  %3965 = vmatmul.mubr.bf16.vlgmr.msra.gmra.mrb[108].mxu1 %v7726_v58 }
 0x769   :  { %7437 = vmatprep.subr.bf16.mxu0 %v7849_v7  ;;  %7447 = vmatprep.mubr.msk.bf16.mxu1 %vm7850_vm0, %v7849_v7 }
 0x76a   :  { %v7433_v5 = vpop.f32.mrb[100].mxu0 }
 0x76b   :  { %v3880_v6 = vpop.f32.mrb[101].mxu0 }
 0x76c   :  { %v7434_v12 = vpop.f32.mrb[102].mxu0  ;;  %7438 = vmatpush3.bf16.msra.mxu0 %v3912_v41 }
 0x76d   :  { %v4031_v3 = vpack.c.bf16 %v7434_v12, %v7433_v5  ;;  %v3883_v8 = vpop.f32.mrb[103].mxu0  ;;  %7075 = vmatprep.subr.bf16.mxu0 %v4022_v33  ;;  %v9456_v33 = vpack.c.bf16 %v9005_v52, %v8995_v57  ;;  %v7733_v57 = vld [vmem:[%s9442_s5 + $0x28] sm:$0xff]  }
 0x76e   :  { %v4030_v10 = vpack.c.bf16 %v3883_v8, %v3880_v6 }
 0x76f   :  { %7440 = vmatmul.mubr.msk.bf16.vlgmr.msra.gmra.mrb[104].mxu0 %vm3928_vm7, %v7729_v9 }
 0x770   :  { %7076 = vmatpush3.bf16.msra.mxu0 %v9453_v14  ;;  %7444 = vmatpush3.bf16.msra.mxu1 %v4030_v10  ;;  %v9467_v10 = vmax.f32 %v8711_v54, 0.0  ;;  %v9468_v54 = vmov 0  }
 0x771   :  { %7077 = vmatprep.subr.bf16.mxu0 %v9454_v11  ;;  %7445 = vmatprep.subr.bf16.mxu1 %v7849_v7  ;;  %v9459_v7 = vpack.c.bf16 %v8930_v50, %v8922_v44  ;;  %v9463_v44 = vpack.c.bf16 %v8975_v19, %v8967_v16  ;;  %v7731_v50 = vld [vmem:[%s9442_s5 + $0x18] sm:$0xff]  }
 0x772   :  { %4064 = vmatprep.mubr.bf16.mxu0 %v8899_v27  ;;  %v9460_v27 = vpack.c.bf16 %v8981_v23, %v8969_v17 }
 0x774   :  { %7078 = vmatpush3.bf16.msra.mxu0 %v9455_v28  ;;  %7446 = vmatpush3.bf16.msra.mxu1 %v4031_v3  ;;  %v9466_v3 = vmax.f32 %v8707_v46, 0.0  ;;  %v7734_v28 = vld [vmem:[%s9442_s5 + $0x10] sm:$0xff]   ;;  %v7736_v46 = vld [vmem:[%s9442_s5 + $0x20] sm:$0xff]  }
 0x775   :  { %7079 = vmatprep.subr.bf16.mxu0 %v9456_v33  ;;  %7451 = vmatprep.subr.bf16.mxu1 %v7730_v49  ;;  %v7735_v33 = vld [vmem:[%s9442_s5 + $0x38] sm:$0xff]  }
 0x777   :  { %7448 = vmatmul.mubr.msk.bf16.vlgmr.msra.gmra.mrb[112].mxu1 %vm3928_vm7, %v7729_v9 }
 0x778   :  { %7080 = vmatpush3.bf16.msra.mxu0 %v9457_v47  ;;  %7452 = vmatpush3.bf16.msra.mxu1 %v7730_v49  ;;  %v7737_v47 = vld [vmem:[%s9442_s5 + $0x30] sm:$0xff]  }
 0x779   :  { %7081 = vmatprep.subr.bf16.mxu0 %v9458_v62  ;;  %7457 = vmatprep.subr.bf16.mxu1 %v7732_v55  ;;  %v7738_v62 = vld [vmem:[%s9442_s5 + $0x40] sm:$0xff]  }
 0x77c   :  { %7082 = vmatpush3.bf16.msra.mxu0 %v9459_v7  ;;  %v9131_v7 = vld [vmem:[%s9437_s7 + $0x78] sm:$0xff] }
 0x77d   :  { %7083 = vmatprep.subr.bf16.mxu0 %v4026_v30 }
 0x780   :  { %7084 = vmatpush3.bf16.msra.mxu0 %v9460_v27  ;;  %v6559_v27 = vcombine.high %v9131_v7, %v9131_v7 }
 0x781   :  { %7085 = vmatprep.subr.bf16.mxu0 %v4027_v0 }
 0x784   :  { %7086 = vmatpush3.bf16.msra.mxu0 %v9461_v43 }
 0x785   :  { %7087 = vmatprep.subr.bf16.mxu0 %v4028_v38 }
 0x788   :  { %7088 = vmatpush3.bf16.msra.mxu0 %v9462_v48 }
 0x789   :  { %7089 = vmatprep.subr.bf16.mxu0 %v4029_v34 }
 0x78c   :  { %7090 = vmatpush3.bf16.msra.mxu0 %v9463_v44 }
 0x78d   :  { %7469 = vmatprep.subr.bf16.mxu0 %v7731_v50 }
 0x78f   :  { %4065 = vmatmul.mubr.bf16.vlgmr.msra.gmra.mrb[108].mxu0 %v7726_v58 }
 0x790   :  { %7470 = vmatpush3.bf16.msra.mxu0 %v7731_v50 }
 0x791   :  { %7481 = vmatprep.subr.bf16.mxu0 %v7733_v57 }
 0x83b   :  { %v7066_v63 = vpop.f32.mrb[108].mxu1 }
 0x83c   :  { %v7067_v0 = vpop.f32.mrb[109].mxu1 }
 0x83d   :  { %v7068_v1 = vadd.f32 %v7067_v0, %v7066_v63  ;;  %v7069_v15 = vpop.f32.mrb[110].mxu1 }
 0x83e   :  { %v7070_v16 = vpop.f32.mrb[111].mxu1 }
 0x83f   :  { %v7071_v17 = vadd.f32 %v7070_v16, %v7069_v15 }
 0x842   :  { %v4007_v20 = vpop.f32.mrb[104].mxu0 }
 0x843   :  { %v4008_v18 = vadd.f32 %v7068_v1, %v4007_v20  ;;  %v7441_v19 = vpop.f32.mrb[105].mxu0 }
 0x844   :  { %v4010_v23 = vpop.f32.mrb[106].mxu0 }
 0x845   :  { %v4134_v24 = vadd.f32 %v4117_v21, %v4008_v18  ;;  %v4011_v25 = vadd.f32 %v7071_v17, %v4010_v23  ;;  %v7442_v52 = vpop.f32.mrb[107].mxu0 }
 0x847   :  { %v4138_v39 = vmax.f32 %v4134_v24, 0.0  ;;  %v4135_v22 = vadd.f32 %v4122_v37, %v4011_v25 }
 0x849   :  { %v4139_v26 = vmax.f32 %v4135_v22, 0.0  ;;  %v4142_v61 = vadd.f32 %v4138_v39, %v9464_v29 }
 0x84a   :  { %v4107_v36 = vpop.f32.mrb[112].mxu1 }
 0x84b   :  { %v4143_v51 = vadd.f32 %v4139_v26, %v9465_v42  ;;  %v7449_v34 = vpop.f32.mrb[113].mxu1 }
 0x84c   :  { %v4110_v60 = vpop.f32.mrb[114].mxu1 }
 0x84d   :  { %v4149_v31 = vpack.c.bf16 %v4143_v51, %v4142_v61  ;;  %v7450_v30 = vpop.f32.mrb[115].mxu1 }
 0x84f   :  { %7453 = vmatprep.mubr.msk.bf16.mxu1 %vm2524_vm4, %v4149_v31  ;;  %7471 = vmatprep.mubr.msk.bf16.mxu0 %vm2524_vm4, %v4149_v31 }
 0x862   :  { %v7091_v38 = vpop.f32.mrb[108].mxu0 }
 0x863   :  { %v7092_v40 = vpop.f32.mrb[109].mxu0 }
 0x864   :  { %v7093_v13 = vadd.f32 %v7092_v40, %v7091_v38  ;;  %v7094_v59 = vpop.f32.mrb[110].mxu0 }
 0x865   :  { %v7095_v58 = vpop.f32.mrb[111].mxu0 }
 0x866   :  { %v7096_v41 = vadd.f32 %v7095_v58, %v7094_v59  ;;  %v4108_v4 = vadd.f32 %v7093_v13, %v4107_v36 }
 0x868   :  { %v4136_v2 = vadd.f32 %v4127_v35, %v4108_v4  ;;  %v4111_v5 = vadd.f32 %v7096_v41, %v4110_v60 }
 0x86a   :  { %v4140_v6 = vmax.f32 %v4136_v2, 0.0  ;;  %v4137_v9 = vadd.f32 %v4132_v45, %v4111_v5 }
 0x86c   :  { %v4141_v12 = vmax.f32 %v4137_v9, 0.0  ;;  %v4144_v8 = vadd.f32 %v4140_v6, %v9466_v3 }
 0x86e   :  { %v4145_v14 = vadd.f32 %v4141_v12, %v9467_v10 }
 0x870   :  { %v4150_v11 = vpack.c.bf16 %v4145_v14, %v4144_v8  ;;  %v7746_v14 = vld [vmem:[%s9443_s6 + $0x44] ss:$8 sps:$4 sm:$0xff]  }
 0x872   :  { %7454 = vmatmul.mubr.msk.bf16.vlgmr.msra.gmra.mrb[116].mxu1 %vm2524_vm4, %v4150_v11  ;;  %7472 = vmatmul.mubr.msk.bf16.vlgmr.msra.gmra.mrb[112].mxu0 %vm2524_vm4, %v4150_v11 }
 0x873   :  { %7459 = vmatprep.mubr.msk.bf16.mxu1 %vm2524_vm4, %v4149_v31  ;;  %7483 = vmatprep.mubr.msk.bf16.mxu0 %vm2524_vm4, %v4149_v31 }
 0x874   :  { %7458 = vmatpush3.bf16.msra.mxu1 %v7732_v55  ;;  %7482 = vmatpush3.bf16.msra.mxu0 %v7733_v57 }
 0x875   :  { %7463 = vmatprep.subr.bf16.mxu1 %v7734_v28  ;;  %7493 = vmatprep.subr.bf16.mxu0 %v7735_v33 }
 0x87a   :  { %7460 = vmatmul.mubr.msk.bf16.vlgmr.msra.gmra.mrb[120].mxu1 %vm2524_vm4, %v4150_v11  ;;  %7484 = vmatmul.mubr.msk.bf16.vlgmr.msra.gmra.mrb[116].mxu0 %vm2524_vm4, %v4150_v11 }
 0x87b   :  { %7465 = vmatprep.mubr.msk.bf16.mxu1 %vm2524_vm4, %v4149_v31  ;;  %7495 = vmatprep.mubr.msk.bf16.mxu0 %vm2524_vm4, %v4149_v31 }
 0x87c   :  { %7464 = vmatpush3.bf16.msra.mxu1 %v7734_v28  ;;  %7494 = vmatpush3.bf16.msra.mxu0 %v7735_v33  ;;  %v7743_v33 = vld [vmem:[%s9443_s6 + $0x4] ss:$8 sps:$4 sm:$0xff]  }
 0x87d   :  { %7475 = vmatprep.subr.bf16.mxu1 %v7736_v46  ;;  %4696 = vmatprep.subr.bf16.mxu0 %v9468_v54 }
 0x882   :  { %7466 = vmatmul.mubr.msk.bf16.vlgmr.msra.gmra.mrb[124].mxu1 %vm2524_vm4, %v4150_v11  ;;  %7496 = vmatmul.mubr.msk.bf16.vlgmr.msra.gmra.mrb[120].mxu0 %vm2524_vm4, %v4150_v11 }
 0x883   :  { %7477 = vmatprep.mubr.msk.bf16.mxu1 %vm2524_vm4, %v4149_v31  ;;  %7476 = vmatpush3.bf16.msra.mxu1 %v7736_v46 }
 0x884   :  { %7487 = vmatprep.subr.bf16.mxu1 %v7737_v47  ;;  %6560 = vmatprep.mubr.msk.bf16.mxu0 %vm2524_vm4, %v6559_v27 }
 0x88a   :  { %7478 = vmatmul.mubr.msk.bf16.vlgmr.msra.gmra.mrb[128].mxu1 %vm2524_vm4, %v4150_v11 }
 0x88b   :  { %7489 = vmatprep.mubr.msk.bf16.mxu1 %vm2524_vm4, %v4149_v31  ;;  %7488 = vmatpush3.bf16.msra.mxu1 %v7737_v47  ;;  %v6558_v47 = vcombine.low %v9131_v7, %v9131_v7  ;;  %v7749_v7 = vld [vmem:[%s9443_s6 + $0x14] ss:$8 sps:$4 sm:$0xff]  }
 0x88c   :  { %7499 = vmatprep.subr.bf16.mxu1 %v7738_v62 }
 0x892   :  { %7490 = vmatmul.mubr.msk.bf16.vlgmr.msra.gmra.mrb[132].mxu1 %vm2524_vm4, %v4150_v11 }
 0x893   :  { %7501 = vmatprep.mubr.msk.bf16.mxu1 %vm2524_vm4, %v4149_v31  ;;  %7500 = vmatpush3.bf16.msra.mxu1 %v7738_v62  ;;  %v7744_v62 = vld [vmem:[%s9443_s6 + $0x40] ss:$8 sps:$4 sm:$0xff]  }
 0x894   :  { %4745 = vmatprep.subr.bf16.mxu1 %v9468_v54 }
 0x89a   :  { %7502 = vmatmul.mubr.msk.bf16.vlgmr.msra.gmra.mrb[136].mxu1 %vm2524_vm4, %v4150_v11 }
 0x89b   :  { %6561 = vmatprep.mubr.msk.bf16.mxu1 %vm2524_vm4, %v6559_v27  ;;  %v7741_v27 = vld [vmem:[%s9443_s6] ss:$8 sps:$4 sm:$0xff]  }
 0x945   :  { %v7455_v43 = vpop.f32.mrb[116].mxu1  ;;  %v7473_v48 = vpop.f32.mrb[112].mxu0 }
 0x946   :  { %v4199_v44 = vpop.f32.mrb[117].mxu1  ;;  %v4373_v49 = vpop.f32.mrb[113].mxu0 }
 0x947   :  { %v7456_v50 = vpop.f32.mrb[118].mxu1  ;;  %v7474_v55 = vpop.f32.mrb[114].mxu0 }
 0x948   :  { %v4736_v57 = vpack.c.bf16 %v7456_v50, %v7455_v43  ;;  %v4739_v63 = vpack.c.bf16 %v7474_v55, %v7473_v48  ;;  %v4202_v0 = vpop.f32.mrb[119].mxu1  ;;  %v4376_v1 = vpop.f32.mrb[115].mxu0  ;;  %v7752_v43 = vld [vmem:[%s9443_s6 + $0x54] ss:$8 sps:$4 sm:$0xff]   ;;  %v7750_v48 = vld [vmem:[%s9443_s6 + $0x50] ss:$8 sps:$4 sm:$0xff]  }
 0x949   :  { %v4678_v15 = vpack.c.bf16 %v4202_v0, %v4199_v44  ;;  %v4681_v16 = vpack.c.bf16 %v4376_v1, %v4373_v49  ;;  %v7747_v44 = vld [vmem:[%s9443_s6 + $0x10] ss:$8 sps:$4 sm:$0xff]   ;;  %v7755_v49 = vld [vmem:[%s9443_s6 + $0x24] ss:$8 sps:$4 sm:$0xff]   ;;  %v7753_v55 = vld [vmem:[%s9443_s6 + $0x20] ss:$8 sps:$4 sm:$0xff]  }
 0x94a   :  { %4746 = vmatpush1.bf16.msra.mxu1 %v4736_v57  ;;  %v7758_v50 = vld [vmem:[%s9443_s6 + $0x64] ss:$8 sps:$4 sm:$0xff]   ;;  %v7756_v57 = vld [vmem:[%s9443_s6 + $0x60] ss:$8 sps:$4 sm:$0xff]   ;;  %v7764_v0 = vld [vmem:[%s9443_s6 + $0x74] ss:$8 sps:$4 sm:$0xff]  }
 0x94b   :  { %4697 = vmatpush1.bf16.msra.mxu0 %v4678_v15  ;;  %4747 = vmatprep.subr.bf16.mxu1 %v9468_v54  ;;  %v7759_v1 = vld [vmem:[%s9443_s6 + $0x30] ss:$8 sps:$4 sm:$0xff]  }
 0x94c   :  { %4698 = vmatprep.subr.bf16.mxu0 %v9468_v54  ;;  %v7762_v15 = vld [vmem:[%s9443_s6 + $0x70] ss:$8 sps:$4 sm:$0xff]  }
 0x94d   :  { %v7461_v17 = vpop.f32.mrb[120].mxu1  ;;  %v7485_v20 = vpop.f32.mrb[116].mxu0 }
 0x94e   :  { %v4257_v18 = vpop.f32.mrb[121].mxu1  ;;  %v4489_v19 = vpop.f32.mrb[117].mxu0 }
 0x94f   :  { %v7462_v21 = vpop.f32.mrb[122].mxu1  ;;  %v7486_v23 = vpop.f32.mrb[118].mxu0 }
 0x950   :  { %v4737_v24 = vpack.c.bf16 %v7462_v21, %v7461_v17  ;;  %v4741_v25 = vpack.c.bf16 %v7486_v23, %v7485_v20  ;;  %v4260_v52 = vpop.f32.mrb[123].mxu1  ;;  %v4492_v37 = vpop.f32.mrb[119].mxu0  ;;  %v7770_v17 = vld [vmem:[%s9443_s6 + $0xc4] ss:$8 sps:$4 sm:$0xff]  }
 0x951   :  { %v4679_v39 = vpack.c.bf16 %v4260_v52, %v4257_v18  ;;  %v4683_v22 = vpack.c.bf16 %v4492_v37, %v4489_v19  ;;  %v4788_v20 = vpop.permute.xlu0 %4787  ;;  %v4793_v18 = vpop.permute.xlu1 %4792 }
 0x952   :  { %4748 = vmatpush1.bf16.msra.mxu1 %v4737_v24 }
 0x953   :  { %4699 = vmatpush1.bf16.msra.mxu0 %v4679_v39  ;;  %4749 = vmatprep.subr.bf16.mxu1 %v9468_v54 }
 0x954   :  { %4700 = vmatprep.subr.bf16.mxu0 %v9468_v54 }
 0x955   :  { %v7467_v26 = vpop.f32.mrb[124].mxu1  ;;  %v7497_v36 = vpop.f32.mrb[120].mxu0 }
 0x956   :  { %v4315_v29 = vpop.f32.mrb[125].mxu1  ;;  %v4605_v61 = vpop.f32.mrb[121].mxu0 }
 0x957   :  { %v7468_v42 = vpop.f32.mrb[126].mxu1  ;;  %v7498_v51 = vpop.f32.mrb[122].mxu0 }
 0x958   :  { %v4738_v34 = vpack.c.bf16 %v7468_v42, %v7467_v26  ;;  %v4743_v60 = vpack.c.bf16 %v7498_v51, %v7497_v36  ;;  %v4318_v31 = vpop.f32.mrb[127].mxu1  ;;  %v4608_v30 = vpop.f32.mrb[123].mxu0  ;;  %v9470_v51 = vmax.f32 %v8483_v53, 0.0  ;;  %v7771_v53 = vld [vmem:[%s9443_s6 + $0x90] ss:$8 sps:$4 sm:$0xff]  }
 0x959   :  { %v4680_v38 = vpack.c.bf16 %v4318_v31, %v4315_v29  ;;  %v4685_v40 = vpack.c.bf16 %v4608_v30, %v4605_v61  ;;  %v9469_v61 = vmax.f32 %v8485_v56, 0.0  ;;  %v7768_v31 = vld [vmem:[%s9443_s6 + $0xc0] ss:$8 sps:$4 sm:$0xff]   ;;  %v7776_v56 = vld [vmem:[%s9443_s6 + $0xd4] ss:$8 sps:$4 sm:$0xff]  }
 0x95a   :  { %4750 = vmatpush1.bf16.msra.mxu1 %v4738_v34 }
 0x95b   :  { %4701 = vmatpush1.bf16.msra.mxu0 %v4680_v38  ;;  %4751 = vmatprep.subr.bf16.mxu1 %v9468_v54  ;;  %v7773_v38 = vld [vmem:[%s9443_s6 + $0x94] ss:$8 sps:$4 sm:$0xff]  }
 0x95c   :  { %4702 = vmatprep.subr.bf16.mxu0 %v9468_v54 }
 0x95d   :  { %v7479_v13 = vpop.f32.mrb[128].mxu1 }
 0x95e   :  { %v4431_v59 = vpop.f32.mrb[129].mxu1  ;;  %4752 = vmatpush1.bf16.msra.mxu1 %v4739_v63  ;;  %v7761_v63 = vld [vmem:[%s9443_s6 + $0x34] ss:$8 sps:$4 sm:$0xff]  }
 0x95f   :  { %v7480_v58 = vpop.f32.mrb[130].mxu1  ;;  %4703 = vmatpush1.bf16.msra.mxu0 %v4681_v16  ;;  %4753 = vmatprep.subr.bf16.mxu1 %v9468_v54  ;;  %v7767_v16 = vld [vmem:[%s9443_s6 + $0x84] ss:$8 sps:$4 sm:$0xff]  }
 0x960   :  { %v4740_v41 = vpack.c.bf16 %v7480_v58, %v7479_v13  ;;  %v4434_v4 = vpop.f32.mrb[131].mxu1  ;;  %4704 = vmatprep.subr.bf16.mxu0 %v9468_v54  ;;  %v7779_v13 = vld [vmem:[%s9443_s6 + $0xa4] ss:$8 sps:$4 sm:$0xff]   ;;  %v7777_v58 = vld [vmem:[%s9443_s6 + $0xa0] ss:$8 sps:$4 sm:$0xff]  }
 0x961   :  { %v4682_v35 = vpack.c.bf16 %v4434_v4, %v4431_v59  ;;  %v7782_v59 = vld [vmem:[%s9443_s6 + $0xe4] ss:$8 sps:$4 sm:$0xff]   ;;  %v7785_v4 = vld [vmem:[%s9443_s6 + $0xb4] ss:$8 sps:$4 sm:$0xff]  }
 0x962   :  { %4754 = vmatpush1.bf16.msra.mxu1 %v4740_v41  ;;  %v7780_v41 = vld [vmem:[%s9443_s6 + $0xe0] ss:$8 sps:$4 sm:$0xff]  }
 0x963   :  { %4705 = vmatpush1.bf16.msra.mxu0 %v4682_v35  ;;  %4755 = vmatprep.subr.bf16.mxu1 %v9468_v54  ;;  %v7788_v35 = vld [vmem:[%s9443_s6 + $0xf4] ss:$8 sps:$4 sm:$0xff]  }
 0x964   :  { %4706 = vmatprep.subr.bf16.mxu0 %v9468_v54 }
 0x965   :  { %v7491_v2 = vpop.f32.mrb[132].mxu1 }
 0x966   :  { %v4547_v5 = vpop.f32.mrb[133].mxu1  ;;  %4756 = vmatpush1.bf16.msra.mxu1 %v4741_v25 }
 0x967   :  { %v7492_v45 = vpop.f32.mrb[134].mxu1  ;;  %4707 = vmatpush1.bf16.msra.mxu0 %v4683_v22  ;;  %4757 = vmatprep.subr.bf16.mxu1 %v9468_v54 }
 0x968   :  { %v4742_v6 = vpack.c.bf16 %v7492_v45, %v7491_v2  ;;  %v4550_v9 = vpop.f32.mrb[135].mxu1  ;;  %4708 = vmatprep.subr.bf16.mxu0 %v9468_v54  ;;  %v7783_v2 = vld [vmem:[%s9443_s6 + $0xb0] ss:$8 sps:$4 sm:$0xff]   ;;  %v7791_v45 = vld [vmem:[%s9443_s6 + $0x104] ss:$8 sps:$4 sm:$0xff]  }
 0x969   :  { %v4684_v12 = vpack.c.bf16 %v4550_v9, %v4547_v5  ;;  %v7786_v5 = vld [vmem:[%s9443_s6 + $0xf0] ss:$8 sps:$4 sm:$0xff]   ;;  %v7789_v9 = vld [vmem:[%s9443_s6 + $0x100] ss:$8 sps:$4 sm:$0xff]  }
 0x96a   :  { %4758 = vmatpush1.bf16.msra.mxu1 %v4742_v6  ;;  %v7794_v6 = vld [vmem:[%s9443_s6 + $0x144] ss:$8 sps:$4 sm:$0xff]  }
 0x96b   :  { %4709 = vmatpush1.bf16.msra.mxu0 %v4684_v12  ;;  %4759 = vmatprep.subr.bf16.mxu1 %v9468_v54  ;;  %v7792_v12 = vld [vmem:[%s9443_s6 + $0x140] ss:$8 sps:$4 sm:$0xff]  }
 0x96c   :  { %4710 = vmatprep.subr.bf16.mxu0 %v9468_v54 }
 0x96d   :  { %v7503_v3 = vpop.f32.mrb[136].mxu1 }
 0x96e   :  { %v4663_v8 = vpop.f32.mrb[137].mxu1  ;;  %4760 = vmatpush1.bf16.msra.mxu1 %v4743_v60  ;;  %v7765_v60 = vld [vmem:[%s9443_s6 + $0x80] ss:$8 sps:$4 sm:$0xff]  }
 0x96f   :  { %v7504_v10 = vpop.f32.mrb[138].mxu1  ;;  %4711 = vmatpush1.bf16.msra.mxu0 %v4685_v40  ;;  %4761 = vmatprep.subr.bf16.mxu1 %v9468_v54  ;;  %v7774_v40 = vld [vmem:[%s9443_s6 + $0xd0] ss:$8 sps:$4 sm:$0xff]  }
 0x970   :  { %v4744_v11 = vpack.c.bf16 %v7504_v10, %v7503_v3  ;;  %v4666_v28 = vpop.f32.mrb[139].mxu1  ;;  %4712 = vmatprep.subr.bf16.mxu0 %v9468_v54  ;;  %v7797_v3 = vld [vmem:[%s9443_s6 + $0x114] ss:$8 sps:$4 sm:$0xff]   ;;  %v7795_v10 = vld [vmem:[%s9443_s6 + $0x110] ss:$8 sps:$4 sm:$0xff]  }
 0x971   :  { %v4686_v46 = vpack.c.bf16 %v4666_v28, %v4663_v8  ;;  %v7800_v8 = vld [vmem:[%s9443_s6 + $0x154] ss:$8 sps:$4 sm:$0xff]   ;;  %v7806_v28 = vld [vmem:[%s9443_s6 + $0x164] ss:$8 sps:$4 sm:$0xff]  }
 0x972   :  { %4762 = vmatpush1.bf16.msra.mxu1 %v4744_v11  ;;  %v7803_v11 = vld [vmem:[%s9443_s6 + $0x124] ss:$8 sps:$4 sm:$0xff]  }
 0x973   :  { %4713 = vmatpush1.bf16.msra.mxu0 %v4686_v46  ;;  %4948 = vmatprep.subr.bf16.mxu1 %v7746_v14  ;;  %v7798_v14 = vld [vmem:[%s9443_s6 + $0x150] ss:$8 sps:$4 sm:$0xff]   ;;  %v7804_v46 = vld [vmem:[%s9443_s6 + $0x160] ss:$8 sps:$4 sm:$0xff]  }
 0x974   :  { %4856 = vmatprep.subr.bf16.mxu0 %v7743_v33  ;;  %v7801_v33 = vld [vmem:[%s9443_s6 + $0x120] ss:$8 sps:$4 sm:$0xff]  }
 0x975   :  { %4778 = vmatmul.mubr.bf16.vlgmr.msra.gmra.mrb[140].mxu1 %v6558_v47 }
 0x976   :  { %4729 = vmatmul.mubr.bf16.vlgmr.msra.gmra.mrb[124].mxu0 %v6558_v47  ;;  %4949 = vmatpush1.bf16.msra.mxu1 %v7744_v62  ;;  %v7809_v47 = vld [vmem:[%s9443_s6 + $0x134] ss:$8 sps:$4 sm:$0xff]  }
 0x977   :  { %4857 = vmatpush1.bf16.msra.mxu0 %v7741_v27  ;;  %4950 = vmatprep.subr.bf16.mxu1 %v7752_v43  ;;  %v7812_v62 = vld [vmem:[%s9443_s6 + $0x174] ss:$8 sps:$4 sm:$0xff]   ;;  %v7807_v27 = vld [vmem:[%s9443_s6 + $0x130] ss:$8 sps:$4 sm:$0xff]  }
 0x978   :  { %4858 = vmatprep.subr.bf16.mxu0 %v7749_v7  ;;  %4888 = vmatprep.mubr.bf16.mxu0 %v9468_v54  ;;  %v7810_v43 = vld [vmem:[%s9443_s6 + $0x170] ss:$8 sps:$4 sm:$0xff]   ;;  %v7815_v7 = vld [vmem:[%s9443_s6 + $0x184] ss:$8 sps:$4 sm:$0xff]  }
 0x979   :  { %4980 = vmatprep.mubr.bf16.mxu1 %v9468_v54 }
 0x97a   :  { %4951 = vmatpush1.bf16.msra.mxu1 %v7750_v48  ;;  %v7818_v48 = vld [vmem:[%s9443_s6 + $0x1c4] ss:$8 sps:$4 sm:$0xff]  }
 0x97b   :  { %4859 = vmatpush1.bf16.msra.mxu0 %v7747_v44  ;;  %4952 = vmatprep.subr.bf16.mxu1 %v7758_v50  ;;  %v7813_v44 = vld [vmem:[%s9443_s6 + $0x180] ss:$8 sps:$4 sm:$0xff]   ;;  %v7821_v50 = vld [vmem:[%s9443_s6 + $0x194] ss:$8 sps:$4 sm:$0xff]  }
 0x97c   :  { %4860 = vmatprep.subr.bf16.mxu0 %v7755_v49  ;;  %v7816_v49 = vld [vmem:[%s9443_s6 + $0x1c0] ss:$8 sps:$4 sm:$0xff]  }
 0x97e   :  { %4953 = vmatpush1.bf16.msra.mxu1 %v7756_v57  ;;  %v7819_v57 = vld [vmem:[%s9443_s6 + $0x190] ss:$8 sps:$4 sm:$0xff]  }
 0x97f   :  { %4861 = vmatpush1.bf16.msra.mxu0 %v7753_v55  ;;  %4954 = vmatprep.subr.bf16.mxu1 %v7764_v0  ;;  %v7824_v55 = vld [vmem:[%s9443_s6 + $0x1d4] ss:$8 sps:$4 sm:$0xff]   ;;  %v7827_v0 = vld [vmem:[%s9443_s6 + $0x1a4] ss:$8 sps:$4 sm:$0xff]  }
 0x980   :  { %4862 = vmatprep.subr.bf16.mxu0 %v7761_v63  ;;  %v7822_v63 = vld [vmem:[%s9443_s6 + $0x1d0] ss:$8 sps:$4 sm:$0xff]  }
 0x982   :  { %4955 = vmatpush1.bf16.msra.mxu1 %v7762_v15  ;;  %v7825_v15 = vld [vmem:[%s9443_s6 + $0x1a0] ss:$8 sps:$4 sm:$0xff]  }
 0x983   :  { %4863 = vmatpush1.bf16.msra.mxu0 %v7759_v1  ;;  %5132 = vmatprep.subr.bf16.mxu1 %v7770_v17  ;;  %v7830_v1 = vld [vmem:[%s9443_s6 + $0x1e4] ss:$8 sps:$4 sm:$0xff]   ;;  %v7833_v17 = vld [vmem:[%s9443_s6 + $0x1b4] ss:$8 sps:$4 sm:$0xff]  }
 0x984   :  { %5040 = vmatprep.subr.bf16.mxu0 %v7767_v16  ;;  %v7828_v16 = vld [vmem:[%s9443_s6 + $0x1e0] ss:$8 sps:$4 sm:$0xff]  }
 0xa48   :  { %v4779_v19 = vpop.f32.mrb[140].mxu1 }
 0xa49   :  { %v4796_v21 = vadd.f32 %v4793_v18, %v4779_v19  ;;  %v4730_v23 = vpop.f32.mrb[124].mxu0  ;;  %v4781_v24 = vpop.f32.mrb[141].mxu1  ;;  %v7831_v18 = vld [vmem:[%s9443_s6 + $0x1b0] ss:$8 sps:$4 sm:$0xff]  }
 0xa4a   :  { %v4795_v25 = vadd.f32 %v4788_v20, %v4730_v23  ;;  %v4732_v52 = vpop.f32.mrb[125].mxu0  ;;  %v4782_v37 = vpop.f32.mrb[142].mxu1  ;;  %v7836_v20 = vld [vmem:[%s9443_s6 + $0x1f4] ss:$8 sps:$4 sm:$0xff]   ;;  %v7834_v19 = vld [vmem:[%s9443_s6 + $0x1f0] ss:$8 sps:$4 sm:$0xff]  }
 0xa4b   :  { %v4798_v39 = vmax.f32 %v4796_v21, 0.0  ;;  %v4733_v22 = vpop.f32.mrb[126].mxu0  ;;  %v4783_v26 = vpop.f32.mrb[143].mxu1  ;;  %v7839_v21 = vld [vmem:[%s9443_s6 + $0x204] ss:$8 sps:$4 sm:$0xff]  }
 0xa4c   :  { %v4797_v36 = vmax.f32 %v4795_v25, 0.0  ;;  %v4734_v29 = vpop.f32.mrb[127].mxu0  ;;  %v7837_v23 = vld [vmem:[%s9443_s6 + $0x200] ss:$8 sps:$4 sm:$0xff]   ;;  %v7842_v24 = vld [vmem:[%s9443_s6 + $0x214] ss:$8 sps:$4 sm:$0xff]  }
 0xa4d   :  { %v4800_v42 = vadd.f32 %v4798_v39, %v9469_v61  ;;  %v7840_v25 = vld [vmem:[%s9443_s6 + $0x210] ss:$8 sps:$4 sm:$0xff]   ;;  %v7845_v52 = vld [vmem:[%s9443_s6 + $0x224] ss:$8 sps:$4 sm:$0xff]   ;;  %v7843_v37 = vld [vmem:[%s9443_s6 + $0x220] ss:$8 sps:$4 sm:$0xff]  }
 0xa4e   :  { %v4799_v34 = vadd.f32 %v4797_v36, %v9470_v51  ;;  %v7848_v39 = vld [vmem:[%s9443_s6 + $0x234] ss:$8 sps:$4 sm:$0xff]   ;;  %v7846_v22 = vld [vmem:[%s9443_s6 + $0x230] ss:$8 sps:$4 sm:$0xff]   ;;  %v7852_v26 = vmov 1   ;;  %v7853_v36 = vmov 2  }
 0xa4f   :  { %7522 = vset.pattern.permute.xlu1 %v7852_v26  ;;  %7523 = vset.pattern.permute.xlu0 %v7853_v36  ;;  %v7854_v29 = vmov 3   ;;  %v5772_v61 = vld [vmem:[%s9438_s8 + $0xb0] sm:$0x3]  ;;  %v5760_v26 = vpop.permute.xlu1 %5759 }
 0xa50   :  { %v9221_v30 = vpack.c.bf16 %v4800_v42, %v4799_v34  ;;  %5789 = vperm.xlu1 %7522, %v8424_v32   ;;  %5805 = vperm.xlu0 %7523, %v8424_v32  }
 0xa52   :  { %6570 = vmatmul.mubr.msk.bf16.vlgmr.msra.gmra.mrb[128].mxu0 %vm1731_vm3, %v9221_v30  ;;  %6587 = vmatmul.mubr.msk.bf16.vlgmr.msra.gmra.mrb[144].mxu1 %vm1731_vm3, %v9221_v30 }
 0xa53   :  { %5041 = vmatpush1.bf16.msra.mxu0 %v7765_v60  ;;  %5133 = vmatpush1.bf16.msra.mxu1 %v7768_v31 }
 0xa54   :  { %5042 = vmatprep.subr.bf16.mxu0 %v7773_v38  ;;  %5134 = vmatprep.subr.bf16.mxu1 %v7776_v56 }
 0xa55   :  { %5072 = vmatprep.mubr.bf16.mxu0 %v9468_v54  ;;  %5164 = vmatprep.mubr.bf16.mxu1 %v9468_v54 }
 0xa56   :  { %7524 = vset.pattern.permute.xlu1 %v7854_v29  ;;  %7526 = vset.pattern.permute.xlu0 %v9468_v54  ;;  %v5755_v29 = vpop.permute.xlu0 %5754 }
 0xa57   :  { %5043 = vmatpush1.bf16.msra.mxu0 %v7771_v53  ;;  %5135 = vmatpush1.bf16.msra.mxu1 %v7774_v40 }
 0xa58   :  { %5044 = vmatprep.subr.bf16.mxu0 %v7779_v13  ;;  %5136 = vmatprep.subr.bf16.mxu1 %v7782_v59 }
 0xa59   :  { %5821 = vperm.xlu1 %7524, %v8424_v32  }
 0xa5b   :  { %5045 = vmatpush1.bf16.msra.mxu0 %v7777_v58  ;;  %5137 = vmatpush1.bf16.msra.mxu1 %v7780_v41 }
 0xa5c   :  { %5046 = vmatprep.subr.bf16.mxu0 %v7785_v4  ;;  %5138 = vmatprep.subr.bf16.mxu1 %v7788_v35 }
 0xa5d   :  { %7525 = vset.pattern.permute.xlu1 %v9468_v54 }
 0xa5e   :  { %5838 = vperm.xlu1 %7525, %v5772_v61  }
 0xa5f   :  { %5047 = vmatpush1.bf16.msra.mxu0 %v7783_v2  ;;  %5139 = vmatpush1.bf16.msra.mxu1 %v7786_v5 }
 0xa60   :  { %5224 = vmatprep.subr.bf16.mxu0 %v7791_v45  ;;  %5316 = vmatprep.subr.bf16.mxu1 %v7794_v6 }
 0xa62   :  { %6604 = vmatmul.mubr.msk.bf16.vlgmr.msra.gmra.mrb[132].mxu0 %vm1731_vm3, %v9221_v30  ;;  %6621 = vmatmul.mubr.msk.bf16.vlgmr.msra.gmra.mrb[148].mxu1 %vm1731_vm3, %v9221_v30 }
 0xa63   :  { %5225 = vmatpush1.bf16.msra.mxu0 %v7789_v9  ;;  %5317 = vmatpush1.bf16.msra.mxu1 %v7792_v12 }
 0xa64   :  { %5226 = vmatprep.subr.bf16.mxu0 %v7797_v3  ;;  %5318 = vmatprep.subr.bf16.mxu1 %v7800_v8 }
 0xa65   :  { %5256 = vmatprep.mubr.bf16.mxu0 %v9468_v54  ;;  %5348 = vmatprep.mubr.bf16.mxu1 %v9468_v54 }
 0xa67   :  { %5227 = vmatpush1.bf16.msra.mxu0 %v7795_v10  ;;  %5319 = vmatpush1.bf16.msra.mxu1 %v7798_v14 }
 0xa68   :  { %5228 = vmatprep.subr.bf16.mxu0 %v7803_v11  ;;  %5320 = vmatprep.subr.bf16.mxu1 %v7806_v28 }
 0xa6b   :  { %5229 = vmatpush1.bf16.msra.mxu0 %v7801_v33  ;;  %5321 = vmatpush1.bf16.msra.mxu1 %v7804_v46 }
 0xa6c   :  { %5230 = vmatprep.subr.bf16.mxu0 %v7809_v47  ;;  %5322 = vmatprep.subr.bf16.mxu1 %v7812_v62 }
 0xa6f   :  { %5231 = vmatpush1.bf16.msra.mxu0 %v7807_v27  ;;  %5323 = vmatpush1.bf16.msra.mxu1 %v7810_v43 }
 0xa70   :  { %5408 = vmatprep.subr.bf16.mxu0 %v7815_v7  ;;  %5500 = vmatprep.subr.bf16.mxu1 %v7818_v48 }
 0xa72   :  { %6638 = vmatmul.mubr.msk.bf16.vlgmr.msra.gmra.mrb[136].mxu0 %vm1731_vm3, %v9221_v30  ;;  %6655 = vmatmul.mubr.msk.bf16.vlgmr.msra.gmra.mrb[152].mxu1 %vm1731_vm3, %v9221_v30 }
 0xa73   :  { %5409 = vmatpush1.bf16.msra.mxu0 %v7813_v44  ;;  %5501 = vmatpush1.bf16.msra.mxu1 %v7816_v49 }
 0xa74   :  { %5410 = vmatprep.subr.bf16.mxu0 %v7821_v50  ;;  %5502 = vmatprep.subr.bf16.mxu1 %v7824_v55 }
 0xa75   :  { %5440 = vmatprep.mubr.bf16.mxu0 %v9468_v54  ;;  %5532 = vmatprep.mubr.bf16.mxu1 %v9468_v54 }
 0xa77   :  { %5411 = vmatpush1.bf16.msra.mxu0 %v7819_v57  ;;  %5503 = vmatpush1.bf16.msra.mxu1 %v7822_v63 }
 0xa78   :  { %5412 = vmatprep.subr.bf16.mxu0 %v7827_v0  ;;  %5504 = vmatprep.subr.bf16.mxu1 %v7830_v1 }
 0xa7b   :  { %5413 = vmatpush1.bf16.msra.mxu0 %v7825_v15  ;;  %5505 = vmatpush1.bf16.msra.mxu1 %v7828_v16 }
 0xa7c   :  { %5414 = vmatprep.subr.bf16.mxu0 %v7833_v17  ;;  %5506 = vmatprep.subr.bf16.mxu1 %v7836_v20 }
 0xa7f   :  { %5415 = vmatpush1.bf16.msra.mxu0 %v7831_v18  ;;  %5507 = vmatpush1.bf16.msra.mxu1 %v7834_v19 }
 0xa80   :  { %5592 = vmatprep.subr.bf16.mxu0 %v7839_v21 }
 0xa82   :  { %6672 = vmatmul.mubr.msk.bf16.vlgmr.msra.gmra.mrb[140].mxu0 %vm1731_vm3, %v9221_v30  ;;  %6689 = vmatmul.mubr.msk.bf16.vlgmr.msra.gmra.mrb[156].mxu1 %vm1731_vm3, %v9221_v30 }
 0xa83   :  { %5593 = vmatpush1.bf16.msra.mxu0 %v7837_v23  ;;  %5624 = vmatprep.mubr.bf16.mxu0 %v9468_v54 }
 0xa84   :  { %5594 = vmatprep.subr.bf16.mxu0 %v7842_v24  ;;  %5686 = vmatprep.mubr.bf16.mxu1 %v9468_v54 }
 0xa87   :  { %5595 = vmatpush1.bf16.msra.mxu0 %v7840_v25 }
 0xa88   :  { %5596 = vmatprep.subr.bf16.mxu0 %v7845_v52 }
 0xa8b   :  { %5597 = vmatpush1.bf16.msra.mxu0 %v7843_v37 }
 0xa8c   :  { %5598 = vmatprep.subr.bf16.mxu0 %v7848_v39  ;;  %v4801_v39 = vld [vmem:[%s9437_s7 + $0x90] sm:$0xf] }
 0xa8f   :  { %5599 = vmatpush1.bf16.msra.mxu0 %v7846_v22  ;;  %v5778_v22 = vlaneseq }
 0xa91   :  { %v5779_v36 = vshrl.u32 %v5778_v22, 7 }
 0xa92   :  { %6706 = vmatmul.mubr.msk.bf16.vlgmr.msra.gmra.mrb[144].mxu0 %vm1731_vm3, %v9221_v30 }
 0xa93   :  { %5743 = vmatprep.mubr.bf16.mxu0 %v9468_v54 }
 0xb25   :  { %v4890_v42 = vpop.f32.mrb[128].mxu0  ;;  %v4982_v51 = vpop.f32.mrb[144].mxu1 }
 0xb26   :  { %v5635_v34 = vpack.c.bf16 %v4982_v51, %v4890_v42  ;;  %v4892_v60 = vpop.f32.mrb[129].mxu0  ;;  %v4984_v31 = vpop.f32.mrb[145].mxu1  ;;  %v5780_v51 = vsub.s32 0, %v5779_v36 }
 0xb27   :  { %v5636_v30 = vpack.c.bf16 %v4984_v31, %v4892_v60  ;;  %v4894_v38 = vpop.f32.mrb[130].mxu0  ;;  %v4986_v56 = vpop.f32.mrb[146].mxu1  ;;  %v5794_v60 = vsub.s32 1, %v5779_v36 }
 0xb28   :  { %v5695_v53 = vpack.c.bf16 %v4986_v56, %v4894_v38  ;;  %v4896_v40 = vpop.f32.mrb[131].mxu0  ;;  %v4988_v13 = vpop.f32.mrb[147].mxu1 }
 0xb29   :  { %v5696_v59 = vpack.c.bf16 %v4988_v13, %v4896_v40  ;;  %5654 = vmatprep.subr.bf16.mxu1 %v5636_v30  ;;  %v5790_v31 = vpop.permute.xlu1 %5789 }
 0xb2a   :  { %5655 = vmatpush1.bf16.msra.mxu1 %v5635_v34 }
 0xb2b   :  { %5711 = vmatprep.subr.bf16.mxu0 %v5696_v59  ;;  %v5826_v59 = vsub.s32 3, %v5779_v36 }
 0xb2c   :  { %5712 = vmatpush1.bf16.msra.mxu0 %v5695_v53 }
 0xb35   :  { %v5074_v32 = vpop.f32.mrb[132].mxu0  ;;  %v5166_v58 = vpop.f32.mrb[148].mxu1 }
 0xb36   :  { %v5637_v54 = vpack.c.bf16 %v5166_v58, %v5074_v32  ;;  %v5076_v41 = vpop.f32.mrb[133].mxu0  ;;  %v5168_v4 = vpop.f32.mrb[149].mxu1 }
 0xb37   :  { %v5638_v35 = vpack.c.bf16 %v5168_v4, %v5076_v41  ;;  %v5078_v2 = vpop.f32.mrb[134].mxu0  ;;  %v5170_v5 = vpop.f32.mrb[150].mxu1 }
 0xb38   :  { %v5697_v45 = vpack.c.bf16 %v5170_v5, %v5078_v2  ;;  %v5080_v6 = vpop.f32.mrb[135].mxu0  ;;  %v5172_v9 = vpop.f32.mrb[151].mxu1 }
 0xb39   :  { %v5698_v12 = vpack.c.bf16 %v5172_v9, %v5080_v6  ;;  %5656 = vmatprep.subr.bf16.mxu1 %v5638_v35  ;;  %v5776_v4 = vpop.permute.xlu0 %5775 }
 0xb3a   :  { %5657 = vmatpush1.bf16.msra.mxu1 %v5637_v54 }
 0xb3b   :  { %5713 = vmatprep.subr.bf16.mxu0 %v5698_v12 }
 0xb3c   :  { %5714 = vmatpush1.bf16.msra.mxu0 %v5697_v45 }
 0xb45   :  { %v5258_v3 = vpop.f32.mrb[136].mxu0  ;;  %v5350_v8 = vpop.f32.mrb[152].mxu1 }
 0xb46   :  { %v5639_v10 = vpack.c.bf16 %v5350_v8, %v5258_v3  ;;  %v5260_v14 = vpop.f32.mrb[137].mxu0  ;;  %v5352_v11 = vpop.f32.mrb[153].mxu1  ;;  %v5810_v3 = vsub.s32 2, %v5779_v36 }
 0xb47   :  { %v5640_v28 = vpack.c.bf16 %v5352_v11, %v5260_v14  ;;  %v5262_v33 = vpop.f32.mrb[138].mxu0  ;;  %v5354_v46 = vpop.f32.mrb[154].mxu1 }
 0xb48   :  { %v5699_v47 = vpack.c.bf16 %v5354_v46, %v5262_v33  ;;  %v5264_v62 = vpop.f32.mrb[139].mxu0  ;;  %v5356_v27 = vpop.f32.mrb[155].mxu1 }
 0xb49   :  { %v5700_v43 = vpack.c.bf16 %v5356_v27, %v5264_v62  ;;  %5658 = vmatprep.subr.bf16.mxu1 %v5640_v28  ;;  %v5822_v62 = vpop.permute.xlu1 %5821  ;;  %v5806_v27 = vpop.permute.xlu0 %5805 }
 0xb4a   :  { %5659 = vmatpush1.bf16.msra.mxu1 %v5639_v10 }
 0xb4b   :  { %5715 = vmatprep.subr.bf16.mxu0 %v5700_v43 }
 0xb4c   :  { %5716 = vmatpush1.bf16.msra.mxu0 %v5699_v47 }
 0xb4d   :  { %v5839_v22 = vpop.permute.xlu1 %5838 }
 0xb55   :  { %v5442_v7 = vpop.f32.mrb[140].mxu0  ;;  %v5534_v48 = vpop.f32.mrb[156].mxu1 }
 0xb56   :  { %v5641_v44 = vpack.c.bf16 %v5534_v48, %v5442_v7  ;;  %v5444_v49 = vpop.f32.mrb[141].mxu0  ;;  %v5536_v50 = vpop.f32.mrb[157].mxu1 }
 0xb57   :  { %v5642_v55 = vpack.c.bf16 %v5536_v50, %v5444_v49  ;;  %v5446_v57 = vpop.f32.mrb[142].mxu0  ;;  %v5538_v63 = vpop.f32.mrb[158].mxu1 }
 0xb58   :  { %v5701_v0 = vpack.c.bf16 %v5538_v63, %v5446_v57  ;;  %v5448_v1 = vpop.f32.mrb[143].mxu0  ;;  %v5540_v15 = vpop.f32.mrb[159].mxu1 }
 0xb59   :  { %v5702_v16 = vpack.c.bf16 %v5540_v15, %v5448_v1  ;;  %5660 = vmatprep.subr.bf16.mxu1 %v5642_v55 }
 0xb5a   :  { %5661 = vmatpush1.bf16.msra.mxu1 %v5641_v44 }
 0xb5b   :  { %5717 = vmatprep.subr.bf16.mxu0 %v5702_v16 }
 0xb5c   :  { %5718 = vmatpush1.bf16.msra.mxu0 %v5701_v0 }
 0xb65   :  { %v5626_v17 = vpop.f32.mrb[144].mxu0 }
 0xb66   :  { %v5643_v20 = vpack.c.bf16 %v5626_v17, %v5626_v17  ;;  %v5628_v18 = vpop.f32.mrb[145].mxu0 }
 0xb67   :  { %v5644_v19 = vpack.c.bf16 %v5628_v18, %v5628_v18  ;;  %v5630_v21 = vpop.f32.mrb[146].mxu0 }
 0xb68   :  { %v5649_v23 = vsel %vm1586_vm1, %v5643_v20, 0  ;;  %v5703_v24 = vpack.c.bf16 %v5630_v21, %v5630_v21  ;;  %v5632_v25 = vpop.f32.mrb[147].mxu0 }
 0xb69   :  { %v5704_v52 = vpack.c.bf16 %v5632_v25, %v5632_v25  ;;  %6707 = vmatprep.subr.msk.bf16.mxu1 %vm1586_vm1, %v5644_v19 }
 0xb6a   :  { %v5706_v37 = vsel %vm1586_vm1, %v5703_v24, 0  ;;  %5663 = vmatpush1.bf16.msra.mxu1 %v5649_v23 }
 0xb6b   :  { %6709 = vmatprep.subr.msk.bf16.mxu0 %vm1586_vm1, %v5704_v52 }
 0xb6c   :  { %5720 = vmatpush1.bf16.msra.mxu0 %v5706_v37 }
 0xb6d   :  { %6708 = vmatmul.mubr.msk.bf16.vlgmr.msra.gmra.mrb[160].mxu1 %vm1582_vm2, %v4801_v39 }
 0xb6f   :  { %6710 = vmatmul.mubr.msk.bf16.vlgmr.msra.gmra.mrb[148].mxu0 %vm1582_vm2, %v4801_v39 }
 0xc40   :  { %v5688_v61 = vpop.f32.mrb[160].mxu1 }
 0xc41   :  { %v5762_v42 = vadd.f32 %v5755_v29, %v5688_v61  ;;  %v5690_v34 = vpop.f32.mrb[161].mxu1 }
 0xc42   :  { %v5763_v30 = vadd.f32 %v5755_v29, %v5690_v34  ;;  %v5745_v38 = vpop.f32.mrb[148].mxu0  ;;  %v5692_v56 = vpop.f32.mrb[162].mxu1 }
 0xc43   :  { %v5766_v53 = vmax.f32 %v5762_v42, 0.0  ;;  %v5764_v40 = vadd.f32 %v5760_v26, %v5745_v38  ;;  %v5747_v13 = vpop.f32.mrb[149].mxu0  ;;  %v5693_v32 = vpop.f32.mrb[163].mxu1 }
 0xc44   :  { %v5767_v58 = vmax.f32 %v5763_v30, 0.0  ;;  %v5765_v54 = vadd.f32 %v5760_v26, %v5747_v13  ;;  %v5749_v41 = vpop.f32.mrb[150].mxu0 }
 0xc45   :  { %v5781_v35 = vrot.slane %v5766_v53, %v5780_v51  ;;  %v5795_v2 = vrot.slane %v5766_v53, %v5794_v60  ;;  %v5768_v5 = vmax.f32 %v5764_v40, 0.0  ;;  %v5750_v45 = vpop.f32.mrb[151].mxu0  ;;  %v5827_v14 = vrot.slane %v5766_v53, %v5826_v59 }
 0xc46   :  { %v5785_v6 = vrot.slane %v5767_v58, %v5780_v51  ;;  %v5799_v9 = vrot.slane %v5767_v58, %v5794_v60  ;;  %v5769_v12 = vmax.f32 %v5765_v54, 0.0  ;;  %v5831_v11 = vrot.slane %v5767_v58, %v5826_v59 }
 0xc47   :  { %v5800_v8 = vmul.f32 %v5795_v2, %v5790_v31  ;;  %v5848_v10 = vrot.slane %v5768_v5, %v5780_v51  ;;  %v5858_v33 = vrot.slane %v5768_v5, %v5794_v60  ;;  %v5786_v43 = vmul.f32 %v5781_v35, %v5776_v4 }
 0xc48   :  { %v5801_v28 = vmul.f32 %v5799_v9, %v5790_v31  ;;  %v5852_v46 = vrot.slane %v5769_v12, %v5780_v51  ;;  %v5862_v47 = vrot.slane %v5769_v12, %v5794_v60  ;;  %v5787_v7 = vmul.f32 %v5785_v6, %v5776_v4 }
 0xc49   :  { %v5811_v48 = vrot.slane %v5766_v53, %v5810_v3  ;;  %v5815_v44 = vrot.slane %v5767_v58, %v5810_v3  ;;  %v5853_v49 = vmul.f32 %v5848_v10, %v5776_v4  ;;  %v5832_v55 = vmul.f32 %v5827_v14, %v5822_v62 }
 0xc4a   :  { %v5854_v50 = vmul.f32 %v5852_v46, %v5776_v4  ;;  %v5833_v57 = vmul.f32 %v5831_v11, %v5822_v62  ;;  %v5802_v63 = vadd.f32 %v5800_v8, %v5786_v43  ;;  %v5803_v0 = vadd.f32 %v5801_v28, %v5787_v7 }
 0xc4b   :  { %v5816_v1 = vmul.f32 %v5811_v48, %v5806_v27  ;;  %v5817_v15 = vmul.f32 %v5815_v44, %v5806_v27  ;;  %v5863_v16 = vmul.f32 %v5858_v33, %v5790_v31  ;;  %v5864_v17 = vmul.f32 %v5862_v47, %v5790_v31 }
 0xc4c   :  { %v5882_v20 = vrot.slane %v5768_v5, %v5826_v59  ;;  %v5886_v18 = vrot.slane %v5769_v12, %v5826_v59  ;;  %v5870_v19 = vrot.slane %v5768_v5, %v5810_v3  ;;  %v5874_v21 = vrot.slane %v5769_v12, %v5810_v3 }
 0xc4d   :  { %v5818_v23 = vadd.f32 %v5816_v1, %v5802_v63  ;;  %v5819_v24 = vadd.f32 %v5817_v15, %v5803_v0  ;;  %v5865_v25 = vadd.f32 %v5863_v16, %v5853_v49  ;;  %v5866_v52 = vadd.f32 %v5864_v17, %v5854_v50 }
 0xc4e   :  { %v5875_v37 = vmul.f32 %v5870_v19, %v5806_v27  ;;  %v5876_v39 = vmul.f32 %v5874_v21, %v5806_v27  ;;  %v5887_v29 = vmul.f32 %v5882_v20, %v5822_v62  ;;  %v5888_v61 = vmul.f32 %v5886_v18, %v5822_v62 }
 0xc4f   :  { %v5834_v26 = vadd.f32 %v5832_v55, %v5818_v23  ;;  %v5835_v36 = vadd.f32 %v5833_v57, %v5819_v24 }
 0xc50   :  { %v5877_v42 = vadd.f32 %v5875_v37, %v5865_v25  ;;  %v5878_v51 = vadd.f32 %v5876_v39, %v5866_v52 }
 0xc51   :  { %v5841_v34 = vadd.f32 %v5839_v22, %v5834_v26  ;;  %v5842_v60 = vadd.f32 %v5839_v22, %v5835_v36 }
 0xc52   :  { %v5889_v31 = vadd.f32 %v5887_v29, %v5877_v42  ;;  %v5890_v30 = vadd.f32 %v5888_v61, %v5878_v51 }
 0xc53   :  { %5843 = vst [vmem:[%s9444_s9] sm:$0x3] %v5841_v34  ;;  %5844 = vst [vmem:[%s9444_s9 + $0x8] sm:$0x3] %v5842_v60 }
 0xc54   :  { %v5891_v38 = vadd.f32 %v5889_v31, %v5839_v22  ;;  %v5892_v56 = vadd.f32 %v5890_v30, %v5839_v22 }
 0xc56   :  { %5893 = vst [vmem:[%s9444_s9 + $0x10] sm:$0x3] %v5891_v38  ;;  %5894 = vst [vmem:[%s9444_s9 + $0x18] sm:$0x3] %v5892_v56 }

</bundles_post_ra>
